<compile_context>
chip_gen: v6e
topology: v6e:2x2x1
jax: 0.10.0
libtpu: 0.0.40
codegen_flags: <defaults>
</compile_context>

<pallas_src>
import math

import jax
import jax.numpy as jnp
from jax.experimental import pallas as pl
from jax.experimental.pallas import tpu as pltpu


def _choose_l_tile(L):
    """Largest lane-friendly L tile: full L when small, else a multiple of 128."""
    if L <= 512:
        return L
    for t in (512, 384, 256, 128):
        if L % t == 0:
            return t
    # TODO(synk): ragged L (not a multiple of 128) falls back to one full-L block.
    return L


def _vmem_limit_bytes(D, l_tile, S, Dc, H):
    """Scoped-VMEM budget from block shapes (2x headroom), clamped so the same
    value is safe on v5e/v6e (128 MiB phys) and v7x (64 MiB phys)."""
    f32, bf16 = 4, 2
    est = 0
    est += 2 * D * l_tile * f32 * 2                 # x in + out blocks, double buffered
    est += 2 * Dc * S * bf16                        # context tile
    est += 2 * (2 * D * D + 2 * D * Dc) * bf16      # weights (worst case 2 buffers each)
    est += 2 * D * 8 * f32                          # packed LN affine + biases
    est += (4 * D * l_tile + 2 * D * S + 3 * H * l_tile * S) * f32   # temporaries
    return int(max(16 * 2**20, min(2 * est, 48 * 2**20)))


def cross_attention_block(x_ncl, context, params, num_heads):
    """x_ncl: (B, D, L) f32 (conv NCL layout); context: (B, S, Dc) f32.
    Returns (B, D, L) f32 — the module's native output layout."""
    B, D, L = x_ncl.shape
    _, S, Dc = context.shape
    assert D % num_heads == 0
    head_dim = D // num_heads
    scale = 1.0 / math.sqrt(head_dim)

    (gamma, beta, wq, bq, wk, bk, wv, bv, wo, bo, wp, bp) = params

    # ---------------- wrapper-side one-time weight prep ----------------------
    # Fold the 1/sqrt(head_dim) query scale into Wq / bq.
    wq_b = (jnp.asarray(wq, jnp.float32) * scale).astype(jnp.bfloat16)   # (D, D)  (out,in)
    wk_b = jnp.asarray(wk, jnp.float32).astype(jnp.bfloat16)             # (D, Dc)
    wv_b = jnp.asarray(wv, jnp.float32).astype(jnp.bfloat16)             # (D, Dc)
    # Fuse MHA out_proj with self.proj (no nonlinearity between them):
    #   proj(out_proj(h)) = (Wp @ Wo) h + (Wp bo + bp)
    wp32, wo32 = jnp.asarray(wp, jnp.float32), jnp.asarray(wo, jnp.float32)
    w_f = (wp32 @ wo32).astype(jnp.bfloat16)                             # (D, D)
    b_f = wp32 @ jnp.asarray(bo, jnp.float32) + jnp.asarray(bp, jnp.float32)

    # Pack LayerNorm affine + all remaining biases into ONE (D, 8) f32 input.
    zeros = jnp.zeros((D,), jnp.float32)
    bias_pack = jnp.stack(
        [jnp.asarray(gamma, jnp.float32),
         jnp.asarray(beta, jnp.float32),
         jnp.asarray(bq, jnp.float32) * scale,
         jnp.asarray(bk, jnp.float32),
         jnp.asarray(bv, jnp.float32),
         b_f, zeros, zeros],
        axis=1)                                                          # (D, 8)

    # Context pre-transposed to (B, Dc, S) bf16: K/V become canonical
    # [D,Dc]x[Dc,S] MXU contractions, no in-kernel transpose, half the DMA.
    ctx_t = jnp.swapaxes(context, 1, 2).astype(jnp.bfloat16)

    l_tile = _choose_l_tile(L)
    n_l = L // l_tile
    assert n_l * l_tile == L

    def make_kernel(direct_scores):
        def kernel(x_ref, ctx_ref, wq_ref, wk_ref, wv_ref, wf_ref, bias_ref, o_ref):
            x_t = x_ref[0]                       # (D, l_tile) f32, channels-first
            ctx_b = ctx_ref[0]                   # (Dc, S)     bf16
            bias = bias_ref[...]                 # (D, 8)      f32
            g, bt = bias[:, 0:1], bias[:, 1:2]
            bq_c, bk_c = bias[:, 2:3], bias[:, 3:4]
            bv_c, bf_c = bias[:, 4:5], bias[:, 5:6]

            # LayerNorm over channels (axis 0 here); eps matches torch (1e-5).
            mean = jnp.mean(x_t, axis=0, keepdims=True)
            var = jnp.mean((x_t - mean) ** 2, axis=0, keepdims=True)
            xn = (x_t - mean) * jax.lax.rsqrt(var + 1e-5)
            xn = (xn * g + bt).astype(jnp.bfloat16)

            # q/k/v projections (weights in torch (out, in) layout).  K/V are
            # recomputed per L tile (cheap: (D,Dc)x(Dc,S)), keeping both grid
            # axes safely "parallel" with no carried state.
            q_t = jnp.dot(wq_ref[...], xn,
                          preferred_element_type=jnp.float32) + bq_c     # (D, l_tile)
            k_t = jnp.dot(wk_ref[...], ctx_b,
                          preferred_element_type=jnp.float32) + bk_c     # (D, S)
            v_t = jnp.dot(wv_ref[...], ctx_b,
                          preferred_element_type=jnp.float32) + bv_c     # (D, S)

            # Head split (D, X) -> (H, hd, X): contiguous sublane regrouping,
            # matching torch MHA's contiguous head chunking of embed_dim.
            # NOTE: head_dim here is small (<=25% of the 256-deep v6e/v7x MXU);
            # at real sizes prefer fewer/wider heads if the model allows.
            q_h = q_t.reshape(num_heads, head_dim, l_tile).astype(jnp.bfloat16)
            k_h = k_t.reshape(num_heads, head_dim, S).astype(jnp.bfloat16)
            v_h = v_t.reshape(num_heads, head_dim, S).astype(jnp.bfloat16)

            if direct_scores:
                # Transposed-LHS batched contraction: no explicit swapaxes, so no
                # separate XLU relayout of q ahead of the MXU.
                s = jnp.einsum('hdl,hds->hls', q_h, k_h,
                               preferred_element_type=jnp.float32)        # (H, l_tile, S)
            else:
                s = jnp.einsum('hld,hds->hls', jnp.swapaxes(q_h, 1, 2), k_h,
                               preferred_element_type=jnp.float32)

            s = s - jnp.max(s, axis=-1, keepdims=True)
            p = jnp.exp(s)
            p = p * pl.reciprocal(jnp.sum(p, axis=-1, keepdims=True), approx=True)

            o_h = jnp.einsum('hds,hls->hdl', v_h, p.astype(jnp.bfloat16),
                             preferred_element_type=jnp.float32)          # (H, hd, l_tile)
            attn_t = o_h.reshape(D, l_tile).astype(jnp.bfloat16)          # concat(heads)

            # Single fused (proj ∘ out_proj) matmul + residual with pre-norm x.
            proj_t = jnp.dot(wf_ref[...], attn_t,
                             preferred_element_type=jnp.float32) + bf_c
            o_ref[0] = x_t + proj_t
        return kernel

    def build(single_buffer_weights, direct_scores):
        x_spec = pl.BlockSpec((1, D, l_tile), lambda b, l: (b, 0, l))
        ctx_spec = pl.BlockSpec((1, Dc, S), lambda b, l: (b, 0, 0))
        out_spec = pl.BlockSpec((1, D, l_tile), lambda b, l: (b, 0, l))

        def wspec(shape):
            # Constant index_map -> fetched once; Buffered(1) additionally drops
            # the second pipeline buffer (VMEM headroom on v7x's 64 MiB).
            if single_buffer_weights and hasattr(pl, "Buffered"):
                return pl.BlockSpec(shape, lambda b, l: (0, 0),
                                    pipeline_mode=pl.Buffered(1))
            return pl.BlockSpec(shape, lambda b, l: (0, 0))

        return pl.pallas_call(
            make_kernel(direct_scores),
            out_shape=jax.ShapeDtypeStruct((B, D, L), jnp.float32),
            grid_spec=pltpu.PrefetchScalarGridSpec(
                num_scalar_prefetch=0,
                grid=(B, n_l),     # (batch, L-tile), both parallel
                in_specs=[
                    x_spec,            # x, native NCL f32
                    ctx_spec,          # context, pre-transposed (Dc, S) bf16
                    wspec((D, D)),     # Wq (query scale folded, bf16)
                    wspec((D, Dc)),    # Wk
                    wspec((D, Dc)),    # Wv
                    wspec((D, D)),     # W_fused = Wp @ Wo
                    wspec((D, 8)),     # packed gamma/beta/bq/bk/bv/b_fused
                ],
                out_specs=out_spec,
            ),
            compiler_params=pltpu.CompilerParams(
                dimension_semantics=("parallel", "parallel"),
                vmem_limit_bytes=_vmem_limit_bytes(D, l_tile, S, Dc, num_heads)),
        )

    args = (x_ncl, ctx_t, wq_b, wk_b, wv_b, w_f, bias_pack)

    # Try the fully optimised variant first; degrade gracefully if the installed
    # Pallas rejects Buffered(1) weights or the transposed-LHS batched einsum.
    last_err = None
    for single_buf, direct in ((True, True), (False, True), (True, False), (False, False)):
        try:
            return build(single_buf, direct)(*args)    # (B, D, L), no wrapper transpose
        except Exception as e:  # noqa: BLE001 - intentional capability fallback
            last_err = e
    raise last_err


def init_params(key, latent_dim, context_dim):
    """Deterministic synthetic parameters in torch (out, in) layouts."""
    D, Dc = latent_dim, context_dim
    ks = jax.random.split(key, 8)
    s = 0.1
    gamma = jnp.ones((D,), jnp.float32)
    beta = jnp.zeros((D,), jnp.float32)
    wq = s * jax.random.normal(ks[0], (D, D), jnp.float32)
    bq = s * jax.random.normal(ks[1], (D,), jnp.float32)
    wk = s * jax.random.normal(ks[2], (D, Dc), jnp.float32)
    bk = s * jax.random.normal(ks[3], (D,), jnp.float32)
    wv = s * jax.random.normal(ks[4], (D, Dc), jnp.float32)
    bv = s * jax.random.normal(ks[5], (D,), jnp.float32)
    wo = s * jax.random.normal(ks[6], (D, D), jnp.float32)
    bo = jnp.zeros((D,), jnp.float32)
    wp = s * jax.random.normal(ks[7], (D, D), jnp.float32)
    bp = jnp.zeros((D,), jnp.float32)
    return (gamma, beta, wq, bq, wk, bk, wv, bv, wo, bo, wp, bp)


if __name__ == "__main__":
    B = 2
    latent_dim = 32      # embed_dim
    context_dim = 16     # kdim = vdim
    num_heads = 4
    L = 16               # latent sequence length (spatial axis of 1D latent)
    S = 8                # context sequence length

    key = jax.random.PRNGKey(0)
    kx, kc, kp = jax.random.split(key, 3)
    x = jax.random.normal(kx, (B, latent_dim, L), jnp.float32)        # NCL, conv-style
    context = jax.random.normal(kc, (B, S, context_dim), jnp.float32)
    params = init_params(kp, latent_dim, context_dim)

    out = cross_attention_block(x, context, params, num_heads)
    out = jax.block_until_ready(out)

    assert out.shape == (B, latent_dim, L)
    assert bool(jnp.all(jnp.isfinite(out)))
    print("KERNEL_OK")
</pallas_src>

<mosaic_0001>
module attributes {stable_mosaic.version = 11 : i64} {
  func.func @kernel(%arg0: i32, %arg1: i32, %arg2: memref<1x32x16xf32, #tpu.memory_space<vmem>>, %arg3: memref<1x16x8xbf16, #tpu.memory_space<vmem>>, %arg4: memref<32x32xbf16, #tpu.memory_space<vmem>>, %arg5: memref<32x16xbf16, #tpu.memory_space<vmem>>, %arg6: memref<32x16xbf16, #tpu.memory_space<vmem>>, %arg7: memref<32x32xbf16, #tpu.memory_space<vmem>>, %arg8: memref<32x8xf32, #tpu.memory_space<vmem>>, %arg9: memref<1x32x16xf32, #tpu.memory_space<vmem>>) attributes {dimension_semantics = [#tpu.dimension_semantics<parallel>, #tpu.dimension_semantics<parallel>], iteration_bounds = array<i64: 2, 1>, scalar_prefetch = 0 : i64, scratch_operands = 0 : i64, tpu.core_type = #tpu.core_type<tc>, window_params = [{transform_indices = @transform_0, window_bounds = array<i64: 1, 32, 16>}, {transform_indices = @transform_1, window_bounds = array<i64: 1, 16, 8>}, {pipeline_mode = #tpu.pipeline_mode<synchronous>, transform_indices = @transform_2, window_bounds = array<i64: 32, 32>}, {pipeline_mode = #tpu.pipeline_mode<synchronous>, transform_indices = @transform_3, window_bounds = array<i64: 32, 16>}, {pipeline_mode = #tpu.pipeline_mode<synchronous>, transform_indices = @transform_4, window_bounds = array<i64: 32, 16>}, {pipeline_mode = #tpu.pipeline_mode<synchronous>, transform_indices = @transform_5, window_bounds = array<i64: 32, 32>}, {pipeline_mode = #tpu.pipeline_mode<synchronous>, transform_indices = @transform_6, window_bounds = array<i64: 32, 8>}, {transform_indices = @transform_7, window_bounds = array<i64: 1, 32, 16>}]} {
    %c0 = arith.constant 0 : index
    %c0_0 = arith.constant 0 : index
    %c0_1 = arith.constant 0 : index
    %0 = vector.load %arg2[%c0, %c0_0, %c0_1] : memref<1x32x16xf32, #tpu.memory_space<vmem>>, vector<1x32x16xf32>
    %1 = vector.shape_cast %0 : vector<1x32x16xf32> to vector<32x16xf32>
    %c0_2 = arith.constant 0 : index
    %c0_3 = arith.constant 0 : index
    %c0_4 = arith.constant 0 : index
    %2 = vector.load %arg3[%c0_2, %c0_3, %c0_4] : memref<1x16x8xbf16, #tpu.memory_space<vmem>>, vector<1x16x8xbf16>
    %3 = vector.shape_cast %2 : vector<1x16x8xbf16> to vector<16x8xbf16>
    %c0_5 = arith.constant 0 : index
    %c0_6 = arith.constant 0 : index
    %4 = vector.load %arg8[%c0_5, %c0_6] : memref<32x8xf32, #tpu.memory_space<vmem>>, vector<32x8xf32>
    %5 = vector.extract_strided_slice %4 {offsets = [0, 0], sizes = [32, 1], strides = [1, 1]} : vector<32x8xf32> to vector<32x1xf32>
    %6 = vector.extract_strided_slice %4 {offsets = [0, 1], sizes = [32, 1], strides = [1, 1]} : vector<32x8xf32> to vector<32x1xf32>
    %7 = vector.extract_strided_slice %4 {offsets = [0, 2], sizes = [32, 1], strides = [1, 1]} : vector<32x8xf32> to vector<32x1xf32>
    %8 = vector.extract_strided_slice %4 {offsets = [0, 3], sizes = [32, 1], strides = [1, 1]} : vector<32x8xf32> to vector<32x1xf32>
    %9 = vector.extract_strided_slice %4 {offsets = [0, 4], sizes = [32, 1], strides = [1, 1]} : vector<32x8xf32> to vector<32x1xf32>
    %10 = vector.extract_strided_slice %4 {offsets = [0, 5], sizes = [32, 1], strides = [1, 1]} : vector<32x8xf32> to vector<32x1xf32>
    %cst = arith.constant dense<0.000000e+00> : vector<16xf32>
    %11 = vector.multi_reduction <add>, %1, %cst [0] : vector<32x16xf32> to vector<16xf32>
    %12 = vector.shape_cast %11 : vector<16xf32> to vector<1x16xf32>
    %cst_7 = arith.constant 3.200000e+01 : f32
    %13 = vector.broadcast %cst_7 : f32 to vector<1x16xf32>
    %14 = arith.divf %12, %13 : vector<1x16xf32>
    %15 = vector.broadcast %14 : vector<1x16xf32> to vector<32x16xf32>
    %16 = arith.subf %1, %15 : vector<32x16xf32>
    %17 = arith.mulf %16, %16 : vector<32x16xf32>
    %cst_8 = arith.constant dense<0.000000e+00> : vector<16xf32>
    %18 = vector.multi_reduction <add>, %17, %cst_8 [0] : vector<32x16xf32> to vector<16xf32>
    %19 = vector.shape_cast %18 : vector<16xf32> to vector<1x16xf32>
    %cst_9 = arith.constant 3.200000e+01 : f32
    %20 = vector.broadcast %cst_9 : f32 to vector<1x16xf32>
    %21 = arith.divf %19, %20 : vector<1x16xf32>
    %22 = vector.broadcast %14 : vector<1x16xf32> to vector<32x16xf32>
    %23 = arith.subf %1, %22 : vector<32x16xf32>
    %cst_10 = arith.constant 9.99999974E-6 : f32
    %24 = vector.broadcast %cst_10 : f32 to vector<1x16xf32>
    %25 = arith.addf %21, %24 : vector<1x16xf32>
    %26 = math.rsqrt %25 : vector<1x16xf32>
    %27 = vector.broadcast %26 : vector<1x16xf32> to vector<32x16xf32>
    %28 = arith.mulf %23, %27 : vector<32x16xf32>
    %29 = vector.broadcast %5 : vector<32x1xf32> to vector<32x16xf32>
    %30 = arith.mulf %28, %29 : vector<32x16xf32>
    %31 = vector.broadcast %6 : vector<32x1xf32> to vector<32x16xf32>
    %32 = arith.addf %30, %31 : vector<32x16xf32>
    %33 = arith.truncf %32 : vector<32x16xf32> to vector<32x16xbf16>
    %c0_11 = arith.constant 0 : index
    %c0_12 = arith.constant 0 : index
    %34 = vector.load %arg4[%c0_11, %c0_12] : memref<32x32xbf16, #tpu.memory_space<vmem>>, vector<32x32xbf16>
    %cst_13 = arith.constant dense<0.000000e+00> : vector<32x16xf32>
    %35 = tpu.matmul %34, %33, %cst_13 {dimension_numbers = #tpu.dot_dimension_numbers<[1], [0], [0], [1], [0, 0, 1, 1], [], []>} : vector<32x32xbf16>, vector<32x16xbf16>, vector<32x16xf32> -> vector<32x16xf32>
    %36 = vector.broadcast %7 : vector<32x1xf32> to vector<32x16xf32>
    %37 = arith.addf %35, %36 : vector<32x16xf32>
    %c0_14 = arith.constant 0 : index
    %c0_15 = arith.constant 0 : index
    %38 = vector.load %arg5[%c0_14, %c0_15] : memref<32x16xbf16, #tpu.memory_space<vmem>>, vector<32x16xbf16>
    %cst_16 = arith.constant dense<0.000000e+00> : vector<32x8xf32>
    %39 = tpu.matmul %38, %3, %cst_16 {dimension_numbers = #tpu.dot_dimension_numbers<[1], [0], [0], [1], [0, 0, 1, 1], [], []>} : vector<32x16xbf16>, vector<16x8xbf16>, vector<32x8xf32> -> vector<32x8xf32>
    %40 = vector.broadcast %8 : vector<32x1xf32> to vector<32x8xf32>
    %41 = arith.addf %39, %40 : vector<32x8xf32>
    %c0_17 = arith.constant 0 : index
    %c0_18 = arith.constant 0 : index
    %42 = vector.load %arg6[%c0_17, %c0_18] : memref<32x16xbf16, #tpu.memory_space<vmem>>, vector<32x16xbf16>
    %cst_19 = arith.constant dense<0.000000e+00> : vector<32x8xf32>
    %43 = tpu.matmul %42, %3, %cst_19 {dimension_numbers = #tpu.dot_dimension_numbers<[1], [0], [0], [1], [0, 0, 1, 1], [], []>} : vector<32x16xbf16>, vector<16x8xbf16>, vector<32x8xf32> -> vector<32x8xf32>
    %44 = vector.broadcast %9 : vector<32x1xf32> to vector<32x8xf32>
    %45 = arith.addf %43, %44 : vector<32x8xf32>
    %46 = vector.shape_cast %37 : vector<32x16xf32> to vector<4x8x16xf32>
    %47 = arith.truncf %46 : vector<4x8x16xf32> to vector<4x8x16xbf16>
    %48 = vector.shape_cast %41 : vector<32x8xf32> to vector<4x8x8xf32>
    %49 = arith.truncf %48 : vector<4x8x8xf32> to vector<4x8x8xbf16>
    %50 = vector.shape_cast %45 : vector<32x8xf32> to vector<4x8x8xf32>
    %51 = arith.truncf %50 : vector<4x8x8xf32> to vector<4x8x8xbf16>
    "tpu.trace_start"() <{level = 10 : i32, message = "hdl,hds->hls"}> : () -> ()
    %cst_20 = arith.constant dense<0.000000e+00> : vector<4x16x8xf32>
    %52 = tpu.matmul %47, %49, %cst_20 {dimension_numbers = #tpu.dot_dimension_numbers<[1], [1], [2], [2], [0, 0, 0, 2, 1, 2], [0], [0]>} : vector<4x8x16xbf16>, vector<4x8x8xbf16>, vector<4x16x8xf32> -> vector<4x16x8xf32>
    "tpu.trace_stop"() : () -> ()
    %cst_21 = arith.constant dense<0xFF800000> : vector<4x16xf32>
    %53 = vector.multi_reduction <maximumf>, %52, %cst_21 [2] : vector<4x16x8xf32> to vector<4x16xf32>
    %54 = vector.shape_cast %53 : vector<4x16xf32> to vector<4x16x1xf32>
    %55 = vector.broadcast %54 : vector<4x16x1xf32> to vector<4x16x8xf32>
    %56 = arith.subf %52, %55 : vector<4x16x8xf32>
    %57 = math.exp %56 : vector<4x16x8xf32>
    %cst_22 = arith.constant dense<0.000000e+00> : vector<4x16xf32>
    %58 = vector.multi_reduction <add>, %57, %cst_22 [2] : vector<4x16x8xf32> to vector<4x16xf32>
    %59 = vector.shape_cast %58 : vector<4x16xf32> to vector<4x16x1xf32>
    %60 = tpu.reciprocal %59 {approx = true} : vector<4x16x1xf32> -> vector<4x16x1xf32>
    %61 = vector.broadcast %60 : vector<4x16x1xf32> to vector<4x16x8xf32>
    %62 = arith.mulf %57, %61 : vector<4x16x8xf32>
    %63 = arith.truncf %62 : vector<4x16x8xf32> to vector<4x16x8xbf16>
    "tpu.trace_start"() <{level = 10 : i32, message = "hds,hls->hdl"}> : () -> ()
    %cst_23 = arith.constant dense<0.000000e+00> : vector<4x8x16xf32>
    %64 = tpu.matmul %51, %63, %cst_23 {dimension_numbers = #tpu.dot_dimension_numbers<[2], [2], [1], [1], [0, 0, 0, 1, 1, 1], [0], [0]>} : vector<4x8x8xbf16>, vector<4x16x8xbf16>, vector<4x8x16xf32> -> vector<4x8x16xf32>
    "tpu.trace_stop"() : () -> ()
    %65 = vector.shape_cast %64 : vector<4x8x16xf32> to vector<32x16xf32>
    %66 = arith.truncf %65 : vector<32x16xf32> to vector<32x16xbf16>
    %c0_24 = arith.constant 0 : index
    %c0_25 = arith.constant 0 : index
    %67 = vector.load %arg7[%c0_24, %c0_25] : memref<32x32xbf16, #tpu.memory_space<vmem>>, vector<32x32xbf16>
    %cst_26 = arith.constant dense<0.000000e+00> : vector<32x16xf32>
    %68 = tpu.matmul %67, %66, %cst_26 {dimension_numbers = #tpu.dot_dimension_numbers<[1], [0], [0], [1], [0, 0, 1, 1], [], []>} : vector<32x32xbf16>, vector<32x16xbf16>, vector<32x16xf32> -> vector<32x16xf32>
    %69 = vector.broadcast %10 : vector<32x1xf32> to vector<32x16xf32>
    %70 = arith.addf %68, %69 : vector<32x16xf32>
    %71 = arith.addf %1, %70 : vector<32x16xf32>
    %c0_27 = arith.constant 0 : index
    %c0_28 = arith.constant 0 : index
    %c0_29 = arith.constant 0 : index
    %72 = vector.load %arg9[%c0_27, %c0_28, %c0_29] : memref<1x32x16xf32, #tpu.memory_space<vmem>>, vector<1x32x16xf32>
    %73 = vector.shape_cast %72 : vector<1x32x16xf32> to vector<32x16xf32>
    %74 = vector.shape_cast %71 : vector<32x16xf32> to vector<1x32x16xf32>
    tpu.vector_store %arg9[%c0_27, %c0_28, %c0_29], %74 {strides = array<i32>} : memref<1x32x16xf32, #tpu.memory_space<vmem>>, vector<1x32x16xf32>,
    return
  }
  func.func @transform_0(%arg0: i32, %arg1: i32) -> (i32, i32, i32) {
    %c0_i32 = arith.constant 0 : i32
    %c0_i32_0 = arith.constant 0 : i32
    return %arg0, %c0_i32, %arg1 : i32, i32, i32
  }
  func.func @transform_1(%arg0: i32, %arg1: i32) -> (i32, i32, i32) {
    %c0_i32 = arith.constant 0 : i32
    %c0_i32_0 = arith.constant 0 : i32
    %c0_i32_1 = arith.constant 0 : i32
    return %arg0, %c0_i32, %c0_i32_0 : i32, i32, i32
  }
  func.func @transform_2(%arg0: i32, %arg1: i32) -> (i32, i32) {
    %c0_i32 = arith.constant 0 : i32
    %c0_i32_0 = arith.constant 0 : i32
    %c0_i32_1 = arith.constant 0 : i32
    return %c0_i32, %c0_i32_0 : i32, i32
  }
  func.func @transform_3(%arg0: i32, %arg1: i32) -> (i32, i32) {
    %c0_i32 = arith.constant 0 : i32
    %c0_i32_0 = arith.constant 0 : i32
    %c0_i32_1 = arith.constant 0 : i32
    return %c0_i32, %c0_i32_0 : i32, i32
  }
  func.func @transform_4(%arg0: i32, %arg1: i32) -> (i32, i32) {
    %c0_i32 = arith.constant 0 : i32
    %c0_i32_0 = arith.constant 0 : i32
    %c0_i32_1 = arith.constant 0 : i32
    return %c0_i32, %c0_i32_0 : i32, i32
  }
  func.func @transform_5(%arg0: i32, %arg1: i32) -> (i32, i32) {
    %c0_i32 = arith.constant 0 : i32
    %c0_i32_0 = arith.constant 0 : i32
    %c0_i32_1 = arith.constant 0 : i32
    return %c0_i32, %c0_i32_0 : i32, i32
  }
  func.func @transform_6(%arg0: i32, %arg1: i32) -> (i32, i32) {
    %c0_i32 = arith.constant 0 : i32
    %c0_i32_0 = arith.constant 0 : i32
    %c0_i32_1 = arith.constant 0 : i32
    return %c0_i32, %c0_i32_0 : i32, i32
  }
  func.func @transform_7(%arg0: i32, %arg1: i32) -> (i32, i32, i32) {
    %c0_i32 = arith.constant 0 : i32
    %c0_i32_0 = arith.constant 0 : i32
    return %arg0, %c0_i32, %arg1 : i32, i32, i32
  }
}

module attributes {stable_mosaic.version = 11 : i64} {
  func.func @kernel(%arg0: i32, %arg1: i32, %arg2: memref<1x32x16xf32, #tpu.memory_space<vmem>>, %arg3: memref<1x16x8xbf16, #tpu.memory_space<vmem>>, %arg4: memref<32x32xbf16, #tpu.memory_space<vmem>>, %arg5: memref<32x16xbf16, #tpu.memory_space<vmem>>, %arg6: memref<32x16xbf16, #tpu.memory_space<vmem>>, %arg7: memref<32x32xbf16, #tpu.memory_space<vmem>>, %arg8: memref<32x8xf32, #tpu.memory_space<vmem>>, %arg9: memref<1x32x16xf32, #tpu.memory_space<vmem>>) attributes {dimension_semantics = [#tpu.dimension_semantics<parallel>, #tpu.dimension_semantics<parallel>], iteration_bounds = array<i64: 2, 1>, scalar_prefetch = 0 : i64, scratch_operands = 0 : i64, tpu.core_type = #tpu.core_type<tc>, window_params = [{transform_indices = @transform_0, window_bounds = array<i64: 1, 32, 16>}, {transform_indices = @transform_1, window_bounds = array<i64: 1, 16, 8>}, {pipeline_mode = #tpu.pipeline_mode<synchronous>, transform_indices = @transform_2, window_bounds = array<i64: 32, 32>}, {pipeline_mode = #tpu.pipeline_mode<synchronous>, transform_indices = @transform_3, window_bounds = array<i64: 32, 16>}, {pipeline_mode = #tpu.pipeline_mode<synchronous>, transform_indices = @transform_4, window_bounds = array<i64: 32, 16>}, {pipeline_mode = #tpu.pipeline_mode<synchronous>, transform_indices = @transform_5, window_bounds = array<i64: 32, 32>}, {pipeline_mode = #tpu.pipeline_mode<synchronous>, transform_indices = @transform_6, window_bounds = array<i64: 32, 8>}, {transform_indices = @transform_7, window_bounds = array<i64: 1, 32, 16>}]} {
    %c0 = arith.constant 0 : index
    %c0_0 = arith.constant 0 : index
    %c0_1 = arith.constant 0 : index
    %0 = vector.load %arg2[%c0, %c0_0, %c0_1] : memref<1x32x16xf32, #tpu.memory_space<vmem>>, vector<1x32x16xf32>
    %1 = vector.shape_cast %0 : vector<1x32x16xf32> to vector<32x16xf32>
    %c0_2 = arith.constant 0 : index
    %c0_3 = arith.constant 0 : index
    %c0_4 = arith.constant 0 : index
    %2 = vector.load %arg3[%c0_2, %c0_3, %c0_4] : memref<1x16x8xbf16, #tpu.memory_space<vmem>>, vector<1x16x8xbf16>
    %3 = vector.shape_cast %2 : vector<1x16x8xbf16> to vector<16x8xbf16>
    %c0_5 = arith.constant 0 : index
    %c0_6 = arith.constant 0 : index
    %4 = vector.load %arg8[%c0_5, %c0_6] : memref<32x8xf32, #tpu.memory_space<vmem>>, vector<32x8xf32>
    %5 = vector.extract_strided_slice %4 {offsets = [0, 0], sizes = [32, 1], strides = [1, 1]} : vector<32x8xf32> to vector<32x1xf32>
    %6 = vector.extract_strided_slice %4 {offsets = [0, 1], sizes = [32, 1], strides = [1, 1]} : vector<32x8xf32> to vector<32x1xf32>
    %7 = vector.extract_strided_slice %4 {offsets = [0, 2], sizes = [32, 1], strides = [1, 1]} : vector<32x8xf32> to vector<32x1xf32>
    %8 = vector.extract_strided_slice %4 {offsets = [0, 3], sizes = [32, 1], strides = [1, 1]} : vector<32x8xf32> to vector<32x1xf32>
    %9 = vector.extract_strided_slice %4 {offsets = [0, 4], sizes = [32, 1], strides = [1, 1]} : vector<32x8xf32> to vector<32x1xf32>
    %10 = vector.extract_strided_slice %4 {offsets = [0, 5], sizes = [32, 1], strides = [1, 1]} : vector<32x8xf32> to vector<32x1xf32>
    %cst = arith.constant dense<0.000000e+00> : vector<16xf32>
    %11 = vector.multi_reduction <add>, %1, %cst [0] : vector<32x16xf32> to vector<16xf32>
    %12 = vector.shape_cast %11 : vector<16xf32> to vector<1x16xf32>
    %cst_7 = arith.constant 3.200000e+01 : f32
    %13 = vector.broadcast %cst_7 : f32 to vector<1x16xf32>
    %14 = arith.divf %12, %13 : vector<1x16xf32>
    %15 = vector.broadcast %14 : vector<1x16xf32> to vector<32x16xf32>
    %16 = arith.subf %1, %15 : vector<32x16xf32>
    %17 = arith.mulf %16, %16 : vector<32x16xf32>
    %cst_8 = arith.constant dense<0.000000e+00> : vector<16xf32>
    %18 = vector.multi_reduction <add>, %17, %cst_8 [0] : vector<32x16xf32> to vector<16xf32>
    %19 = vector.shape_cast %18 : vector<16xf32> to vector<1x16xf32>
    %cst_9 = arith.constant 3.200000e+01 : f32
    %20 = vector.broadcast %cst_9 : f32 to vector<1x16xf32>
    %21 = arith.divf %19, %20 : vector<1x16xf32>
    %22 = vector.broadcast %14 : vector<1x16xf32> to vector<32x16xf32>
    %23 = arith.subf %1, %22 : vector<32x16xf32>
    %cst_10 = arith.constant 9.99999974E-6 : f32
    %24 = vector.broadcast %cst_10 : f32 to vector<1x16xf32>
    %25 = arith.addf %21, %24 : vector<1x16xf32>
    %26 = math.rsqrt %25 : vector<1x16xf32>
    %27 = vector.broadcast %26 : vector<1x16xf32> to vector<32x16xf32>
    %28 = arith.mulf %23, %27 : vector<32x16xf32>
    %29 = vector.broadcast %5 : vector<32x1xf32> to vector<32x16xf32>
    %30 = arith.mulf %28, %29 : vector<32x16xf32>
    %31 = vector.broadcast %6 : vector<32x1xf32> to vector<32x16xf32>
    %32 = arith.addf %30, %31 : vector<32x16xf32>
    %33 = arith.truncf %32 : vector<32x16xf32> to vector<32x16xbf16>
    %c0_11 = arith.constant 0 : index
    %c0_12 = arith.constant 0 : index
    %34 = vector.load %arg4[%c0_11, %c0_12] : memref<32x32xbf16, #tpu.memory_space<vmem>>, vector<32x32xbf16>
    %cst_13 = arith.constant dense<0.000000e+00> : vector<32x16xf32>
    %35 = tpu.matmul %34, %33, %cst_13 {dimension_numbers = #tpu.dot_dimension_numbers<[1], [0], [0], [1], [0, 0, 1, 1], [], []>} : vector<32x32xbf16>, vector<32x16xbf16>, vector<32x16xf32> -> vector<32x16xf32>
    %36 = vector.broadcast %7 : vector<32x1xf32> to vector<32x16xf32>
    %37 = arith.addf %35, %36 : vector<32x16xf32>
    %c0_14 = arith.constant 0 : index
    %c0_15 = arith.constant 0 : index
    %38 = vector.load %arg5[%c0_14, %c0_15] : memref<32x16xbf16, #tpu.memory_space<vmem>>, vector<32x16xbf16>
    %cst_16 = arith.constant dense<0.000000e+00> : vector<32x8xf32>
    %39 = tpu.matmul %38, %3, %cst_16 {dimension_numbers = #tpu.dot_dimension_numbers<[1], [0], [0], [1], [0, 0, 1, 1], [], []>} : vector<32x16xbf16>, vector<16x8xbf16>, vector<32x8xf32> -> vector<32x8xf32>
    %40 = vector.broadcast %8 : vector<32x1xf32> to vector<32x8xf32>
    %41 = arith.addf %39, %40 : vector<32x8xf32>
    %c0_17 = arith.constant 0 : index
    %c0_18 = arith.constant 0 : index
    %42 = vector.load %arg6[%c0_17, %c0_18] : memref<32x16xbf16, #tpu.memory_space<vmem>>, vector<32x16xbf16>
    %cst_19 = arith.constant dense<0.000000e+00> : vector<32x8xf32>
    %43 = tpu.matmul %42, %3, %cst_19 {dimension_numbers = #tpu.dot_dimension_numbers<[1], [0], [0], [1], [0, 0, 1, 1], [], []>} : vector<32x16xbf16>, vector<16x8xbf16>, vector<32x8xf32> -> vector<32x8xf32>
    %44 = vector.broadcast %9 : vector<32x1xf32> to vector<32x8xf32>
    %45 = arith.addf %43, %44 : vector<32x8xf32>
    %46 = vector.shape_cast %37 : vector<32x16xf32> to vector<4x8x16xf32>
    %47 = arith.truncf %46 : vector<4x8x16xf32> to vector<4x8x16xbf16>
    %48 = vector.shape_cast %41 : vector<32x8xf32> to vector<4x8x8xf32>
    %49 = arith.truncf %48 : vector<4x8x8xf32> to vector<4x8x8xbf16>
    %50 = vector.shape_cast %45 : vector<32x8xf32> to vector<4x8x8xf32>
    %51 = arith.truncf %50 : vector<4x8x8xf32> to vector<4x8x8xbf16>
    "tpu.trace_start"() <{level = 10 : i32, message = "hdl,hds->hls"}> : () -> ()
    %cst_20 = arith.constant dense<0.000000e+00> : vector<4x16x8xf32>
    %52 = tpu.matmul %47, %49, %cst_20 {dimension_numbers = #tpu.dot_dimension_numbers<[1], [1], [2], [2], [0, 0, 0, 2, 1, 2], [0], [0]>} : vector<4x8x16xbf16>, vector<4x8x8xbf16>, vector<4x16x8xf32> -> vector<4x16x8xf32>
    "tpu.trace_stop"() : () -> ()
    %cst_21 = arith.constant dense<0xFF800000> : vector<4x16xf32>
    %53 = vector.multi_reduction <maximumf>, %52, %cst_21 [2] : vector<4x16x8xf32> to vector<4x16xf32>
    %54 = vector.shape_cast %53 : vector<4x16xf32> to vector<4x16x1xf32>
    %55 = vector.broadcast %54 : vector<4x16x1xf32> to vector<4x16x8xf32>
    %56 = arith.subf %52, %55 : vector<4x16x8xf32>
    %57 = math.exp %56 : vector<4x16x8xf32>
    %cst_22 = arith.constant dense<0.000000e+00> : vector<4x16xf32>
    %58 = vector.multi_reduction <add>, %57, %cst_22 [2] : vector<4x16x8xf32> to vector<4x16xf32>
    %59 = vector.shape_cast %58 : vector<4x16xf32> to vector<4x16x1xf32>
    %60 = tpu.reciprocal %59 {approx = true} : vector<4x16x1xf32> -> vector<4x16x1xf32>
    %61 = vector.broadcast %60 : vector<4x16x1xf32> to vector<4x16x8xf32>
    %62 = arith.mulf %57, %61 : vector<4x16x8xf32>
    %63 = arith.truncf %62 : vector<4x16x8xf32> to vector<4x16x8xbf16>
    "tpu.trace_start"() <{level = 10 : i32, message = "hds,hls->hdl"}> : () -> ()
    %cst_23 = arith.constant dense<0.000000e+00> : vector<4x8x16xf32>
    %64 = tpu.matmul %51, %63, %cst_23 {dimension_numbers = #tpu.dot_dimension_numbers<[2], [2], [1], [1], [0, 0, 0, 1, 1, 1], [0], [0]>} : vector<4x8x8xbf16>, vector<4x16x8xbf16>, vector<4x8x16xf32> -> vector<4x8x16xf32>
    "tpu.trace_stop"() : () -> ()
    %65 = vector.shape_cast %64 : vector<4x8x16xf32> to vector<32x16xf32>
    %66 = arith.truncf %65 : vector<32x16xf32> to vector<32x16xbf16>
    %c0_24 = arith.constant 0 : index
    %c0_25 = arith.constant 0 : index
    %67 = vector.load %arg7[%c0_24, %c0_25] : memref<32x32xbf16, #tpu.memory_space<vmem>>, vector<32x32xbf16>
    %cst_26 = arith.constant dense<0.000000e+00> : vector<32x16xf32>
    %68 = tpu.matmul %67, %66, %cst_26 {dimension_numbers = #tpu.dot_dimension_numbers<[1], [0], [0], [1], [0, 0, 1, 1], [], []>} : vector<32x32xbf16>, vector<32x16xbf16>, vector<32x16xf32> -> vector<32x16xf32>
    %69 = vector.broadcast %10 : vector<32x1xf32> to vector<32x16xf32>
    %70 = arith.addf %68, %69 : vector<32x16xf32>
    %71 = arith.addf %1, %70 : vector<32x16xf32>
    %c0_27 = arith.constant 0 : index
    %c0_28 = arith.constant 0 : index
    %c0_29 = arith.constant 0 : index
    %72 = vector.load %arg9[%c0_27, %c0_28, %c0_29] : memref<1x32x16xf32, #tpu.memory_space<vmem>>, vector<1x32x16xf32>
    %73 = vector.shape_cast %72 : vector<1x32x16xf32> to vector<32x16xf32>
    %74 = vector.shape_cast %71 : vector<32x16xf32> to vector<1x32x16xf32>
    tpu.vector_store %arg9[%c0_27, %c0_28, %c0_29], %74 {strides = array<i32>} : memref<1x32x16xf32, #tpu.memory_space<vmem>>, vector<1x32x16xf32>,
    return
  }
  func.func @transform_0(%arg0: i32, %arg1: i32) -> (i32, i32, i32) {
    %c0_i32 = arith.constant 0 : i32
    %c0_i32_0 = arith.constant 0 : i32
    return %arg0, %c0_i32, %arg1 : i32, i32, i32
  }
  func.func @transform_1(%arg0: i32, %arg1: i32) -> (i32, i32, i32) {
    %c0_i32 = arith.constant 0 : i32
    %c0_i32_0 = arith.constant 0 : i32
    %c0_i32_1 = arith.constant 0 : i32
    return %arg0, %c0_i32, %c0_i32_0 : i32, i32, i32
  }
  func.func @transform_2(%arg0: i32, %arg1: i32) -> (i32, i32) {
    %c0_i32 = arith.constant 0 : i32
    %c0_i32_0 = arith.constant 0 : i32
    %c0_i32_1 = arith.constant 0 : i32
    return %c0_i32, %c0_i32_0 : i32, i32
  }
  func.func @transform_3(%arg0: i32, %arg1: i32) -> (i32, i32) {
    %c0_i32 = arith.constant 0 : i32
    %c0_i32_0 = arith.constant 0 : i32
    %c0_i32_1 = arith.constant 0 : i32
    return %c0_i32, %c0_i32_0 : i32, i32
  }
  func.func @transform_4(%arg0: i32, %arg1: i32) -> (i32, i32) {
    %c0_i32 = arith.constant 0 : i32
    %c0_i32_0 = arith.constant 0 : i32
    %c0_i32_1 = arith.constant 0 : i32
    return %c0_i32, %c0_i32_0 : i32, i32
  }
  func.func @transform_5(%arg0: i32, %arg1: i32) -> (i32, i32) {
    %c0_i32 = arith.constant 0 : i32
    %c0_i32_0 = arith.constant 0 : i32
    %c0_i32_1 = arith.constant 0 : i32
    return %c0_i32, %c0_i32_0 : i32, i32
  }
  func.func @transform_6(%arg0: i32, %arg1: i32) -> (i32, i32) {
    %c0_i32 = arith.constant 0 : i32
    %c0_i32_0 = arith.constant 0 : i32
    %c0_i32_1 = arith.constant 0 : i32
    return %c0_i32, %c0_i32_0 : i32, i32
  }
  func.func @transform_7(%arg0: i32, %arg1: i32) -> (i32, i32, i32) {
    %c0_i32 = arith.constant 0 : i32
    %c0_i32_0 = arith.constant 0 : i32
    return %arg0, %c0_i32, %arg1 : i32, i32, i32
  }
}

module attributes {stable_mosaic.version = 11 : i64} {
  func.func @kernel(%arg0: i32, %arg1: i32, %arg2: memref<1x32x16xf32, #tpu.memory_space<vmem>>, %arg3: memref<1x16x8xbf16, #tpu.memory_space<vmem>>, %arg4: memref<32x32xbf16, #tpu.memory_space<vmem>>, %arg5: memref<32x16xbf16, #tpu.memory_space<vmem>>, %arg6: memref<32x16xbf16, #tpu.memory_space<vmem>>, %arg7: memref<32x32xbf16, #tpu.memory_space<vmem>>, %arg8: memref<32x8xf32, #tpu.memory_space<vmem>>, %arg9: memref<1x32x16xf32, #tpu.memory_space<vmem>>) attributes {dimension_semantics = [#tpu.dimension_semantics<parallel>, #tpu.dimension_semantics<parallel>], iteration_bounds = array<i64: 2, 1>, scalar_prefetch = 0 : i64, scratch_operands = 0 : i64, tpu.core_type = #tpu.core_type<tc>, window_params = [{transform_indices = @transform_0, window_bounds = array<i64: 1, 32, 16>}, {transform_indices = @transform_1, window_bounds = array<i64: 1, 16, 8>}, {pipeline_mode = #tpu.pipeline_mode<synchronous>, transform_indices = @transform_2, window_bounds = array<i64: 32, 32>}, {pipeline_mode = #tpu.pipeline_mode<synchronous>, transform_indices = @transform_3, window_bounds = array<i64: 32, 16>}, {pipeline_mode = #tpu.pipeline_mode<synchronous>, transform_indices = @transform_4, window_bounds = array<i64: 32, 16>}, {pipeline_mode = #tpu.pipeline_mode<synchronous>, transform_indices = @transform_5, window_bounds = array<i64: 32, 32>}, {pipeline_mode = #tpu.pipeline_mode<synchronous>, transform_indices = @transform_6, window_bounds = array<i64: 32, 8>}, {transform_indices = @transform_7, window_bounds = array<i64: 1, 32, 16>}]} {
    %c0 = arith.constant 0 : index
    %c0_0 = arith.constant 0 : index
    %c0_1 = arith.constant 0 : index
    %0 = vector.load %arg2[%c0, %c0_0, %c0_1] : memref<1x32x16xf32, #tpu.memory_space<vmem>>, vector<1x32x16xf32>
    %1 = vector.shape_cast %0 : vector<1x32x16xf32> to vector<32x16xf32>
    %c0_2 = arith.constant 0 : index
    %c0_3 = arith.constant 0 : index
    %c0_4 = arith.constant 0 : index
    %2 = vector.load %arg3[%c0_2, %c0_3, %c0_4] : memref<1x16x8xbf16, #tpu.memory_space<vmem>>, vector<1x16x8xbf16>
    %3 = vector.shape_cast %2 : vector<1x16x8xbf16> to vector<16x8xbf16>
    %c0_5 = arith.constant 0 : index
    %c0_6 = arith.constant 0 : index
    %4 = vector.load %arg8[%c0_5, %c0_6] : memref<32x8xf32, #tpu.memory_space<vmem>>, vector<32x8xf32>
    %5 = vector.extract_strided_slice %4 {offsets = [0, 0], sizes = [32, 1], strides = [1, 1]} : vector<32x8xf32> to vector<32x1xf32>
    %6 = vector.extract_strided_slice %4 {offsets = [0, 1], sizes = [32, 1], strides = [1, 1]} : vector<32x8xf32> to vector<32x1xf32>
    %7 = vector.extract_strided_slice %4 {offsets = [0, 2], sizes = [32, 1], strides = [1, 1]} : vector<32x8xf32> to vector<32x1xf32>
    %8 = vector.extract_strided_slice %4 {offsets = [0, 3], sizes = [32, 1], strides = [1, 1]} : vector<32x8xf32> to vector<32x1xf32>
    %9 = vector.extract_strided_slice %4 {offsets = [0, 4], sizes = [32, 1], strides = [1, 1]} : vector<32x8xf32> to vector<32x1xf32>
    %10 = vector.extract_strided_slice %4 {offsets = [0, 5], sizes = [32, 1], strides = [1, 1]} : vector<32x8xf32> to vector<32x1xf32>
    %cst = arith.constant dense<0.000000e+00> : vector<16xf32>
    %11 = vector.multi_reduction <add>, %1, %cst [0] : vector<32x16xf32> to vector<16xf32>
    %12 = vector.shape_cast %11 : vector<16xf32> to vector<1x16xf32>
    %cst_7 = arith.constant 3.200000e+01 : f32
    %13 = vector.broadcast %cst_7 : f32 to vector<1x16xf32>
    %14 = arith.divf %12, %13 : vector<1x16xf32>
    %15 = vector.broadcast %14 : vector<1x16xf32> to vector<32x16xf32>
    %16 = arith.subf %1, %15 : vector<32x16xf32>
    %17 = arith.mulf %16, %16 : vector<32x16xf32>
    %cst_8 = arith.constant dense<0.000000e+00> : vector<16xf32>
    %18 = vector.multi_reduction <add>, %17, %cst_8 [0] : vector<32x16xf32> to vector<16xf32>
    %19 = vector.shape_cast %18 : vector<16xf32> to vector<1x16xf32>
    %cst_9 = arith.constant 3.200000e+01 : f32
    %20 = vector.broadcast %cst_9 : f32 to vector<1x16xf32>
    %21 = arith.divf %19, %20 : vector<1x16xf32>
    %22 = vector.broadcast %14 : vector<1x16xf32> to vector<32x16xf32>
    %23 = arith.subf %1, %22 : vector<32x16xf32>
    %cst_10 = arith.constant 9.99999974E-6 : f32
    %24 = vector.broadcast %cst_10 : f32 to vector<1x16xf32>
    %25 = arith.addf %21, %24 : vector<1x16xf32>
    %26 = math.rsqrt %25 : vector<1x16xf32>
    %27 = vector.broadcast %26 : vector<1x16xf32> to vector<32x16xf32>
    %28 = arith.mulf %23, %27 : vector<32x16xf32>
    %29 = vector.broadcast %5 : vector<32x1xf32> to vector<32x16xf32>
    %30 = arith.mulf %28, %29 : vector<32x16xf32>
    %31 = vector.broadcast %6 : vector<32x1xf32> to vector<32x16xf32>
    %32 = arith.addf %30, %31 : vector<32x16xf32>
    %33 = arith.truncf %32 : vector<32x16xf32> to vector<32x16xbf16>
    %c0_11 = arith.constant 0 : index
    %c0_12 = arith.constant 0 : index
    %34 = vector.load %arg4[%c0_11, %c0_12] : memref<32x32xbf16, #tpu.memory_space<vmem>>, vector<32x32xbf16>
    %cst_13 = arith.constant dense<0.000000e+00> : vector<32x16xf32>
    %35 = tpu.matmul %34, %33, %cst_13 {dimension_numbers = #tpu.dot_dimension_numbers<[1], [0], [0], [1], [0, 0, 1, 1], [], []>} : vector<32x32xbf16>, vector<32x16xbf16>, vector<32x16xf32> -> vector<32x16xf32>
    %36 = vector.broadcast %7 : vector<32x1xf32> to vector<32x16xf32>
    %37 = arith.addf %35, %36 : vector<32x16xf32>
    %c0_14 = arith.constant 0 : index
    %c0_15 = arith.constant 0 : index
    %38 = vector.load %arg5[%c0_14, %c0_15] : memref<32x16xbf16, #tpu.memory_space<vmem>>, vector<32x16xbf16>
    %cst_16 = arith.constant dense<0.000000e+00> : vector<32x8xf32>
    %39 = tpu.matmul %38, %3, %cst_16 {dimension_numbers = #tpu.dot_dimension_numbers<[1], [0], [0], [1], [0, 0, 1, 1], [], []>} : vector<32x16xbf16>, vector<16x8xbf16>, vector<32x8xf32> -> vector<32x8xf32>
    %40 = vector.broadcast %8 : vector<32x1xf32> to vector<32x8xf32>
    %41 = arith.addf %39, %40 : vector<32x8xf32>
    %c0_17 = arith.constant 0 : index
    %c0_18 = arith.constant 0 : index
    %42 = vector.load %arg6[%c0_17, %c0_18] : memref<32x16xbf16, #tpu.memory_space<vmem>>, vector<32x16xbf16>
    %cst_19 = arith.constant dense<0.000000e+00> : vector<32x8xf32>
    %43 = tpu.matmul %42, %3, %cst_19 {dimension_numbers = #tpu.dot_dimension_numbers<[1], [0], [0], [1], [0, 0, 1, 1], [], []>} : vector<32x16xbf16>, vector<16x8xbf16>, vector<32x8xf32> -> vector<32x8xf32>
    %44 = vector.broadcast %9 : vector<32x1xf32> to vector<32x8xf32>
    %45 = arith.addf %43, %44 : vector<32x8xf32>
    %46 = vector.shape_cast %37 : vector<32x16xf32> to vector<4x8x16xf32>
    %47 = arith.truncf %46 : vector<4x8x16xf32> to vector<4x8x16xbf16>
    %48 = vector.shape_cast %41 : vector<32x8xf32> to vector<4x8x8xf32>
    %49 = arith.truncf %48 : vector<4x8x8xf32> to vector<4x8x8xbf16>
    %50 = vector.shape_cast %45 : vector<32x8xf32> to vector<4x8x8xf32>
    %51 = arith.truncf %50 : vector<4x8x8xf32> to vector<4x8x8xbf16>
    %52 = tpu.transpose %47, [0, 2, 1] : vector<4x8x16xbf16> -> vector<4x16x8xbf16>
    "tpu.trace_start"() <{level = 10 : i32, message = "hld,hds->hls"}> : () -> ()
    %cst_20 = arith.constant dense<0.000000e+00> : vector<4x16x8xf32>
    %53 = tpu.matmul %52, %49, %cst_20 {dimension_numbers = #tpu.dot_dimension_numbers<[2], [1], [1], [2], [0, 0, 0, 1, 1, 2], [0], [0]>} : vector<4x16x8xbf16>, vector<4x8x8xbf16>, vector<4x16x8xf32> -> vector<4x16x8xf32>
    "tpu.trace_stop"() : () -> ()
    %cst_21 = arith.constant dense<0xFF800000> : vector<4x16xf32>
    %54 = vector.multi_reduction <maximumf>, %53, %cst_21 [2] : vector<4x16x8xf32> to vector<4x16xf32>
    %55 = vector.shape_cast %54 : vector<4x16xf32> to vector<4x16x1xf32>
    %56 = vector.broadcast %55 : vector<4x16x1xf32> to vector<4x16x8xf32>
    %57 = arith.subf %53, %56 : vector<4x16x8xf32>
    %58 = math.exp %57 : vector<4x16x8xf32>
    %cst_22 = arith.constant dense<0.000000e+00> : vector<4x16xf32>
    %59 = vector.multi_reduction <add>, %58, %cst_22 [2] : vector<4x16x8xf32> to vector<4x16xf32>
    %60 = vector.shape_cast %59 : vector<4x16xf32> to vector<4x16x1xf32>
    %61 = tpu.reciprocal %60 {approx = true} : vector<4x16x1xf32> -> vector<4x16x1xf32>
    %62 = vector.broadcast %61 : vector<4x16x1xf32> to vector<4x16x8xf32>
    %63 = arith.mulf %58, %62 : vector<4x16x8xf32>
    %64 = arith.truncf %63 : vector<4x16x8xf32> to vector<4x16x8xbf16>
    "tpu.trace_start"() <{level = 10 : i32, message = "hds,hls->hdl"}> : () -> ()
    %cst_23 = arith.constant dense<0.000000e+00> : vector<4x8x16xf32>
    %65 = tpu.matmul %51, %64, %cst_23 {dimension_numbers = #tpu.dot_dimension_numbers<[2], [2], [1], [1], [0, 0, 0, 1, 1, 1], [0], [0]>} : vector<4x8x8xbf16>, vector<4x16x8xbf16>, vector<4x8x16xf32> -> vector<4x8x16xf32>
    "tpu.trace_stop"() : () -> ()
    %66 = vector.shape_cast %65 : vector<4x8x16xf32> to vector<32x16xf32>
    %67 = arith.truncf %66 : vector<32x16xf32> to vector<32x16xbf16>
    %c0_24 = arith.constant 0 : index
    %c0_25 = arith.constant 0 : index
    %68 = vector.load %arg7[%c0_24, %c0_25] : memref<32x32xbf16, #tpu.memory_space<vmem>>, vector<32x32xbf16>
    %cst_26 = arith.constant dense<0.000000e+00> : vector<32x16xf32>
    %69 = tpu.matmul %68, %67, %cst_26 {dimension_numbers = #tpu.dot_dimension_numbers<[1], [0], [0], [1], [0, 0, 1, 1], [], []>} : vector<32x32xbf16>, vector<32x16xbf16>, vector<32x16xf32> -> vector<32x16xf32>
    %70 = vector.broadcast %10 : vector<32x1xf32> to vector<32x16xf32>
    %71 = arith.addf %69, %70 : vector<32x16xf32>
    %72 = arith.addf %1, %71 : vector<32x16xf32>
    %c0_27 = arith.constant 0 : index
    %c0_28 = arith.constant 0 : index
    %c0_29 = arith.constant 0 : index
    %73 = vector.load %arg9[%c0_27, %c0_28, %c0_29] : memref<1x32x16xf32, #tpu.memory_space<vmem>>, vector<1x32x16xf32>
    %74 = vector.shape_cast %73 : vector<1x32x16xf32> to vector<32x16xf32>
    %75 = vector.shape_cast %72 : vector<32x16xf32> to vector<1x32x16xf32>
    tpu.vector_store %arg9[%c0_27, %c0_28, %c0_29], %75 {strides = array<i32>} : memref<1x32x16xf32, #tpu.memory_space<vmem>>, vector<1x32x16xf32>,
    return
  }
  func.func @transform_0(%arg0: i32, %arg1: i32) -> (i32, i32, i32) {
    %c0_i32 = arith.constant 0 : i32
    %c0_i32_0 = arith.constant 0 : i32
    return %arg0, %c0_i32, %arg1 : i32, i32, i32
  }
  func.func @transform_1(%arg0: i32, %arg1: i32) -> (i32, i32, i32) {
    %c0_i32 = arith.constant 0 : i32
    %c0_i32_0 = arith.constant 0 : i32
    %c0_i32_1 = arith.constant 0 : i32
    return %arg0, %c0_i32, %c0_i32_0 : i32, i32, i32
  }
  func.func @transform_2(%arg0: i32, %arg1: i32) -> (i32, i32) {
    %c0_i32 = arith.constant 0 : i32
    %c0_i32_0 = arith.constant 0 : i32
    %c0_i32_1 = arith.constant 0 : i32
    return %c0_i32, %c0_i32_0 : i32, i32
  }
  func.func @transform_3(%arg0: i32, %arg1: i32) -> (i32, i32) {
    %c0_i32 = arith.constant 0 : i32
    %c0_i32_0 = arith.constant 0 : i32
    %c0_i32_1 = arith.constant 0 : i32
    return %c0_i32, %c0_i32_0 : i32, i32
  }
  func.func @transform_4(%arg0: i32, %arg1: i32) -> (i32, i32) {
    %c0_i32 = arith.constant 0 : i32
    %c0_i32_0 = arith.constant 0 : i32
    %c0_i32_1 = arith.constant 0 : i32
    return %c0_i32, %c0_i32_0 : i32, i32
  }
  func.func @transform_5(%arg0: i32, %arg1: i32) -> (i32, i32) {
    %c0_i32 = arith.constant 0 : i32
    %c0_i32_0 = arith.constant 0 : i32
    %c0_i32_1 = arith.constant 0 : i32
    return %c0_i32, %c0_i32_0 : i32, i32
  }
  func.func @transform_6(%arg0: i32, %arg1: i32) -> (i32, i32) {
    %c0_i32 = arith.constant 0 : i32
    %c0_i32_0 = arith.constant 0 : i32
    %c0_i32_1 = arith.constant 0 : i32
    return %c0_i32, %c0_i32_0 : i32, i32
  }
  func.func @transform_7(%arg0: i32, %arg1: i32) -> (i32, i32, i32) {
    %c0_i32 = arith.constant 0 : i32
    %c0_i32_0 = arith.constant 0 : i32
    return %arg0, %c0_i32, %arg1 : i32, i32, i32
  }
}

module attributes {stable_mosaic.version = 11 : i64} {
  func.func @kernel(%arg0: i32, %arg1: i32, %arg2: memref<1x32x16xf32, #tpu.memory_space<vmem>>, %arg3: memref<1x16x8xbf16, #tpu.memory_space<vmem>>, %arg4: memref<32x32xbf16, #tpu.memory_space<vmem>>, %arg5: memref<32x16xbf16, #tpu.memory_space<vmem>>, %arg6: memref<32x16xbf16, #tpu.memory_space<vmem>>, %arg7: memref<32x32xbf16, #tpu.memory_space<vmem>>, %arg8: memref<32x8xf32, #tpu.memory_space<vmem>>, %arg9: memref<1x32x16xf32, #tpu.memory_space<vmem>>) attributes {dimension_semantics = [#tpu.dimension_semantics<parallel>, #tpu.dimension_semantics<parallel>], iteration_bounds = array<i64: 2, 1>, scalar_prefetch = 0 : i64, scratch_operands = 0 : i64, tpu.core_type = #tpu.core_type<tc>, window_params = [{transform_indices = @transform_0, window_bounds = array<i64: 1, 32, 16>}, {transform_indices = @transform_1, window_bounds = array<i64: 1, 16, 8>}, {pipeline_mode = #tpu.pipeline_mode<synchronous>, transform_indices = @transform_2, window_bounds = array<i64: 32, 32>}, {pipeline_mode = #tpu.pipeline_mode<synchronous>, transform_indices = @transform_3, window_bounds = array<i64: 32, 16>}, {pipeline_mode = #tpu.pipeline_mode<synchronous>, transform_indices = @transform_4, window_bounds = array<i64: 32, 16>}, {pipeline_mode = #tpu.pipeline_mode<synchronous>, transform_indices = @transform_5, window_bounds = array<i64: 32, 32>}, {pipeline_mode = #tpu.pipeline_mode<synchronous>, transform_indices = @transform_6, window_bounds = array<i64: 32, 8>}, {transform_indices = @transform_7, window_bounds = array<i64: 1, 32, 16>}]} {
    %c0 = arith.constant 0 : index
    %c0_0 = arith.constant 0 : index
    %c0_1 = arith.constant 0 : index
    %0 = vector.load %arg2[%c0, %c0_0, %c0_1] : memref<1x32x16xf32, #tpu.memory_space<vmem>>, vector<1x32x16xf32>
    %1 = vector.shape_cast %0 : vector<1x32x16xf32> to vector<32x16xf32>
    %c0_2 = arith.constant 0 : index
    %c0_3 = arith.constant 0 : index
    %c0_4 = arith.constant 0 : index
    %2 = vector.load %arg3[%c0_2, %c0_3, %c0_4] : memref<1x16x8xbf16, #tpu.memory_space<vmem>>, vector<1x16x8xbf16>
    %3 = vector.shape_cast %2 : vector<1x16x8xbf16> to vector<16x8xbf16>
    %c0_5 = arith.constant 0 : index
    %c0_6 = arith.constant 0 : index
    %4 = vector.load %arg8[%c0_5, %c0_6] : memref<32x8xf32, #tpu.memory_space<vmem>>, vector<32x8xf32>
    %5 = vector.extract_strided_slice %4 {offsets = [0, 0], sizes = [32, 1], strides = [1, 1]} : vector<32x8xf32> to vector<32x1xf32>
    %6 = vector.extract_strided_slice %4 {offsets = [0, 1], sizes = [32, 1], strides = [1, 1]} : vector<32x8xf32> to vector<32x1xf32>
    %7 = vector.extract_strided_slice %4 {offsets = [0, 2], sizes = [32, 1], strides = [1, 1]} : vector<32x8xf32> to vector<32x1xf32>
    %8 = vector.extract_strided_slice %4 {offsets = [0, 3], sizes = [32, 1], strides = [1, 1]} : vector<32x8xf32> to vector<32x1xf32>
    %9 = vector.extract_strided_slice %4 {offsets = [0, 4], sizes = [32, 1], strides = [1, 1]} : vector<32x8xf32> to vector<32x1xf32>
    %10 = vector.extract_strided_slice %4 {offsets = [0, 5], sizes = [32, 1], strides = [1, 1]} : vector<32x8xf32> to vector<32x1xf32>
    %cst = arith.constant dense<0.000000e+00> : vector<16xf32>
    %11 = vector.multi_reduction <add>, %1, %cst [0] : vector<32x16xf32> to vector<16xf32>
    %12 = vector.shape_cast %11 : vector<16xf32> to vector<1x16xf32>
    %cst_7 = arith.constant 3.200000e+01 : f32
    %13 = vector.broadcast %cst_7 : f32 to vector<1x16xf32>
    %14 = arith.divf %12, %13 : vector<1x16xf32>
    %15 = vector.broadcast %14 : vector<1x16xf32> to vector<32x16xf32>
    %16 = arith.subf %1, %15 : vector<32x16xf32>
    %17 = arith.mulf %16, %16 : vector<32x16xf32>
    %cst_8 = arith.constant dense<0.000000e+00> : vector<16xf32>
    %18 = vector.multi_reduction <add>, %17, %cst_8 [0] : vector<32x16xf32> to vector<16xf32>
    %19 = vector.shape_cast %18 : vector<16xf32> to vector<1x16xf32>
    %cst_9 = arith.constant 3.200000e+01 : f32
    %20 = vector.broadcast %cst_9 : f32 to vector<1x16xf32>
    %21 = arith.divf %19, %20 : vector<1x16xf32>
    %22 = vector.broadcast %14 : vector<1x16xf32> to vector<32x16xf32>
    %23 = arith.subf %1, %22 : vector<32x16xf32>
    %cst_10 = arith.constant 9.99999974E-6 : f32
    %24 = vector.broadcast %cst_10 : f32 to vector<1x16xf32>
    %25 = arith.addf %21, %24 : vector<1x16xf32>
    %26 = math.rsqrt %25 : vector<1x16xf32>
    %27 = vector.broadcast %26 : vector<1x16xf32> to vector<32x16xf32>
    %28 = arith.mulf %23, %27 : vector<32x16xf32>
    %29 = vector.broadcast %5 : vector<32x1xf32> to vector<32x16xf32>
    %30 = arith.mulf %28, %29 : vector<32x16xf32>
    %31 = vector.broadcast %6 : vector<32x1xf32> to vector<32x16xf32>
    %32 = arith.addf %30, %31 : vector<32x16xf32>
    %33 = arith.truncf %32 : vector<32x16xf32> to vector<32x16xbf16>
    %c0_11 = arith.constant 0 : index
    %c0_12 = arith.constant 0 : index
    %34 = vector.load %arg4[%c0_11, %c0_12] : memref<32x32xbf16, #tpu.memory_space<vmem>>, vector<32x32xbf16>
    %cst_13 = arith.constant dense<0.000000e+00> : vector<32x16xf32>
    %35 = tpu.matmul %34, %33, %cst_13 {dimension_numbers = #tpu.dot_dimension_numbers<[1], [0], [0], [1], [0, 0, 1, 1], [], []>} : vector<32x32xbf16>, vector<32x16xbf16>, vector<32x16xf32> -> vector<32x16xf32>
    %36 = vector.broadcast %7 : vector<32x1xf32> to vector<32x16xf32>
    %37 = arith.addf %35, %36 : vector<32x16xf32>
    %c0_14 = arith.constant 0 : index
    %c0_15 = arith.constant 0 : index
    %38 = vector.load %arg5[%c0_14, %c0_15] : memref<32x16xbf16, #tpu.memory_space<vmem>>, vector<32x16xbf16>
    %cst_16 = arith.constant dense<0.000000e+00> : vector<32x8xf32>
    %39 = tpu.matmul %38, %3, %cst_16 {dimension_numbers = #tpu.dot_dimension_numbers<[1], [0], [0], [1], [0, 0, 1, 1], [], []>} : vector<32x16xbf16>, vector<16x8xbf16>, vector<32x8xf32> -> vector<32x8xf32>
    %40 = vector.broadcast %8 : vector<32x1xf32> to vector<32x8xf32>
    %41 = arith.addf %39, %40 : vector<32x8xf32>
    %c0_17 = arith.constant 0 : index
    %c0_18 = arith.constant 0 : index
    %42 = vector.load %arg6[%c0_17, %c0_18] : memref<32x16xbf16, #tpu.memory_space<vmem>>, vector<32x16xbf16>
    %cst_19 = arith.constant dense<0.000000e+00> : vector<32x8xf32>
    %43 = tpu.matmul %42, %3, %cst_19 {dimension_numbers = #tpu.dot_dimension_numbers<[1], [0], [0], [1], [0, 0, 1, 1], [], []>} : vector<32x16xbf16>, vector<16x8xbf16>, vector<32x8xf32> -> vector<32x8xf32>
    %44 = vector.broadcast %9 : vector<32x1xf32> to vector<32x8xf32>
    %45 = arith.addf %43, %44 : vector<32x8xf32>
    %46 = vector.shape_cast %37 : vector<32x16xf32> to vector<4x8x16xf32>
    %47 = arith.truncf %46 : vector<4x8x16xf32> to vector<4x8x16xbf16>
    %48 = vector.shape_cast %41 : vector<32x8xf32> to vector<4x8x8xf32>
    %49 = arith.truncf %48 : vector<4x8x8xf32> to vector<4x8x8xbf16>
    %50 = vector.shape_cast %45 : vector<32x8xf32> to vector<4x8x8xf32>
    %51 = arith.truncf %50 : vector<4x8x8xf32> to vector<4x8x8xbf16>
    %52 = tpu.transpose %47, [0, 2, 1] : vector<4x8x16xbf16> -> vector<4x16x8xbf16>
    "tpu.trace_start"() <{level = 10 : i32, message = "hld,hds->hls"}> : () -> ()
    %cst_20 = arith.constant dense<0.000000e+00> : vector<4x16x8xf32>
    %53 = tpu.matmul %52, %49, %cst_20 {dimension_numbers = #tpu.dot_dimension_numbers<[2], [1], [1], [2], [0, 0, 0, 1, 1, 2], [0], [0]>} : vector<4x16x8xbf16>, vector<4x8x8xbf16>, vector<4x16x8xf32> -> vector<4x16x8xf32>
    "tpu.trace_stop"() : () -> ()
    %cst_21 = arith.constant dense<0xFF800000> : vector<4x16xf32>
    %54 = vector.multi_reduction <maximumf>, %53, %cst_21 [2] : vector<4x16x8xf32> to vector<4x16xf32>
    %55 = vector.shape_cast %54 : vector<4x16xf32> to vector<4x16x1xf32>
    %56 = vector.broadcast %55 : vector<4x16x1xf32> to vector<4x16x8xf32>
    %57 = arith.subf %53, %56 : vector<4x16x8xf32>
    %58 = math.exp %57 : vector<4x16x8xf32>
    %cst_22 = arith.constant dense<0.000000e+00> : vector<4x16xf32>
    %59 = vector.multi_reduction <add>, %58, %cst_22 [2] : vector<4x16x8xf32> to vector<4x16xf32>
    %60 = vector.shape_cast %59 : vector<4x16xf32> to vector<4x16x1xf32>
    %61 = tpu.reciprocal %60 {approx = true} : vector<4x16x1xf32> -> vector<4x16x1xf32>
    %62 = vector.broadcast %61 : vector<4x16x1xf32> to vector<4x16x8xf32>
    %63 = arith.mulf %58, %62 : vector<4x16x8xf32>
    %64 = arith.truncf %63 : vector<4x16x8xf32> to vector<4x16x8xbf16>
    "tpu.trace_start"() <{level = 10 : i32, message = "hds,hls->hdl"}> : () -> ()
    %cst_23 = arith.constant dense<0.000000e+00> : vector<4x8x16xf32>
    %65 = tpu.matmul %51, %64, %cst_23 {dimension_numbers = #tpu.dot_dimension_numbers<[2], [2], [1], [1], [0, 0, 0, 1, 1, 1], [0], [0]>} : vector<4x8x8xbf16>, vector<4x16x8xbf16>, vector<4x8x16xf32> -> vector<4x8x16xf32>
    "tpu.trace_stop"() : () -> ()
    %66 = vector.shape_cast %65 : vector<4x8x16xf32> to vector<32x16xf32>
    %67 = arith.truncf %66 : vector<32x16xf32> to vector<32x16xbf16>
    %c0_24 = arith.constant 0 : index
    %c0_25 = arith.constant 0 : index
    %68 = vector.load %arg7[%c0_24, %c0_25] : memref<32x32xbf16, #tpu.memory_space<vmem>>, vector<32x32xbf16>
    %cst_26 = arith.constant dense<0.000000e+00> : vector<32x16xf32>
    %69 = tpu.matmul %68, %67, %cst_26 {dimension_numbers = #tpu.dot_dimension_numbers<[1], [0], [0], [1], [0, 0, 1, 1], [], []>} : vector<32x32xbf16>, vector<32x16xbf16>, vector<32x16xf32> -> vector<32x16xf32>
    %70 = vector.broadcast %10 : vector<32x1xf32> to vector<32x16xf32>
    %71 = arith.addf %69, %70 : vector<32x16xf32>
    %72 = arith.addf %1, %71 : vector<32x16xf32>
    %c0_27 = arith.constant 0 : index
    %c0_28 = arith.constant 0 : index
    %c0_29 = arith.constant 0 : index
    %73 = vector.load %arg9[%c0_27, %c0_28, %c0_29] : memref<1x32x16xf32, #tpu.memory_space<vmem>>, vector<1x32x16xf32>
    %74 = vector.shape_cast %73 : vector<1x32x16xf32> to vector<32x16xf32>
    %75 = vector.shape_cast %72 : vector<32x16xf32> to vector<1x32x16xf32>
    tpu.vector_store %arg9[%c0_27, %c0_28, %c0_29], %75 {strides = array<i32>} : memref<1x32x16xf32, #tpu.memory_space<vmem>>, vector<1x32x16xf32>,
    return
  }
  func.func @transform_0(%arg0: i32, %arg1: i32) -> (i32, i32, i32) {
    %c0_i32 = arith.constant 0 : i32
    %c0_i32_0 = arith.constant 0 : i32
    return %arg0, %c0_i32, %arg1 : i32, i32, i32
  }
  func.func @transform_1(%arg0: i32, %arg1: i32) -> (i32, i32, i32) {
    %c0_i32 = arith.constant 0 : i32
    %c0_i32_0 = arith.constant 0 : i32
    %c0_i32_1 = arith.constant 0 : i32
    return %arg0, %c0_i32, %c0_i32_0 : i32, i32, i32
  }
  func.func @transform_2(%arg0: i32, %arg1: i32) -> (i32, i32) {
    %c0_i32 = arith.constant 0 : i32
    %c0_i32_0 = arith.constant 0 : i32
    %c0_i32_1 = arith.constant 0 : i32
    return %c0_i32, %c0_i32_0 : i32, i32
  }
  func.func @transform_3(%arg0: i32, %arg1: i32) -> (i32, i32) {
    %c0_i32 = arith.constant 0 : i32
    %c0_i32_0 = arith.constant 0 : i32
    %c0_i32_1 = arith.constant 0 : i32
    return %c0_i32, %c0_i32_0 : i32, i32
  }
  func.func @transform_4(%arg0: i32, %arg1: i32) -> (i32, i32) {
    %c0_i32 = arith.constant 0 : i32
    %c0_i32_0 = arith.constant 0 : i32
    %c0_i32_1 = arith.constant 0 : i32
    return %c0_i32, %c0_i32_0 : i32, i32
  }
  func.func @transform_5(%arg0: i32, %arg1: i32) -> (i32, i32) {
    %c0_i32 = arith.constant 0 : i32
    %c0_i32_0 = arith.constant 0 : i32
    %c0_i32_1 = arith.constant 0 : i32
    return %c0_i32, %c0_i32_0 : i32, i32
  }
  func.func @transform_6(%arg0: i32, %arg1: i32) -> (i32, i32) {
    %c0_i32 = arith.constant 0 : i32
    %c0_i32_0 = arith.constant 0 : i32
    %c0_i32_1 = arith.constant 0 : i32
    return %c0_i32, %c0_i32_0 : i32, i32
  }
  func.func @transform_7(%arg0: i32, %arg1: i32) -> (i32, i32, i32) {
    %c0_i32 = arith.constant 0 : i32
    %c0_i32_0 = arith.constant 0 : i32
    return %arg0, %c0_i32, %arg1 : i32, i32, i32
  }
}

</mosaic_0001>

<bundles_post_ra>
// kernel: tpu_custom_call.1
= control target key start
LH: loop header
LB: loop body
LE: loop exit
PB: predicated region body
PF: predicated region fallthrough
CT: control target
= control target key end

     0   :  { %s1732_s24 = smov 0   ;;  %s1734_s25 = smov 0   ;;  %s1952_s0 = inlined_call_operand.vmem [shape: f32[2,32,16], index: 0, kind: input, shape index: {}]   ;;  %s1953_s1 = inlined_call_operand.vmem [shape: bf16[2,16,8], index: 1, kind: input, shape index: {}]   ;;  %s1954_s2 = inlined_call_operand.vmem [shape: bf16[32,32], index: 2, kind: input, shape index: {}]   ;;  %s1955_s3 = inlined_call_operand.vmem [shape: bf16[32,16], index: 3, kind: input, shape index: {}]   ;;  %s1956_s4 = inlined_call_operand.vmem [shape: bf16[32,16], index: 4, kind: input, shape index: {}]   ;;  %s1957_s5 = inlined_call_operand.vmem [shape: bf16[32,32], index: 5, kind: input, shape index: {}]   ;;  %s1958_s6 = inlined_call_operand.vmem [shape: f32[32,8], index: 6, kind: input, shape index: {}]   ;;  %s1959_s7 = inlined_call_operand.vmem [shape: f32[2,32,16], index: 7, kind: output, shape index: {}]  }
   0x1   :  { %s1736_s26 = smov 0  }
   0x2 LB: > { %s29_s27 = sadd.s32 1, %s1678_s25  ;;  %p1429_p0 = scmp.ge.s32.totalorder %s1682_s26, 1  ;;  %s1682_s26 = sphi %s1736_s26, %s17_s26   ;;  %s1678_s25 = sphi %s1734_s25, %s1961_s25   ;;  %s1674_s24 = sphi %s1732_s24, %s1960_s24  }
   0x3   : > { %p31_p1 = scmp.ge.s32.totalorder %s29_s27, 2  ;;  %p266_p2 = scmp.lt.s32.totalorder %s1682_s26, 3 }
   0x5   : > { %s1963_s27 = smov (%p31_p1, %s29_s27), 0  ;;  %p267_p3 = pnand %p1429_p0, %p266_p2 }
   0x6   : > { %p309_p4 = scmp.lt.s32.totalorder (!%p267_p3), %s1674_s24, 1 }
   0x7   : > { %270 = sbr.rel (%p267_p3) target bundleno = 1450 (0x5aa), region = 48 }
   0xc   : > { %v1753_v0 = vld [vmem:[%s1958_s6 + $0x10] sm:$0xff]  ;;  %v1684_v1 = vmov 1   ;;  %v1685_v2 = vmov 0   ;;  %v1760_v3 = vld [vmem:[%s1958_s6 + $0x18] sm:$0xff]  ;;  %s1965_s24 = smov (!%p309_p4, %s1674_s24), 1  ;;  %v1775_v4 = vld [vmem:[%s1958_s6] sm:$0xff] }
   0xd   : > { %1605 = vset.pattern.permute.xlu1 %v1684_v1  ;;  %1604 = vset.pattern.permute.xlu0 %v1685_v2  ;;  %s1463_s9 = sshll.u32 %s1965_s24, 5  ;;  %vm341_vm0 = vcmask 130048   ;;  %v1784_v7 = vld [vmem:[%s1958_s6 + $0x8] sm:$0xff]  ;;  %v1617_v15 = vld [vmem:[%s1954_s2] sm:$0xff]   ;;  %vm461_vm1 = vcmask 261120   ;;  %s1464_s19 = sshll.u32 %s1965_s24, 3 }
   0xe   : > { %418 = vperm.xlu1 %1605, %v1753_v0   ;;  %397 = vperm.xlu0 %1604, %v1753_v0   ;;  %s316_s12 = scalar_lea.vmem %s1952_s0, %s1463_s9  ;;  %v1620_v17 = vld [vmem:[%s1955_s3] sm:$0xff]   ;;  %v1686_v19 = vmov 2   ;;  %s321_s28 = scalar_lea.vmem %s1953_s1, %s1464_s19  ;;  %v1621_v21 = vld [vmem:[%s1955_s3 + $0x8] sm:$0xff]   ;;  %v1687_v23 = vmov 3   ;;  %vm1689_vm2 = vmmov 0   ;;  %vm725_vm3 = vcmask 1043456  }
   0xf   : > { %v1777_v5 = vld [vmem:[%s316_s12] sm:$0xff]  ;;  %v1779_v6 = vld [vmem:[%s316_s12 + $0x8] sm:$0xff]  ;;  %v1792_v10 = vld [vmem:[%s316_s12 + $0x10] sm:$0xff]  ;;  %1500 = vmatprep.mubr.msk.bf16.mxu0 %vm461_vm1, %v1617_v15  ;;  %1506 = vmatprep.mubr.msk.bf16.mxu1 %vm341_vm0, %v1620_v17  ;;  %vm721_vm4 = vcmask 64512   ;;  %s329_s21 = scalar_lea.vmem %s1959_s7, %s1463_s9 }
  0x10   : > { %v342_v8 = vsel %vm341_vm0, %v1777_v5, 0.0  ;;  %v343_v9 = vsel %vm341_vm0, %v1779_v6, 0.0  ;;  %v345_v12 = vsel %vm341_vm0, %v1792_v10, 0.0  ;;  %v1797_v13 = vld [vmem:[%s316_s12 + $0x18] sm:$0xff]  ;;  %v1619_v20 = vld [vmem:[%s321_s28] sm:$0xff]  }
  0x11   : > { %v344_v11 = vadd.f32 %v343_v9, %v342_v8  ;;  %v347_v16 = vsel %vm341_vm0, %v1797_v13, 0.0  ;;  %1504 = vmatprep.subr.bf16.mxu1 %v1619_v20 }
  0x12   : > { %422 = vperm.xlu1 %1605, %v1760_v3   ;;  %402 = vperm.xlu0 %1604, %v1760_v3  }
  0x13   : > { %v346_v14 = vadd.f32 %v345_v12, %v344_v11  ;;  %1505 = vmatpush3.bf16.msra.mxu1 %v1619_v20 }
  0x14   : > { %1510 = vmatprep.subr.bf16.mxu1 %v1619_v20 }
  0x15   : > { %v348_v18 = vadd.f32 %v347_v16, %v346_v14 }
  0x16   : > { %1606 = vset.pattern.permute.xlu1 %v1685_v2  ;;  %387 = vperm.xlu0 %1604, %v1775_v4  }
  0x17   : > { %392 = vperm.xlu1 %1606, %v1784_v7   ;;  %v349_v22 = vrot.slane %v348_v18, 4  ;;  %1507 = vmatmul.mubr.msk.bf16.vlgmr.msra.gmra.mxu1 %vm341_vm0, %v1621_v21 }
  0x18   : > { %1511 = vmatpush3.bf16.msra.mxu1 %v1619_v20  ;;  %v1618_v20 = vld [vmem:[%s1954_s2 + $0x8] sm:$0xff]  }
  0x19   : > { %v350_v24 = vadd.f32 %v349_v22, %v348_v18 }
  0x1a   : > { %1607 = vset.pattern.permute.xlu0 %v1684_v1 }
  0x1b   : > { %1608 = vset.pattern.permute.xlu1 %v1684_v1  ;;  %410 = vperm.xlu0 %1607, %v1775_v4   ;;  %v351_v25 = vrot.slane %v350_v24, 2 }
  0x1c   : > { %414 = vperm.xlu1 %1608, %v1784_v7  }
  0x1d   : > { %v352_v26 = vadd.f32 %v351_v25, %v350_v24 }
  0x1f   : > { %1610 = vset.pattern.permute.xlu0 %v1686_v19  ;;  %v353_v27 = vrot.slane %v352_v26, 1 }
  0x20   : > { %1609 = vset.pattern.permute.xlu1 %v1686_v19  ;;  %440 = vperm.xlu0 %1610, %v1784_v7  }
  0x21   : > { %436 = vperm.xlu1 %1609, %v1775_v4   ;;  %v354_v28 = vadd.f32 %v353_v27, %v352_v26  ;;  %v1622_v27 = vld [vmem:[%s1956_s4] sm:$0xff]  }
  0x22   : > { %1512 = vmatprep.mubr.msk.bf16.mxu1 %vm341_vm0, %v1622_v27 }
  0x23   : > { %v356_v29 = vmul.f32 0.03125, %v354_v28  ;;  %v1623_v28 = vld [vmem:[%s1956_s4 + $0x8] sm:$0xff]  }
  0x24   : > { %1611 = vset.pattern.permute.xlu0 %v1687_v23  ;;  %1513 = vmatmul.mubr.msk.bf16.vlgmr.msra.gmra.mxu1 %vm341_vm0, %v1623_v28 }
  0x25   : > { %444 = vperm.xlu1 %1609, %v1753_v0   ;;  %522 = vperm.xlu0 %1611, %v1775_v4   ;;  %v357_v30 = vsub.f32 %v1777_v5, %v356_v29  ;;  %v358_v31 = vsub.f32 %v1779_v6, %v356_v29  ;;  %v359_v32 = vsub.f32 %v1792_v10, %v356_v29 }
  0x26   : > { %v360_v35 = vsub.f32 %v1797_v13, %v356_v29 }
  0x27   : > { %v361_v33 = vmul.f32 %v357_v30, %v357_v30  ;;  %v362_v34 = vmul.f32 %v358_v31, %v358_v31  ;;  %v363_v36 = vmul.f32 %v359_v32, %v359_v32 }
  0x28   : > { %v364_v40 = vmul.f32 %v360_v35, %v360_v35 }
  0x29   : > { %448 = vperm.xlu1 %1609, %v1760_v3   ;;  %534 = vperm.xlu0 %1611, %v1760_v3   ;;  %v365_v37 = vsel %vm341_vm0, %v361_v33, 0.0  ;;  %v366_v38 = vsel %vm341_vm0, %v362_v34, 0.0  ;;  %v368_v41 = vsel %vm341_vm0, %v363_v36, 0.0 }
  0x2a   : > { %v367_v39 = vadd.f32 %v366_v38, %v365_v37  ;;  %v370_v43 = vsel %vm341_vm0, %v364_v40, 0.0 }
  0x2c   : > { %v369_v42 = vadd.f32 %v368_v41, %v367_v39 }
  0x2d   : > { %1612 = vset.pattern.permute.xlu1 %v1687_v23 }
  0x2e   : > { %526 = vperm.xlu1 %1612, %v1784_v7   ;;  %v371_v44 = vadd.f32 %v370_v43, %v369_v42 }
  0x30   : > { %v372_v45 = vrot.slane %v371_v44, 4 }
  0x32   : > { %530 = vperm.xlu1 %1612, %v1753_v0   ;;  %v373_v46 = vadd.f32 %v372_v45, %v371_v44 }
  0x34   : > { %v374_v47 = vrot.slane %v373_v46, 2 }
  0x36   : > { %v375_v48 = vadd.f32 %v374_v47, %v373_v46 }
  0x38   : > { %v376_v49 = vrot.slane %v375_v48, 1 }
  0x3a   : > { %v377_v50 = vadd.f32 %v376_v49, %v375_v48 }
  0x3c   : > { %v378_v51 = vmul.f32 0.03125, %v377_v50 }
  0x3e   : > { %v379_v52 = vadd.f32 1e-05, %v378_v51 }
  0x40   : > { %1626 = vrsqrt.f32 %v379_v52 }
  0x4d   : > { %v1627_v53 = vpop.eup %1626 }
  0x4e   : > { %v383_v54 = vmul.f32 %v1627_v53, %v359_v32  ;;  %v384_v57 = vmul.f32 %v1627_v53, %v360_v35  ;;  %v381_v2 = vmul.f32 %v1627_v53, %v357_v30  ;;  %v382_v9 = vmul.f32 %v1627_v53, %v358_v31 }
  0x4f   : > { %v1688_v30 = vmov 0.0  }
  0x50   : > { %1522 = vmatprep.subr.bf16.mxu1 %v1688_v30  ;;  %1524 = vmatprep.mubr.msk.bf16.mxu1 %vm1689_vm2, %v1688_v30 }
  0x89   : > { %v419_v55 = vpop.permute.xlu1 %418  ;;  %v398_v56 = vpop.permute.xlu0 %397 }
  0x8a   : > { %v407_v58 = vmul.f32 %v398_v56, %v383_v54 }
  0x8c   : > { %v427_v62 = vadd.f32 %v419_v55, %v407_v58 }
  0x8d   : > { %v423_v59 = vpop.permute.xlu1 %422  ;;  %v403_v60 = vpop.permute.xlu0 %402 }
  0x8e   : > { %v408_v61 = vmul.f32 %v403_v60, %v384_v57 }
  0x90   : > { %v428_v63 = vadd.f32 %v423_v59, %v408_v61 }
  0x91   : > { %v388_v1 = vpop.permute.xlu0 %387 }
  0x92   : > { %v393_v8 = vpop.permute.xlu1 %392  ;;  %v430_v11 = vpack.c.bf16 %v428_v63, %v427_v62  ;;  %v405_v12 = vmul.f32 %v388_v1, %v381_v2 }
  0x93   : > { %v406_v14 = vmul.f32 %v393_v8, %v382_v9 }
  0x94   : > { %1496 = vmatprep.subr.bf16.mxu0 %v430_v11 }
  0x95   : > { %1497 = vmatpush3.bf16.msra.mxu0 %v430_v11 }
  0x96   : > { %v411_v15 = vpop.permute.xlu0 %410 }
  0x97   : > { %v425_v16 = vadd.f32 %v411_v15, %v405_v12  ;;  %v415_v17 = vpop.permute.xlu1 %414 }
  0x98   : > { %v426_v18 = vadd.f32 %v415_v17, %v406_v14 }
  0x9a   : > { %v429_v19 = vpack.c.bf16 %v426_v18, %v425_v16 }
  0x9b   : > { %v441_v24 = vpop.permute.xlu0 %440 }
  0x9c   : > { %1498 = vmatprep.subr.bf16.mxu0 %v429_v19  ;;  %v437_v21 = vpop.permute.xlu1 %436 }
  0x9d   : > { %1499 = vmatpush3.bf16.msra.mxu0 %v429_v19 }
  0x9e   : > { %1516 = vmatprep.subr.bf16.mxu0 %v1688_v30 }
  0xa0   : > { %1501 = vmatmul.mubr.msk.bf16.vlgmr.msra.gmra.mxu0 %vm461_vm1, %v1618_v20  ;;  %v445_v22 = vpop.permute.xlu1 %444  ;;  %v523_v29 = vpop.permute.xlu0 %522 }
  0xa1   : > { %1518 = vmatprep.mubr.msk.bf16.mxu0 %vm1689_vm2, %v1688_v30 }
  0xa4   : > { %v449_v23 = vpop.permute.xlu1 %448  ;;  %v535_v37 = vpop.permute.xlu0 %534 }
  0xa9   : > { %v527_v26 = vpop.permute.xlu1 %526 }
  0xad   : > { %v531_v34 = vpop.permute.xlu1 %530 }
  0xd7   : > { %v1508_v25 = vpop.f32.mrf.mxu1 }
  0xd8   : > { %v602_v36 = vadd.f32 %v1508_v25, %v531_v34 }
  0xd9   : > { %v593_v31 = vpop.f32.mrf.mxu1 }
  0xda   : > { %v594_v32 = vadd.f32 %v593_v31, %v523_v29  ;;  %v699_v41 = vpack.c.bf16 %v602_v36, %v602_v36 }
  0xdb   : > { %v1509_v33 = vpop.f32.mrf.mxu1 }
  0xdc   : > { %v697_v35 = vpack.c.bf16 %v594_v32, %v594_v32  ;;  %v605_v38 = vadd.f32 %v1509_v33, %v535_v37  ;;  %v853_v44 = vsel %vm725_vm3, %v699_v41, 0  ;;  %v1690_v37 = vmov 4  }
  0xdd   : > { %v596_v39 = vpop.f32.mrf.mxu1 }
  0xde   : > { %v727_v40 = vsel %vm725_vm3, %v697_v35, 0  ;;  %v597_v42 = vadd.f32 %v596_v39, %v527_v26  ;;  %v700_v43 = vpack.c.bf16 %v605_v38, %v605_v38 }
  0xdf   : > { %1517 = vmatpush3.bf16.msra.mxu0 %v727_v40 }
  0xe0   : > { %v698_v45 = vpack.c.bf16 %v597_v42, %v597_v42  ;;  %1528 = vmatprep.subr.bf16.mxu0 %v1688_v30  ;;  %v916_v46 = vsel %vm725_vm3, %v700_v43, 0 }
  0xe2   : > { %v790_v47 = vsel %vm725_vm3, %v698_v45, 0 }
  0xe3   : > { %1523 = vmatpush3.bf16.msra.mxu1 %v790_v47 }
  0xe4   : > { %1534 = vmatprep.subr.bf16.mxu1 %v1688_v30  ;;  %v1868_v1 = vpop.f32.mrf.mxu1 }
  0xe6   : > { %v1870_v2 = vpop.f32.mrf.mxu1 }
  0xe8   : > { %v1872_v8 = vpop.f32.mrf.mxu1 }
  0xea   : > { %v1875_v12 = vpop.f32.mrf.mxu1 }
 0x160   : > { %v1502_v48 = vpop.f32.mrf.mxu0 }
 0x161   : > { %v511_v56 = vadd.f32 %v1502_v48, %v445_v22 }
 0x162   : > { %v502_v49 = vpop.f32.mrf.mxu0 }
 0x163   : > { %v503_v50 = vadd.f32 %v502_v49, %v437_v21  ;;  %v695_v59 = vpack.c.bf16 %v511_v56, %v511_v56 }
 0x164   : > { %v1503_v51 = vpop.f32.mrf.mxu0 }
 0x165   : > { %v693_v52 = vpack.c.bf16 %v503_v50, %v503_v50  ;;  %v514_v53 = vadd.f32 %v1503_v51, %v449_v23 }
 0x166   : > { %v505_v54 = vpop.f32.mrf.mxu0 }
 0x167   : > { %v506_v55 = vadd.f32 %v505_v54, %v441_v24  ;;  %705 = vxpose.xlu1.c.b16.start.end [1/1] (short) (narrow) %v693_v52, 16  ;;  %v696_v57 = vpack.c.bf16 %v514_v53, %v514_v53 }
 0x169   : > { %v694_v58 = vpack.c.bf16 %v506_v55, %v506_v55 }
 0x16b   : > { %770 = vxpose.xlu0.c.b16.start.end [1/1] (short) (narrow) %v694_v58, 16  ;;  %896 = vxpose.xlu1.c.b16.start.end [1/1] (short) (narrow) %v696_v57, 16 }
 0x16f   : > { %833 = vxpose.xlu0.c.b16.start.end [1/1] (short) (narrow) %v695_v59, 16  ;;  %1614 = vset.pattern.permute.xlu1 %v1690_v37 }
 0x178   : > { %1613 = vset.pattern.permute.xlu0 %v1690_v37 }
 0x1c9   : > { %v713_v60 = vpop.trf.xlu1 }
 0x1ca   : > { %1519 = vmatmul.mubr.msk.bf16.vlgmr.msra.gmra.mxu0 %vm721_vm4, %v713_v60 }
 0x1cb   : > { %1529 = vmatpush3.bf16.msra.mxu0 %v853_v44  ;;  %1530 = vmatprep.mubr.msk.bf16.mxu0 %vm1689_vm2, %v1688_v30 }
 0x1cc   : > { %1540 = vmatprep.subr.bf16.mxu0 %v1688_v30 }
 0x1cd   : > { %v778_v61 = vpop.trf.xlu0  ;;  %v904_v63 = vpop.trf.xlu1 }
 0x1ce   : > { %1525 = vmatmul.mubr.msk.bf16.vlgmr.msra.gmra.mxu1 %vm721_vm4, %v778_v61 }
 0x1cf   : > { %1535 = vmatpush3.bf16.msra.mxu1 %v916_v46  ;;  %1536 = vmatprep.mubr.msk.bf16.mxu1 %vm1689_vm2, %v1688_v30 }
 0x1d0   : > { %1546 = vmatprep.subr.bf16.mxu1 %v1688_v30 }
 0x1d1   : > { %v841_v62 = vpop.trf.xlu0 }
 0x1d2   : > { %1531 = vmatmul.mubr.msk.bf16.vlgmr.msra.gmra.mxu0 %vm721_vm4, %v841_v62 }
 0x1d3   : > { %1542 = vmatprep.mubr.msk.bf16.mxu0 %vm1689_vm2, %v1688_v30 }
 0x1d6   : > { %1537 = vmatmul.mubr.msk.bf16.vlgmr.msra.gmra.mxu1 %vm721_vm4, %v904_v63 }
 0x1d7   : > { %1548 = vmatprep.mubr.msk.bf16.mxu1 %vm1689_vm2, %v1688_v30 }
 0x28a   : > { %v763_v9 = vpop.f32.mrf.mxu0 }
 0x28b   : > { %v959_v11 = vsel %vm721_vm4, %v763_v9, -inf }
 0x28c   : > { %960 = vmax.xlane.f32.xlu0 %v959_v11  ;;  %v1520_v14 = vpop.f32.mrf.mxu0 }
 0x28e   : > { %v766_v15 = vpop.f32.mrf.mxu0  ;;  %v826_v16 = vpop.f32.mrf.mxu1 }
 0x28f   : > { %v965_v17 = vsel %vm721_vm4, %v826_v16, -inf  ;;  %v962_v18 = vsel %vm721_vm4, %v766_v15, -inf }
 0x290   : > { %v1526_v19 = vpop.f32.mrf.mxu1  ;;  %966 = vmax.xlane.f32.xlu0 %v965_v17  ;;  %963 = vmax.xlane.f32.xlu1 %v962_v18  ;;  %v1521_v20 = vpop.f32.mrf.mxu0 }
 0x292   : > { %v829_v21 = vpop.f32.mrf.mxu1  ;;  %v889_v22 = vpop.f32.mrf.mxu0 }
 0x293   : > { %v968_v23 = vsel %vm721_vm4, %v829_v21, -inf  ;;  %v971_v24 = vsel %vm721_vm4, %v889_v22, -inf }
 0x294   : > { %v1527_v25 = vpop.f32.mrf.mxu1  ;;  %969 = vmax.xlane.f32.xlu1 %v968_v23  ;;  %972 = vmax.xlane.f32.xlu0 %v971_v24  ;;  %v1532_v26 = vpop.f32.mrf.mxu0 }
 0x296   : > { %v892_v27 = vpop.f32.mrf.mxu0  ;;  %v952_v28 = vpop.f32.mrf.mxu1 }
 0x297   : > { %v974_v29 = vsel %vm721_vm4, %v892_v27, -inf  ;;  %v977_v31 = vsel %vm721_vm4, %v952_v28, -inf }
 0x298   : > { %975 = vmax.xlane.f32.xlu1 %v974_v29  ;;  %v1533_v32 = vpop.f32.mrf.mxu0  ;;  %978 = vmax.xlane.f32.xlu0 %v977_v31  ;;  %v1538_v33 = vpop.f32.mrf.mxu1 }
 0x29a   : > { %v955_v34 = vpop.f32.mrf.mxu1 }
 0x29b   : > { %v980_v35 = vsel %vm721_vm4, %v955_v34, -inf }
 0x29c   : > { %981 = vmax.xlane.f32.xlu1 %v980_v35  ;;  %v1539_v36 = vpop.f32.mrf.mxu1 }
 0x315   : > { %v961_v38 = vpop.xlane.xlu0 %960 }
 0x316   : > { %v983_v39 = vsub.f32 %v763_v9, %v961_v38 }
 0x318   : > { %v991_v40 = vmul.f32 1.442695, %v983_v39 }
 0x319   : > { %v967_v41 = vpop.xlane.xlu0 %966  ;;  %v964_v42 = vpop.xlane.xlu1 %963 }
 0x31a   : > { %1628 = vpow2.f32 %v991_v40  ;;  %v985_v43 = vsub.f32 %v826_v16, %v967_v41  ;;  %v984_v44 = vsub.f32 %v766_v15, %v964_v42 }
 0x31c   : > { %v995_v45 = vmul.f32 1.442695, %v985_v43  ;;  %v993_v46 = vmul.f32 1.442695, %v984_v44 }
 0x31d   : > { %v973_v47 = vpop.xlane.xlu0 %972  ;;  %v970_v48 = vpop.xlane.xlu1 %969 }
 0x31e   : > { %1630 = vpow2.f32 %v995_v45  ;;  %v987_v49 = vsub.f32 %v889_v22, %v973_v47  ;;  %v986_v50 = vsub.f32 %v829_v21, %v970_v48 }
 0x31f   : > { %1632 = vpow2.f32 %v993_v46 }
 0x320   : > { %v999_v51 = vmul.f32 1.442695, %v987_v49  ;;  %v997_v52 = vmul.f32 1.442695, %v986_v50 }
 0x321   : > { %v979_v53 = vpop.xlane.xlu0 %978  ;;  %v976_v54 = vpop.xlane.xlu1 %975 }
 0x322   : > { %1634 = vpow2.f32 %v999_v51  ;;  %v989_v55 = vsub.f32 %v952_v28, %v979_v53  ;;  %v988_v56 = vsub.f32 %v892_v27, %v976_v54 }
 0x323   : > { %1636 = vpow2.f32 %v997_v52 }
 0x324   : > { %v1003_v57 = vmul.f32 1.442695, %v989_v55  ;;  %v1001_v58 = vmul.f32 1.442695, %v988_v56 }
 0x325   : > { %v982_v21 = vpop.xlane.xlu1 %981 }
 0x326   : > { %1638 = vpow2.f32 %v1003_v57  ;;  %v990_v22 = vsub.f32 %v955_v34, %v982_v21 }
 0x327   : > { %v1629_v59 = vpop.eup %1628  ;;  %1640 = vpow2.f32 %v1001_v58 }
 0x328   : > { %v1007_v60 = vsel %vm721_vm4, %v1629_v59, 0.0  ;;  %v1005_v23 = vmul.f32 1.442695, %v990_v22 }
 0x329   : > { %1008 = vadd.xlane.f32.xlu0 %v1007_v60 }
 0x32a   : > { %1642 = vpow2.f32 %v1005_v23 }
 0x32b   : > { %v1631_v61 = vpop.eup %1630 }
 0x32c   : > { %v1633_v62 = vpop.eup %1632  ;;  %v1013_v63 = vsel %vm721_vm4, %v1631_v61, 0.0 }
 0x32d   : > { %1014 = vadd.xlane.f32.xlu0 %v1013_v63  ;;  %v1010_v9 = vsel %vm721_vm4, %v1633_v62, 0.0 }
 0x32e   : > { %1011 = vadd.xlane.f32.xlu1 %v1010_v9 }
 0x32f   : > { %v1635_v11 = vpop.eup %1634 }
 0x330   : > { %v1637_v14 = vpop.eup %1636  ;;  %v1019_v15 = vsel %vm721_vm4, %v1635_v11, 0.0 }
 0x331   : > { %1020 = vadd.xlane.f32.xlu0 %v1019_v15  ;;  %v1016_v16 = vsel %vm721_vm4, %v1637_v14, 0.0 }
 0x332   : > { %1017 = vadd.xlane.f32.xlu1 %v1016_v16  ;;  %v1691_v16 = vmov 5  }
 0x333   : > { %v1889_v17 = vpop.eup %1638 }
 0x334   : > { %v1641_v18 = vpop.eup %1640  ;;  %v1025_v19 = vsel %vm721_vm4, %v1889_v17, 0.0 }
 0x335   : > { %1026 = vadd.xlane.f32.xlu0 %v1025_v19  ;;  %v1022_v20 = vsel %vm721_vm4, %v1641_v18, 0.0 }
 0x336   : > { %1023 = vadd.xlane.f32.xlu1 %v1022_v20 }
 0x337   : > { %v1643_v24 = vpop.eup %1642 }
 0x338   : > { %v1028_v25 = vsel %vm721_vm4, %v1643_v24, 0.0 }
 0x347   : > { %617 = vperm.xlu1 %1614, %v1784_v7  }
 0x34b   : > { %621 = vperm.xlu1 %1614, %v1753_v0   ;;  %613 = vperm.xlu0 %1613, %v1775_v4  }
 0x34f   : > { %1616 = vset.pattern.permute.xlu0 %v1691_v16 }
 0x36f   : > { %1029 = vadd.xlane.f32.xlu1 %v1028_v25 }
 0x380   : > { %625 = vperm.xlu1 %1614, %v1760_v3  }
 0x384   : > { %1615 = vset.pattern.permute.xlu1 %v1691_v16 }
 0x385   : > { %1242 = vperm.xlu1 %1615, %v1775_v4  }
 0x389   : > { %1246 = vperm.xlu1 %1615, %v1784_v7  }
 0x38d   : > { %1250 = vperm.xlu1 %1615, %v1753_v0  }
 0x391   : > { %1254 = vperm.xlu1 %1615, %v1760_v3  }
 0x3b2   : > { %v1009_v26 = vpop.xlane.xlu0 %1008 }
 0x3b3   : > { %1644 = vrcp.f32 %v1009_v26 }
 0x3b6   : > { %v1015_v27 = vpop.xlane.xlu0 %1014 }
 0x3b7   : > { %v1012_v28 = vpop.xlane.xlu1 %1011 }
 0x3b8   : > { %1646 = vrcp.f32 %v1012_v28 }
 0x3b9   : > { %1648 = vrcp.f32 %v1015_v27 }
 0x3ba   : > { %v1021_v29 = vpop.xlane.xlu0 %1020 }
 0x3bb   : > { %v1018_v31 = vpop.xlane.xlu1 %1017 }
 0x3bc   : > { %1650 = vrcp.f32 %v1018_v31  ;;  %v1625_v31 = vld [vmem:[%s1957_s5 + $0x8] sm:$0xff]  }
 0x3bd   : > { %1652 = vrcp.f32 %v1021_v29 }
 0x3be   : > { %v1027_v35 = vpop.xlane.xlu0 %1026 }
 0x3bf   : > { %v1024_v32 = vpop.xlane.xlu1 %1023 }
 0x3c0   : > { %1654 = vrcp.f32 %v1024_v32  ;;  %v1645_v33 = vpop.eup %1644 }
 0x3c1   : > { %v1039_v36 = vmul.f32 %v1645_v33, %v1629_v59  ;;  %1656 = vrcp.f32 %v1027_v35 }
 0x3c3   : > { %v618_v46 = vpop.permute.xlu1 %617 }
 0x3c4   : > { %v682_v53 = vadd.f32 %v1875_v12, %v618_v46 }
 0x3c5   : > { %v1647_v34 = vpop.eup %1646 }
 0x3c6   : > { %v1040_v37 = vmul.f32 %v1647_v34, %v1633_v62  ;;  %v1649_v38 = vpop.eup %1648  ;;  %v614_v41 = vpop.permute.xlu0 %613  ;;  %v702_v57 = vpack.c.bf16 %v682_v53, %v682_v53 }
 0x3c7   : > { %v1041_v43 = vmul.f32 %v1649_v38, %v1631_v61  ;;  %v679_v47 = vadd.f32 %v1870_v2, %v614_v41  ;;  %v622_v56 = vpop.permute.xlu1 %621 }
 0x3c8   : > { %v1047_v39 = vpack.c.bf16 %v1040_v37, %v1039_v36  ;;  %v687_v58 = vadd.f32 %v1868_v1, %v622_v56 }
 0x3c9   : > { %v1651_v40 = vpop.eup %1650  ;;  %v701_v54 = vpack.c.bf16 %v679_v47, %v679_v47 }
 0x3ca   : > { %v1055_v42 = vsel %vm721_vm4, %v1047_v39, 0  ;;  %v1042_v44 = vmul.f32 %v1651_v40, %v1637_v14  ;;  %v1653_v45 = vpop.eup %1652  ;;  %v703_v12 = vpack.c.bf16 %v687_v58, %v687_v58 }
 0x3cb   : > { %1541 = vmatpush3.bf16.xpose.msra.mxu0 %v1055_v42  ;;  %v1043_v51 = vmul.f32 %v1653_v45, %v1635_v11 }
 0x3cc   : > { %v1048_v48 = vpack.c.bf16 %v1042_v44, %v1041_v43  ;;  %1552 = vmatprep.subr.bf16.mxu0 %v1688_v30 }
 0x3cd   : > { %v1655_v49 = vpop.eup %1654 }
 0x3ce   : > { %v1101_v50 = vsel %vm721_vm4, %v1048_v48, 0  ;;  %v1044_v52 = vmul.f32 %v1655_v49, %v1641_v18  ;;  %v1657_v60 = vpop.eup %1656 }
 0x3cf   : > { %1547 = vmatpush3.bf16.xpose.msra.mxu1 %v1101_v50  ;;  %v1045_v62 = vmul.f32 %v1657_v60, %v1889_v17 }
 0x3d0   : > { %v1049_v55 = vpack.c.bf16 %v1044_v52, %v1043_v51  ;;  %1558 = vmatprep.subr.bf16.mxu1 %v1688_v30 }
 0x3d2   : > { %1543 = vmatmul.mubr.msk.bf16.vlgmr.msra.gmra.mxu0 %vm721_vm4, %v701_v54  ;;  %v1147_v2 = vsel %vm721_vm4, %v1049_v55, 0 }
 0x3d3   : > { %1553 = vmatpush3.bf16.xpose.msra.mxu0 %v1147_v2  ;;  %1554 = vmatprep.mubr.msk.bf16.mxu0 %vm1689_vm2, %v1688_v30 }
 0x3d6   : > { %1549 = vmatmul.mubr.msk.bf16.vlgmr.msra.gmra.mxu1 %vm721_vm4, %v702_v57 }
 0x3d7   : > { %1560 = vmatprep.mubr.msk.bf16.mxu1 %vm1689_vm2, %v1688_v30  ;;  %v1624_v30 = vld [vmem:[%s1957_s5] sm:$0xff]  }
 0x3da   : > { %1555 = vmatmul.mubr.msk.bf16.vlgmr.msra.gmra.mxu0 %vm721_vm4, %v703_v12 }
 0x3db   : > { %1568 = vmatprep.mubr.msk.bf16.mxu0 %vm461_vm1, %v1624_v30 }
 0x3f8   : > { %v1030_v59 = vpop.xlane.xlu1 %1029 }
 0x3f9   : > { %1658 = vrcp.f32 %v1030_v59 }
 0x3fc   : > { %v626_v11 = vpop.permute.xlu1 %625 }
 0x3fd   : > { %v690_v14 = vadd.f32 %v1872_v8, %v626_v11 }
 0x3ff   : > { %v704_v15 = vpack.c.bf16 %v690_v14, %v690_v14 }
 0x400   : > { %v1243_v32 = vpop.permute.xlu1 %1242 }
 0x404   : > { %v1247_v33 = vpop.permute.xlu1 %1246 }
 0x406   : > { %v1659_v61 = vpop.eup %1658 }
 0x407   : > { %v1046_v63 = vmul.f32 %v1659_v61, %v1643_v24 }
 0x408   : > { %v1251_v34 = vpop.permute.xlu1 %1250 }
 0x409   : > { %v1050_v9 = vpack.c.bf16 %v1046_v63, %v1045_v62 }
 0x40b   : > { %v1193_v1 = vsel %vm721_vm4, %v1050_v9, 0 }
 0x40c   : > { %1559 = vmatpush3.bf16.xpose.msra.mxu1 %v1193_v1  ;;  %v1255_v40 = vpop.permute.xlu1 %1254 }
 0x413   : > { %1561 = vmatmul.mubr.msk.bf16.vlgmr.msra.gmra.mxu1 %vm721_vm4, %v704_v15 }
 0x492   : > { %v1091_v8 = vpop.f32.mrf.mxu0 }
 0x494   : > { %v1544_v17 = vpop.f32.mrf.mxu0 }
 0x496   : > { %v1094_v18 = vpop.f32.mrf.mxu0  ;;  %v1137_v19 = vpop.f32.mrf.mxu1 }
 0x497   : > { %v1235_v29 = vpack.c.bf16 %v1137_v19, %v1091_v8 }
 0x498   : > { %v1545_v20 = vpop.f32.mrf.mxu0  ;;  %v1550_v21 = vpop.f32.mrf.mxu1 }
 0x49a   : > { %v1140_v22 = vpop.f32.mrf.mxu1  ;;  %v1183_v23 = vpop.f32.mrf.mxu0 }
 0x49c   : > { %v1551_v24 = vpop.f32.mrf.mxu1  ;;  %v1556_v25 = vpop.f32.mrf.mxu0 }
 0x49e   : > { %v1186_v26 = vpop.f32.mrf.mxu0 }
 0x4a0   : > { %v1557_v27 = vpop.f32.mrf.mxu0 }
 0x4d3   : > { %v1229_v28 = vpop.f32.mrf.mxu1 }
 0x4d4   : > { %v1236_v4 = vpack.c.bf16 %v1229_v28, %v1183_v23 }
 0x4d5   : > { %v1562_v7 = vpop.f32.mrf.mxu1 }
 0x4d6   : > { %1564 = vmatprep.subr.bf16.mxu0 %v1236_v4 }
 0x4d7   : > { %v1232_v0 = vpop.f32.mrf.mxu1  ;;  %1565 = vmatpush3.bf16.msra.mxu0 %v1236_v4 }
 0x4d8   : > { %1566 = vmatprep.subr.bf16.mxu0 %v1235_v29 }
 0x4d9   : > { %v1563_v3 = vpop.f32.mrf.mxu1 }
 0x4db   : > { %1567 = vmatpush3.bf16.msra.mxu0 %v1235_v29 }
 0x4de   : > { %1569 = vmatmul.mubr.msk.bf16.vlgmr.msra.gmra.mxu0 %vm461_vm1, %v1625_v31 }
 0x59e   : > { %v1570_v35 = vpop.f32.mrf.mxu0 }
 0x59f   : > { %v1316_v36 = vadd.f32 %v1570_v35, %v1251_v34 }
 0x5a0   : > { %v1307_v37 = vpop.f32.mrf.mxu0 }
 0x5a1   : > { %v1324_v38 = vadd.f32 %v1316_v36, %v1792_v10  ;;  %v1308_v39 = vadd.f32 %v1307_v37, %v1243_v32 }
 0x5a2   : > { %v1571_v41 = vpop.f32.mrf.mxu0 }
 0x5a3   : > { %1328 = vst.msk [vmem:[%s329_s21 + $0x10] sm:$0xff] %vm341_vm0, %v1324_v38  ;;  %v1322_v42 = vadd.f32 %v1308_v39, %v1777_v5  ;;  %v1319_v43 = vadd.f32 %v1571_v41, %v1255_v40 }
 0x5a4   : > { %v1310_v44 = vpop.f32.mrf.mxu0 }
 0x5a5   : > { %1326 = vst.msk [vmem:[%s329_s21] sm:$0xff] %vm341_vm0, %v1322_v42  ;;  %v1325_v45 = vadd.f32 %v1319_v43, %v1797_v13  ;;  %v1311_v46 = vadd.f32 %v1310_v44, %v1247_v33 }
 0x5a7   : > { %1329 = vst.msk [vmem:[%s329_s21 + $0x18] sm:$0xff] %vm341_vm0, %v1325_v45  ;;  %v1323_v47 = vadd.f32 %v1311_v46, %v1779_v6 }
 0x5a9   : > { %1327 = vst.msk [vmem:[%s329_s21 + $0x8] sm:$0xff] %vm341_vm0, %v1323_v47 }
 0x5aa PF: > { %s17_s26 = sadd.s32 1, %s1682_s26   ;;  %s1960_s24 = smov %s1678_s25 }
 0x5ab   : > { %p14_p5 = scmp.ge.s32.totalorder %s17_s26, 4   ;;  %s1961_s25 = smov %s1963_s27 }
 0x5ad   :  { %16 = sbr.rel (!%p14_p5) target bundleno = 2 (0x2), region = 81 }

// kernel: tpu_custom_call.1
= control target key start
LH: loop header
LB: loop body
LE: loop exit
PB: predicated region body
PF: predicated region fallthrough
CT: control target
= control target key end

     0   :  { %s1732_s24 = smov 0   ;;  %s1734_s25 = smov 0   ;;  %s1952_s0 = inlined_call_operand.vmem [shape: f32[2,32,16], index: 0, kind: input, shape index: {}]   ;;  %s1953_s1 = inlined_call_operand.vmem [shape: bf16[2,16,8], index: 1, kind: input, shape index: {}]   ;;  %s1954_s2 = inlined_call_operand.vmem [shape: bf16[32,32], index: 2, kind: input, shape index: {}]   ;;  %s1955_s3 = inlined_call_operand.vmem [shape: bf16[32,16], index: 3, kind: input, shape index: {}]   ;;  %s1956_s4 = inlined_call_operand.vmem [shape: bf16[32,16], index: 4, kind: input, shape index: {}]   ;;  %s1957_s5 = inlined_call_operand.vmem [shape: bf16[32,32], index: 5, kind: input, shape index: {}]   ;;  %s1958_s6 = inlined_call_operand.vmem [shape: f32[32,8], index: 6, kind: input, shape index: {}]   ;;  %s1959_s7 = inlined_call_operand.vmem [shape: f32[2,32,16], index: 7, kind: output, shape index: {}]  }
   0x1   :  { %s1736_s26 = smov 0  }
   0x2 LB: > { %s29_s27 = sadd.s32 1, %s1678_s25  ;;  %p1429_p0 = scmp.ge.s32.totalorder %s1682_s26, 1  ;;  %s1682_s26 = sphi %s1736_s26, %s17_s26   ;;  %s1678_s25 = sphi %s1734_s25, %s1961_s25   ;;  %s1674_s24 = sphi %s1732_s24, %s1960_s24  }
   0x3   : > { %p31_p1 = scmp.ge.s32.totalorder %s29_s27, 2  ;;  %p266_p2 = scmp.lt.s32.totalorder %s1682_s26, 3 }
   0x5   : > { %s1963_s27 = smov (%p31_p1, %s29_s27), 0  ;;  %p267_p3 = pnand %p1429_p0, %p266_p2 }
   0x6   : > { %p309_p4 = scmp.lt.s32.totalorder (!%p267_p3), %s1674_s24, 1 }
   0x7   : > { %270 = sbr.rel (%p267_p3) target bundleno = 1450 (0x5aa), region = 48 }
   0xc   : > { %v1753_v0 = vld [vmem:[%s1958_s6 + $0x10] sm:$0xff]  ;;  %v1684_v1 = vmov 1   ;;  %v1685_v2 = vmov 0   ;;  %v1760_v3 = vld [vmem:[%s1958_s6 + $0x18] sm:$0xff]  ;;  %s1965_s24 = smov (!%p309_p4, %s1674_s24), 1  ;;  %v1775_v4 = vld [vmem:[%s1958_s6] sm:$0xff] }
   0xd   : > { %1605 = vset.pattern.permute.xlu1 %v1684_v1  ;;  %1604 = vset.pattern.permute.xlu0 %v1685_v2  ;;  %s1463_s9 = sshll.u32 %s1965_s24, 5  ;;  %vm341_vm0 = vcmask 130048   ;;  %v1784_v7 = vld [vmem:[%s1958_s6 + $0x8] sm:$0xff]  ;;  %v1617_v15 = vld [vmem:[%s1954_s2] sm:$0xff]   ;;  %vm461_vm1 = vcmask 261120   ;;  %s1464_s19 = sshll.u32 %s1965_s24, 3 }
   0xe   : > { %418 = vperm.xlu1 %1605, %v1753_v0   ;;  %397 = vperm.xlu0 %1604, %v1753_v0   ;;  %s316_s12 = scalar_lea.vmem %s1952_s0, %s1463_s9  ;;  %v1620_v17 = vld [vmem:[%s1955_s3] sm:$0xff]   ;;  %v1686_v19 = vmov 2   ;;  %s321_s28 = scalar_lea.vmem %s1953_s1, %s1464_s19  ;;  %v1621_v21 = vld [vmem:[%s1955_s3 + $0x8] sm:$0xff]   ;;  %v1687_v23 = vmov 3   ;;  %vm1689_vm2 = vmmov 0   ;;  %vm725_vm3 = vcmask 1043456  }
   0xf   : > { %v1777_v5 = vld [vmem:[%s316_s12] sm:$0xff]  ;;  %v1779_v6 = vld [vmem:[%s316_s12 + $0x8] sm:$0xff]  ;;  %v1792_v10 = vld [vmem:[%s316_s12 + $0x10] sm:$0xff]  ;;  %1500 = vmatprep.mubr.msk.bf16.mxu0 %vm461_vm1, %v1617_v15  ;;  %1506 = vmatprep.mubr.msk.bf16.mxu1 %vm341_vm0, %v1620_v17  ;;  %vm721_vm4 = vcmask 64512   ;;  %s329_s21 = scalar_lea.vmem %s1959_s7, %s1463_s9 }
  0x10   : > { %v342_v8 = vsel %vm341_vm0, %v1777_v5, 0.0  ;;  %v343_v9 = vsel %vm341_vm0, %v1779_v6, 0.0  ;;  %v345_v12 = vsel %vm341_vm0, %v1792_v10, 0.0  ;;  %v1797_v13 = vld [vmem:[%s316_s12 + $0x18] sm:$0xff]  ;;  %v1619_v20 = vld [vmem:[%s321_s28] sm:$0xff]  }
  0x11   : > { %v344_v11 = vadd.f32 %v343_v9, %v342_v8  ;;  %v347_v16 = vsel %vm341_vm0, %v1797_v13, 0.0  ;;  %1504 = vmatprep.subr.bf16.mxu1 %v1619_v20 }
  0x12   : > { %422 = vperm.xlu1 %1605, %v1760_v3   ;;  %402 = vperm.xlu0 %1604, %v1760_v3  }
  0x13   : > { %v346_v14 = vadd.f32 %v345_v12, %v344_v11  ;;  %1505 = vmatpush3.bf16.msra.mxu1 %v1619_v20 }
  0x14   : > { %1510 = vmatprep.subr.bf16.mxu1 %v1619_v20 }
  0x15   : > { %v348_v18 = vadd.f32 %v347_v16, %v346_v14 }
  0x16   : > { %1606 = vset.pattern.permute.xlu1 %v1685_v2  ;;  %387 = vperm.xlu0 %1604, %v1775_v4  }
  0x17   : > { %392 = vperm.xlu1 %1606, %v1784_v7   ;;  %v349_v22 = vrot.slane %v348_v18, 4  ;;  %1507 = vmatmul.mubr.msk.bf16.vlgmr.msra.gmra.mxu1 %vm341_vm0, %v1621_v21 }
  0x18   : > { %1511 = vmatpush3.bf16.msra.mxu1 %v1619_v20  ;;  %v1618_v20 = vld [vmem:[%s1954_s2 + $0x8] sm:$0xff]  }
  0x19   : > { %v350_v24 = vadd.f32 %v349_v22, %v348_v18 }
  0x1a   : > { %1607 = vset.pattern.permute.xlu0 %v1684_v1 }
  0x1b   : > { %1608 = vset.pattern.permute.xlu1 %v1684_v1  ;;  %410 = vperm.xlu0 %1607, %v1775_v4   ;;  %v351_v25 = vrot.slane %v350_v24, 2 }
  0x1c   : > { %414 = vperm.xlu1 %1608, %v1784_v7  }
  0x1d   : > { %v352_v26 = vadd.f32 %v351_v25, %v350_v24 }
  0x1f   : > { %1610 = vset.pattern.permute.xlu0 %v1686_v19  ;;  %v353_v27 = vrot.slane %v352_v26, 1 }
  0x20   : > { %1609 = vset.pattern.permute.xlu1 %v1686_v19  ;;  %440 = vperm.xlu0 %1610, %v1784_v7  }
  0x21   : > { %436 = vperm.xlu1 %1609, %v1775_v4   ;;  %v354_v28 = vadd.f32 %v353_v27, %v352_v26  ;;  %v1622_v27 = vld [vmem:[%s1956_s4] sm:$0xff]  }
  0x22   : > { %1512 = vmatprep.mubr.msk.bf16.mxu1 %vm341_vm0, %v1622_v27 }
  0x23   : > { %v356_v29 = vmul.f32 0.03125, %v354_v28  ;;  %v1623_v28 = vld [vmem:[%s1956_s4 + $0x8] sm:$0xff]  }
  0x24   : > { %1611 = vset.pattern.permute.xlu0 %v1687_v23  ;;  %1513 = vmatmul.mubr.msk.bf16.vlgmr.msra.gmra.mxu1 %vm341_vm0, %v1623_v28 }
  0x25   : > { %444 = vperm.xlu1 %1609, %v1753_v0   ;;  %522 = vperm.xlu0 %1611, %v1775_v4   ;;  %v357_v30 = vsub.f32 %v1777_v5, %v356_v29  ;;  %v358_v31 = vsub.f32 %v1779_v6, %v356_v29  ;;  %v359_v32 = vsub.f32 %v1792_v10, %v356_v29 }
  0x26   : > { %v360_v35 = vsub.f32 %v1797_v13, %v356_v29 }
  0x27   : > { %v361_v33 = vmul.f32 %v357_v30, %v357_v30  ;;  %v362_v34 = vmul.f32 %v358_v31, %v358_v31  ;;  %v363_v36 = vmul.f32 %v359_v32, %v359_v32 }
  0x28   : > { %v364_v40 = vmul.f32 %v360_v35, %v360_v35 }
  0x29   : > { %448 = vperm.xlu1 %1609, %v1760_v3   ;;  %534 = vperm.xlu0 %1611, %v1760_v3   ;;  %v365_v37 = vsel %vm341_vm0, %v361_v33, 0.0  ;;  %v366_v38 = vsel %vm341_vm0, %v362_v34, 0.0  ;;  %v368_v41 = vsel %vm341_vm0, %v363_v36, 0.0 }
  0x2a   : > { %v367_v39 = vadd.f32 %v366_v38, %v365_v37  ;;  %v370_v43 = vsel %vm341_vm0, %v364_v40, 0.0 }
  0x2c   : > { %v369_v42 = vadd.f32 %v368_v41, %v367_v39 }
  0x2d   : > { %1612 = vset.pattern.permute.xlu1 %v1687_v23 }
  0x2e   : > { %526 = vperm.xlu1 %1612, %v1784_v7   ;;  %v371_v44 = vadd.f32 %v370_v43, %v369_v42 }
  0x30   : > { %v372_v45 = vrot.slane %v371_v44, 4 }
  0x32   : > { %530 = vperm.xlu1 %1612, %v1753_v0   ;;  %v373_v46 = vadd.f32 %v372_v45, %v371_v44 }
  0x34   : > { %v374_v47 = vrot.slane %v373_v46, 2 }
  0x36   : > { %v375_v48 = vadd.f32 %v374_v47, %v373_v46 }
  0x38   : > { %v376_v49 = vrot.slane %v375_v48, 1 }
  0x3a   : > { %v377_v50 = vadd.f32 %v376_v49, %v375_v48 }
  0x3c   : > { %v378_v51 = vmul.f32 0.03125, %v377_v50 }
  0x3e   : > { %v379_v52 = vadd.f32 1e-05, %v378_v51 }
  0x40   : > { %1626 = vrsqrt.f32 %v379_v52 }
  0x4d   : > { %v1627_v53 = vpop.eup %1626 }
  0x4e   : > { %v383_v54 = vmul.f32 %v1627_v53, %v359_v32  ;;  %v384_v57 = vmul.f32 %v1627_v53, %v360_v35  ;;  %v381_v2 = vmul.f32 %v1627_v53, %v357_v30  ;;  %v382_v9 = vmul.f32 %v1627_v53, %v358_v31 }
  0x4f   : > { %v1688_v30 = vmov 0.0  }
  0x50   : > { %1522 = vmatprep.subr.bf16.mxu1 %v1688_v30  ;;  %1524 = vmatprep.mubr.msk.bf16.mxu1 %vm1689_vm2, %v1688_v30 }
  0x89   : > { %v419_v55 = vpop.permute.xlu1 %418  ;;  %v398_v56 = vpop.permute.xlu0 %397 }
  0x8a   : > { %v407_v58 = vmul.f32 %v398_v56, %v383_v54 }
  0x8c   : > { %v427_v62 = vadd.f32 %v419_v55, %v407_v58 }
  0x8d   : > { %v423_v59 = vpop.permute.xlu1 %422  ;;  %v403_v60 = vpop.permute.xlu0 %402 }
  0x8e   : > { %v408_v61 = vmul.f32 %v403_v60, %v384_v57 }
  0x90   : > { %v428_v63 = vadd.f32 %v423_v59, %v408_v61 }
  0x91   : > { %v388_v1 = vpop.permute.xlu0 %387 }
  0x92   : > { %v393_v8 = vpop.permute.xlu1 %392  ;;  %v430_v11 = vpack.c.bf16 %v428_v63, %v427_v62  ;;  %v405_v12 = vmul.f32 %v388_v1, %v381_v2 }
  0x93   : > { %v406_v14 = vmul.f32 %v393_v8, %v382_v9 }
  0x94   : > { %1496 = vmatprep.subr.bf16.mxu0 %v430_v11 }
  0x95   : > { %1497 = vmatpush3.bf16.msra.mxu0 %v430_v11 }
  0x96   : > { %v411_v15 = vpop.permute.xlu0 %410 }
  0x97   : > { %v425_v16 = vadd.f32 %v411_v15, %v405_v12  ;;  %v415_v17 = vpop.permute.xlu1 %414 }
  0x98   : > { %v426_v18 = vadd.f32 %v415_v17, %v406_v14 }
  0x9a   : > { %v429_v19 = vpack.c.bf16 %v426_v18, %v425_v16 }
  0x9b   : > { %v441_v24 = vpop.permute.xlu0 %440 }
  0x9c   : > { %1498 = vmatprep.subr.bf16.mxu0 %v429_v19  ;;  %v437_v21 = vpop.permute.xlu1 %436 }
  0x9d   : > { %1499 = vmatpush3.bf16.msra.mxu0 %v429_v19 }
  0x9e   : > { %1516 = vmatprep.subr.bf16.mxu0 %v1688_v30 }
  0xa0   : > { %1501 = vmatmul.mubr.msk.bf16.vlgmr.msra.gmra.mxu0 %vm461_vm1, %v1618_v20  ;;  %v445_v22 = vpop.permute.xlu1 %444  ;;  %v523_v29 = vpop.permute.xlu0 %522 }
  0xa1   : > { %1518 = vmatprep.mubr.msk.bf16.mxu0 %vm1689_vm2, %v1688_v30 }
  0xa4   : > { %v449_v23 = vpop.permute.xlu1 %448  ;;  %v535_v37 = vpop.permute.xlu0 %534 }
  0xa9   : > { %v527_v26 = vpop.permute.xlu1 %526 }
  0xad   : > { %v531_v34 = vpop.permute.xlu1 %530 }
  0xd7   : > { %v1508_v25 = vpop.f32.mrf.mxu1 }
  0xd8   : > { %v602_v36 = vadd.f32 %v1508_v25, %v531_v34 }
  0xd9   : > { %v593_v31 = vpop.f32.mrf.mxu1 }
  0xda   : > { %v594_v32 = vadd.f32 %v593_v31, %v523_v29  ;;  %v699_v41 = vpack.c.bf16 %v602_v36, %v602_v36 }
  0xdb   : > { %v1509_v33 = vpop.f32.mrf.mxu1 }
  0xdc   : > { %v697_v35 = vpack.c.bf16 %v594_v32, %v594_v32  ;;  %v605_v38 = vadd.f32 %v1509_v33, %v535_v37  ;;  %v853_v44 = vsel %vm725_vm3, %v699_v41, 0  ;;  %v1690_v37 = vmov 4  }
  0xdd   : > { %v596_v39 = vpop.f32.mrf.mxu1 }
  0xde   : > { %v727_v40 = vsel %vm725_vm3, %v697_v35, 0  ;;  %v597_v42 = vadd.f32 %v596_v39, %v527_v26  ;;  %v700_v43 = vpack.c.bf16 %v605_v38, %v605_v38 }
  0xdf   : > { %1517 = vmatpush3.bf16.msra.mxu0 %v727_v40 }
  0xe0   : > { %v698_v45 = vpack.c.bf16 %v597_v42, %v597_v42  ;;  %1528 = vmatprep.subr.bf16.mxu0 %v1688_v30  ;;  %v916_v46 = vsel %vm725_vm3, %v700_v43, 0 }
  0xe2   : > { %v790_v47 = vsel %vm725_vm3, %v698_v45, 0 }
  0xe3   : > { %1523 = vmatpush3.bf16.msra.mxu1 %v790_v47 }
  0xe4   : > { %1534 = vmatprep.subr.bf16.mxu1 %v1688_v30  ;;  %v1868_v1 = vpop.f32.mrf.mxu1 }
  0xe6   : > { %v1870_v2 = vpop.f32.mrf.mxu1 }
  0xe8   : > { %v1872_v8 = vpop.f32.mrf.mxu1 }
  0xea   : > { %v1875_v12 = vpop.f32.mrf.mxu1 }
 0x160   : > { %v1502_v48 = vpop.f32.mrf.mxu0 }
 0x161   : > { %v511_v56 = vadd.f32 %v1502_v48, %v445_v22 }
 0x162   : > { %v502_v49 = vpop.f32.mrf.mxu0 }
 0x163   : > { %v503_v50 = vadd.f32 %v502_v49, %v437_v21  ;;  %v695_v59 = vpack.c.bf16 %v511_v56, %v511_v56 }
 0x164   : > { %v1503_v51 = vpop.f32.mrf.mxu0 }
 0x165   : > { %v693_v52 = vpack.c.bf16 %v503_v50, %v503_v50  ;;  %v514_v53 = vadd.f32 %v1503_v51, %v449_v23 }
 0x166   : > { %v505_v54 = vpop.f32.mrf.mxu0 }
 0x167   : > { %v506_v55 = vadd.f32 %v505_v54, %v441_v24  ;;  %705 = vxpose.xlu1.c.b16.start.end [1/1] (short) (narrow) %v693_v52, 16  ;;  %v696_v57 = vpack.c.bf16 %v514_v53, %v514_v53 }
 0x169   : > { %v694_v58 = vpack.c.bf16 %v506_v55, %v506_v55 }
 0x16b   : > { %770 = vxpose.xlu0.c.b16.start.end [1/1] (short) (narrow) %v694_v58, 16  ;;  %896 = vxpose.xlu1.c.b16.start.end [1/1] (short) (narrow) %v696_v57, 16 }
 0x16f   : > { %833 = vxpose.xlu0.c.b16.start.end [1/1] (short) (narrow) %v695_v59, 16  ;;  %1614 = vset.pattern.permute.xlu1 %v1690_v37 }
 0x178   : > { %1613 = vset.pattern.permute.xlu0 %v1690_v37 }
 0x1c9   : > { %v713_v60 = vpop.trf.xlu1 }
 0x1ca   : > { %1519 = vmatmul.mubr.msk.bf16.vlgmr.msra.gmra.mxu0 %vm721_vm4, %v713_v60 }
 0x1cb   : > { %1529 = vmatpush3.bf16.msra.mxu0 %v853_v44  ;;  %1530 = vmatprep.mubr.msk.bf16.mxu0 %vm1689_vm2, %v1688_v30 }
 0x1cc   : > { %1540 = vmatprep.subr.bf16.mxu0 %v1688_v30 }
 0x1cd   : > { %v778_v61 = vpop.trf.xlu0  ;;  %v904_v63 = vpop.trf.xlu1 }
 0x1ce   : > { %1525 = vmatmul.mubr.msk.bf16.vlgmr.msra.gmra.mxu1 %vm721_vm4, %v778_v61 }
 0x1cf   : > { %1535 = vmatpush3.bf16.msra.mxu1 %v916_v46  ;;  %1536 = vmatprep.mubr.msk.bf16.mxu1 %vm1689_vm2, %v1688_v30 }
 0x1d0   : > { %1546 = vmatprep.subr.bf16.mxu1 %v1688_v30 }
 0x1d1   : > { %v841_v62 = vpop.trf.xlu0 }
 0x1d2   : > { %1531 = vmatmul.mubr.msk.bf16.vlgmr.msra.gmra.mxu0 %vm721_vm4, %v841_v62 }
 0x1d3   : > { %1542 = vmatprep.mubr.msk.bf16.mxu0 %vm1689_vm2, %v1688_v30 }
 0x1d6   : > { %1537 = vmatmul.mubr.msk.bf16.vlgmr.msra.gmra.mxu1 %vm721_vm4, %v904_v63 }
 0x1d7   : > { %1548 = vmatprep.mubr.msk.bf16.mxu1 %vm1689_vm2, %v1688_v30 }
 0x28a   : > { %v763_v9 = vpop.f32.mrf.mxu0 }
 0x28b   : > { %v959_v11 = vsel %vm721_vm4, %v763_v9, -inf }
 0x28c   : > { %960 = vmax.xlane.f32.xlu0 %v959_v11  ;;  %v1520_v14 = vpop.f32.mrf.mxu0 }
 0x28e   : > { %v766_v15 = vpop.f32.mrf.mxu0  ;;  %v826_v16 = vpop.f32.mrf.mxu1 }
 0x28f   : > { %v965_v17 = vsel %vm721_vm4, %v826_v16, -inf  ;;  %v962_v18 = vsel %vm721_vm4, %v766_v15, -inf }
 0x290   : > { %v1526_v19 = vpop.f32.mrf.mxu1  ;;  %966 = vmax.xlane.f32.xlu0 %v965_v17  ;;  %963 = vmax.xlane.f32.xlu1 %v962_v18  ;;  %v1521_v20 = vpop.f32.mrf.mxu0 }
 0x292   : > { %v829_v21 = vpop.f32.mrf.mxu1  ;;  %v889_v22 = vpop.f32.mrf.mxu0 }
 0x293   : > { %v968_v23 = vsel %vm721_vm4, %v829_v21, -inf  ;;  %v971_v24 = vsel %vm721_vm4, %v889_v22, -inf }
 0x294   : > { %v1527_v25 = vpop.f32.mrf.mxu1  ;;  %969 = vmax.xlane.f32.xlu1 %v968_v23  ;;  %972 = vmax.xlane.f32.xlu0 %v971_v24  ;;  %v1532_v26 = vpop.f32.mrf.mxu0 }
 0x296   : > { %v892_v27 = vpop.f32.mrf.mxu0  ;;  %v952_v28 = vpop.f32.mrf.mxu1 }
 0x297   : > { %v974_v29 = vsel %vm721_vm4, %v892_v27, -inf  ;;  %v977_v31 = vsel %vm721_vm4, %v952_v28, -inf }
 0x298   : > { %975 = vmax.xlane.f32.xlu1 %v974_v29  ;;  %v1533_v32 = vpop.f32.mrf.mxu0  ;;  %978 = vmax.xlane.f32.xlu0 %v977_v31  ;;  %v1538_v33 = vpop.f32.mrf.mxu1 }
 0x29a   : > { %v955_v34 = vpop.f32.mrf.mxu1 }
 0x29b   : > { %v980_v35 = vsel %vm721_vm4, %v955_v34, -inf }
 0x29c   : > { %981 = vmax.xlane.f32.xlu1 %v980_v35  ;;  %v1539_v36 = vpop.f32.mrf.mxu1 }
 0x315   : > { %v961_v38 = vpop.xlane.xlu0 %960 }
 0x316   : > { %v983_v39 = vsub.f32 %v763_v9, %v961_v38 }
 0x318   : > { %v991_v40 = vmul.f32 1.442695, %v983_v39 }
 0x319   : > { %v967_v41 = vpop.xlane.xlu0 %966  ;;  %v964_v42 = vpop.xlane.xlu1 %963 }
 0x31a   : > { %1628 = vpow2.f32 %v991_v40  ;;  %v985_v43 = vsub.f32 %v826_v16, %v967_v41  ;;  %v984_v44 = vsub.f32 %v766_v15, %v964_v42 }
 0x31c   : > { %v995_v45 = vmul.f32 1.442695, %v985_v43  ;;  %v993_v46 = vmul.f32 1.442695, %v984_v44 }
 0x31d   : > { %v973_v47 = vpop.xlane.xlu0 %972  ;;  %v970_v48 = vpop.xlane.xlu1 %969 }
 0x31e   : > { %1630 = vpow2.f32 %v995_v45  ;;  %v987_v49 = vsub.f32 %v889_v22, %v973_v47  ;;  %v986_v50 = vsub.f32 %v829_v21, %v970_v48 }
 0x31f   : > { %1632 = vpow2.f32 %v993_v46 }
 0x320   : > { %v999_v51 = vmul.f32 1.442695, %v987_v49  ;;  %v997_v52 = vmul.f32 1.442695, %v986_v50 }
 0x321   : > { %v979_v53 = vpop.xlane.xlu0 %978  ;;  %v976_v54 = vpop.xlane.xlu1 %975 }
 0x322   : > { %1634 = vpow2.f32 %v999_v51  ;;  %v989_v55 = vsub.f32 %v952_v28, %v979_v53  ;;  %v988_v56 = vsub.f32 %v892_v27, %v976_v54 }
 0x323   : > { %1636 = vpow2.f32 %v997_v52 }
 0x324   : > { %v1003_v57 = vmul.f32 1.442695, %v989_v55  ;;  %v1001_v58 = vmul.f32 1.442695, %v988_v56 }
 0x325   : > { %v982_v21 = vpop.xlane.xlu1 %981 }
 0x326   : > { %1638 = vpow2.f32 %v1003_v57  ;;  %v990_v22 = vsub.f32 %v955_v34, %v982_v21 }
 0x327   : > { %v1629_v59 = vpop.eup %1628  ;;  %1640 = vpow2.f32 %v1001_v58 }
 0x328   : > { %v1007_v60 = vsel %vm721_vm4, %v1629_v59, 0.0  ;;  %v1005_v23 = vmul.f32 1.442695, %v990_v22 }
 0x329   : > { %1008 = vadd.xlane.f32.xlu0 %v1007_v60 }
 0x32a   : > { %1642 = vpow2.f32 %v1005_v23 }
 0x32b   : > { %v1631_v61 = vpop.eup %1630 }
 0x32c   : > { %v1633_v62 = vpop.eup %1632  ;;  %v1013_v63 = vsel %vm721_vm4, %v1631_v61, 0.0 }
 0x32d   : > { %1014 = vadd.xlane.f32.xlu0 %v1013_v63  ;;  %v1010_v9 = vsel %vm721_vm4, %v1633_v62, 0.0 }
 0x32e   : > { %1011 = vadd.xlane.f32.xlu1 %v1010_v9 }
 0x32f   : > { %v1635_v11 = vpop.eup %1634 }
 0x330   : > { %v1637_v14 = vpop.eup %1636  ;;  %v1019_v15 = vsel %vm721_vm4, %v1635_v11, 0.0 }
 0x331   : > { %1020 = vadd.xlane.f32.xlu0 %v1019_v15  ;;  %v1016_v16 = vsel %vm721_vm4, %v1637_v14, 0.0 }
 0x332   : > { %1017 = vadd.xlane.f32.xlu1 %v1016_v16  ;;  %v1691_v16 = vmov 5  }
 0x333   : > { %v1889_v17 = vpop.eup %1638 }
 0x334   : > { %v1641_v18 = vpop.eup %1640  ;;  %v1025_v19 = vsel %vm721_vm4, %v1889_v17, 0.0 }
 0x335   : > { %1026 = vadd.xlane.f32.xlu0 %v1025_v19  ;;  %v1022_v20 = vsel %vm721_vm4, %v1641_v18, 0.0 }
 0x336   : > { %1023 = vadd.xlane.f32.xlu1 %v1022_v20 }
 0x337   : > { %v1643_v24 = vpop.eup %1642 }
 0x338   : > { %v1028_v25 = vsel %vm721_vm4, %v1643_v24, 0.0 }
 0x347   : > { %617 = vperm.xlu1 %1614, %v1784_v7  }
 0x34b   : > { %621 = vperm.xlu1 %1614, %v1753_v0   ;;  %613 = vperm.xlu0 %1613, %v1775_v4  }
 0x34f   : > { %1616 = vset.pattern.permute.xlu0 %v1691_v16 }
 0x36f   : > { %1029 = vadd.xlane.f32.xlu1 %v1028_v25 }
 0x380   : > { %625 = vperm.xlu1 %1614, %v1760_v3  }
 0x384   : > { %1615 = vset.pattern.permute.xlu1 %v1691_v16 }
 0x385   : > { %1242 = vperm.xlu1 %1615, %v1775_v4  }
 0x389   : > { %1246 = vperm.xlu1 %1615, %v1784_v7  }
 0x38d   : > { %1250 = vperm.xlu1 %1615, %v1753_v0  }
 0x391   : > { %1254 = vperm.xlu1 %1615, %v1760_v3  }
 0x3b2   : > { %v1009_v26 = vpop.xlane.xlu0 %1008 }
 0x3b3   : > { %1644 = vrcp.f32 %v1009_v26 }
 0x3b6   : > { %v1015_v27 = vpop.xlane.xlu0 %1014 }
 0x3b7   : > { %v1012_v28 = vpop.xlane.xlu1 %1011 }
 0x3b8   : > { %1646 = vrcp.f32 %v1012_v28 }
 0x3b9   : > { %1648 = vrcp.f32 %v1015_v27 }
 0x3ba   : > { %v1021_v29 = vpop.xlane.xlu0 %1020 }
 0x3bb   : > { %v1018_v31 = vpop.xlane.xlu1 %1017 }
 0x3bc   : > { %1650 = vrcp.f32 %v1018_v31  ;;  %v1625_v31 = vld [vmem:[%s1957_s5 + $0x8] sm:$0xff]  }
 0x3bd   : > { %1652 = vrcp.f32 %v1021_v29 }
 0x3be   : > { %v1027_v35 = vpop.xlane.xlu0 %1026 }
 0x3bf   : > { %v1024_v32 = vpop.xlane.xlu1 %1023 }
 0x3c0   : > { %1654 = vrcp.f32 %v1024_v32  ;;  %v1645_v33 = vpop.eup %1644 }
 0x3c1   : > { %v1039_v36 = vmul.f32 %v1645_v33, %v1629_v59  ;;  %1656 = vrcp.f32 %v1027_v35 }
 0x3c3   : > { %v618_v46 = vpop.permute.xlu1 %617 }
 0x3c4   : > { %v682_v53 = vadd.f32 %v1875_v12, %v618_v46 }
 0x3c5   : > { %v1647_v34 = vpop.eup %1646 }
 0x3c6   : > { %v1040_v37 = vmul.f32 %v1647_v34, %v1633_v62  ;;  %v1649_v38 = vpop.eup %1648  ;;  %v614_v41 = vpop.permute.xlu0 %613  ;;  %v702_v57 = vpack.c.bf16 %v682_v53, %v682_v53 }
 0x3c7   : > { %v1041_v43 = vmul.f32 %v1649_v38, %v1631_v61  ;;  %v679_v47 = vadd.f32 %v1870_v2, %v614_v41  ;;  %v622_v56 = vpop.permute.xlu1 %621 }
 0x3c8   : > { %v1047_v39 = vpack.c.bf16 %v1040_v37, %v1039_v36  ;;  %v687_v58 = vadd.f32 %v1868_v1, %v622_v56 }
 0x3c9   : > { %v1651_v40 = vpop.eup %1650  ;;  %v701_v54 = vpack.c.bf16 %v679_v47, %v679_v47 }
 0x3ca   : > { %v1055_v42 = vsel %vm721_vm4, %v1047_v39, 0  ;;  %v1042_v44 = vmul.f32 %v1651_v40, %v1637_v14  ;;  %v1653_v45 = vpop.eup %1652  ;;  %v703_v12 = vpack.c.bf16 %v687_v58, %v687_v58 }
 0x3cb   : > { %1541 = vmatpush3.bf16.xpose.msra.mxu0 %v1055_v42  ;;  %v1043_v51 = vmul.f32 %v1653_v45, %v1635_v11 }
 0x3cc   : > { %v1048_v48 = vpack.c.bf16 %v1042_v44, %v1041_v43  ;;  %1552 = vmatprep.subr.bf16.mxu0 %v1688_v30 }
 0x3cd   : > { %v1655_v49 = vpop.eup %1654 }
 0x3ce   : > { %v1101_v50 = vsel %vm721_vm4, %v1048_v48, 0  ;;  %v1044_v52 = vmul.f32 %v1655_v49, %v1641_v18  ;;  %v1657_v60 = vpop.eup %1656 }
 0x3cf   : > { %1547 = vmatpush3.bf16.xpose.msra.mxu1 %v1101_v50  ;;  %v1045_v62 = vmul.f32 %v1657_v60, %v1889_v17 }
 0x3d0   : > { %v1049_v55 = vpack.c.bf16 %v1044_v52, %v1043_v51  ;;  %1558 = vmatprep.subr.bf16.mxu1 %v1688_v30 }
 0x3d2   : > { %1543 = vmatmul.mubr.msk.bf16.vlgmr.msra.gmra.mxu0 %vm721_vm4, %v701_v54  ;;  %v1147_v2 = vsel %vm721_vm4, %v1049_v55, 0 }
 0x3d3   : > { %1553 = vmatpush3.bf16.xpose.msra.mxu0 %v1147_v2  ;;  %1554 = vmatprep.mubr.msk.bf16.mxu0 %vm1689_vm2, %v1688_v30 }
 0x3d6   : > { %1549 = vmatmul.mubr.msk.bf16.vlgmr.msra.gmra.mxu1 %vm721_vm4, %v702_v57 }
 0x3d7   : > { %1560 = vmatprep.mubr.msk.bf16.mxu1 %vm1689_vm2, %v1688_v30  ;;  %v1624_v30 = vld [vmem:[%s1957_s5] sm:$0xff]  }
 0x3da   : > { %1555 = vmatmul.mubr.msk.bf16.vlgmr.msra.gmra.mxu0 %vm721_vm4, %v703_v12 }
 0x3db   : > { %1568 = vmatprep.mubr.msk.bf16.mxu0 %vm461_vm1, %v1624_v30 }
 0x3f8   : > { %v1030_v59 = vpop.xlane.xlu1 %1029 }
 0x3f9   : > { %1658 = vrcp.f32 %v1030_v59 }
 0x3fc   : > { %v626_v11 = vpop.permute.xlu1 %625 }
 0x3fd   : > { %v690_v14 = vadd.f32 %v1872_v8, %v626_v11 }
 0x3ff   : > { %v704_v15 = vpack.c.bf16 %v690_v14, %v690_v14 }
 0x400   : > { %v1243_v32 = vpop.permute.xlu1 %1242 }
 0x404   : > { %v1247_v33 = vpop.permute.xlu1 %1246 }
 0x406   : > { %v1659_v61 = vpop.eup %1658 }
 0x407   : > { %v1046_v63 = vmul.f32 %v1659_v61, %v1643_v24 }
 0x408   : > { %v1251_v34 = vpop.permute.xlu1 %1250 }
 0x409   : > { %v1050_v9 = vpack.c.bf16 %v1046_v63, %v1045_v62 }
 0x40b   : > { %v1193_v1 = vsel %vm721_vm4, %v1050_v9, 0 }
 0x40c   : > { %1559 = vmatpush3.bf16.xpose.msra.mxu1 %v1193_v1  ;;  %v1255_v40 = vpop.permute.xlu1 %1254 }
 0x413   : > { %1561 = vmatmul.mubr.msk.bf16.vlgmr.msra.gmra.mxu1 %vm721_vm4, %v704_v15 }
 0x492   : > { %v1091_v8 = vpop.f32.mrf.mxu0 }
 0x494   : > { %v1544_v17 = vpop.f32.mrf.mxu0 }
 0x496   : > { %v1094_v18 = vpop.f32.mrf.mxu0  ;;  %v1137_v19 = vpop.f32.mrf.mxu1 }
 0x497   : > { %v1235_v29 = vpack.c.bf16 %v1137_v19, %v1091_v8 }
 0x498   : > { %v1545_v20 = vpop.f32.mrf.mxu0  ;;  %v1550_v21 = vpop.f32.mrf.mxu1 }
 0x49a   : > { %v1140_v22 = vpop.f32.mrf.mxu1  ;;  %v1183_v23 = vpop.f32.mrf.mxu0 }
 0x49c   : > { %v1551_v24 = vpop.f32.mrf.mxu1  ;;  %v1556_v25 = vpop.f32.mrf.mxu0 }
 0x49e   : > { %v1186_v26 = vpop.f32.mrf.mxu0 }
 0x4a0   : > { %v1557_v27 = vpop.f32.mrf.mxu0 }
 0x4d3   : > { %v1229_v28 = vpop.f32.mrf.mxu1 }
 0x4d4   : > { %v1236_v4 = vpack.c.bf16 %v1229_v28, %v1183_v23 }
 0x4d5   : > { %v1562_v7 = vpop.f32.mrf.mxu1 }
 0x4d6   : > { %1564 = vmatprep.subr.bf16.mxu0 %v1236_v4 }
 0x4d7   : > { %v1232_v0 = vpop.f32.mrf.mxu1  ;;  %1565 = vmatpush3.bf16.msra.mxu0 %v1236_v4 }
 0x4d8   : > { %1566 = vmatprep.subr.bf16.mxu0 %v1235_v29 }
 0x4d9   : > { %v1563_v3 = vpop.f32.mrf.mxu1 }
 0x4db   : > { %1567 = vmatpush3.bf16.msra.mxu0 %v1235_v29 }
 0x4de   : > { %1569 = vmatmul.mubr.msk.bf16.vlgmr.msra.gmra.mxu0 %vm461_vm1, %v1625_v31 }
 0x59e   : > { %v1570_v35 = vpop.f32.mrf.mxu0 }
 0x59f   : > { %v1316_v36 = vadd.f32 %v1570_v35, %v1251_v34 }
 0x5a0   : > { %v1307_v37 = vpop.f32.mrf.mxu0 }
 0x5a1   : > { %v1324_v38 = vadd.f32 %v1316_v36, %v1792_v10  ;;  %v1308_v39 = vadd.f32 %v1307_v37, %v1243_v32 }
 0x5a2   : > { %v1571_v41 = vpop.f32.mrf.mxu0 }
 0x5a3   : > { %1328 = vst.msk [vmem:[%s329_s21 + $0x10] sm:$0xff] %vm341_vm0, %v1324_v38  ;;  %v1322_v42 = vadd.f32 %v1308_v39, %v1777_v5  ;;  %v1319_v43 = vadd.f32 %v1571_v41, %v1255_v40 }
 0x5a4   : > { %v1310_v44 = vpop.f32.mrf.mxu0 }
 0x5a5   : > { %1326 = vst.msk [vmem:[%s329_s21] sm:$0xff] %vm341_vm0, %v1322_v42  ;;  %v1325_v45 = vadd.f32 %v1319_v43, %v1797_v13  ;;  %v1311_v46 = vadd.f32 %v1310_v44, %v1247_v33 }
 0x5a7   : > { %1329 = vst.msk [vmem:[%s329_s21 + $0x18] sm:$0xff] %vm341_vm0, %v1325_v45  ;;  %v1323_v47 = vadd.f32 %v1311_v46, %v1779_v6 }
 0x5a9   : > { %1327 = vst.msk [vmem:[%s329_s21 + $0x8] sm:$0xff] %vm341_vm0, %v1323_v47 }
 0x5aa PF: > { %s17_s26 = sadd.s32 1, %s1682_s26   ;;  %s1960_s24 = smov %s1678_s25 }
 0x5ab   : > { %p14_p5 = scmp.ge.s32.totalorder %s17_s26, 4   ;;  %s1961_s25 = smov %s1963_s27 }
 0x5ad   :  { %16 = sbr.rel (!%p14_p5) target bundleno = 2 (0x2), region = 81 }

// kernel: tpu_custom_call.1
= control target key start
LH: loop header
LB: loop body
LE: loop exit
PB: predicated region body
PF: predicated region fallthrough
CT: control target
= control target key end

     0   :  { %s1732_s24 = smov 0   ;;  %s1734_s25 = smov 0   ;;  %s1952_s0 = inlined_call_operand.vmem [shape: f32[2,32,16], index: 0, kind: input, shape index: {}]   ;;  %s1953_s1 = inlined_call_operand.vmem [shape: bf16[2,16,8], index: 1, kind: input, shape index: {}]   ;;  %s1954_s2 = inlined_call_operand.vmem [shape: bf16[32,32], index: 2, kind: input, shape index: {}]   ;;  %s1955_s3 = inlined_call_operand.vmem [shape: bf16[32,16], index: 3, kind: input, shape index: {}]   ;;  %s1956_s4 = inlined_call_operand.vmem [shape: bf16[32,16], index: 4, kind: input, shape index: {}]   ;;  %s1957_s5 = inlined_call_operand.vmem [shape: bf16[32,32], index: 5, kind: input, shape index: {}]   ;;  %s1958_s6 = inlined_call_operand.vmem [shape: f32[32,8], index: 6, kind: input, shape index: {}]   ;;  %s1959_s7 = inlined_call_operand.vmem [shape: f32[2,32,16], index: 7, kind: output, shape index: {}]  }
   0x1   :  { %s1736_s26 = smov 0  }
   0x2 LB: > { %s29_s27 = sadd.s32 1, %s1678_s25  ;;  %p1429_p0 = scmp.ge.s32.totalorder %s1682_s26, 1  ;;  %s1682_s26 = sphi %s1736_s26, %s17_s26   ;;  %s1678_s25 = sphi %s1734_s25, %s1961_s25   ;;  %s1674_s24 = sphi %s1732_s24, %s1960_s24  }
   0x3   : > { %p31_p1 = scmp.ge.s32.totalorder %s29_s27, 2  ;;  %p266_p2 = scmp.lt.s32.totalorder %s1682_s26, 3 }
   0x5   : > { %s1963_s27 = smov (%p31_p1, %s29_s27), 0  ;;  %p267_p3 = pnand %p1429_p0, %p266_p2 }
   0x6   : > { %p309_p4 = scmp.lt.s32.totalorder (!%p267_p3), %s1674_s24, 1 }
   0x7   : > { %270 = sbr.rel (%p267_p3) target bundleno = 1450 (0x5aa), region = 48 }
   0xc   : > { %v1753_v0 = vld [vmem:[%s1958_s6 + $0x10] sm:$0xff]  ;;  %v1684_v1 = vmov 1   ;;  %v1685_v2 = vmov 0   ;;  %v1760_v3 = vld [vmem:[%s1958_s6 + $0x18] sm:$0xff]  ;;  %s1965_s24 = smov (!%p309_p4, %s1674_s24), 1  ;;  %v1775_v4 = vld [vmem:[%s1958_s6] sm:$0xff] }
   0xd   : > { %1605 = vset.pattern.permute.xlu1 %v1684_v1  ;;  %1604 = vset.pattern.permute.xlu0 %v1685_v2  ;;  %s1463_s9 = sshll.u32 %s1965_s24, 5  ;;  %vm341_vm0 = vcmask 130048   ;;  %v1784_v7 = vld [vmem:[%s1958_s6 + $0x8] sm:$0xff]  ;;  %v1617_v15 = vld [vmem:[%s1954_s2] sm:$0xff]   ;;  %vm461_vm1 = vcmask 261120   ;;  %s1464_s19 = sshll.u32 %s1965_s24, 3 }
   0xe   : > { %418 = vperm.xlu1 %1605, %v1753_v0   ;;  %397 = vperm.xlu0 %1604, %v1753_v0   ;;  %s316_s12 = scalar_lea.vmem %s1952_s0, %s1463_s9  ;;  %v1620_v17 = vld [vmem:[%s1955_s3] sm:$0xff]   ;;  %v1686_v19 = vmov 2   ;;  %s321_s28 = scalar_lea.vmem %s1953_s1, %s1464_s19  ;;  %v1621_v21 = vld [vmem:[%s1955_s3 + $0x8] sm:$0xff]   ;;  %v1687_v23 = vmov 3   ;;  %vm1689_vm2 = vmmov 0   ;;  %vm773_vm3 = vcmask 1043456  }
   0xf   : > { %v1777_v5 = vld [vmem:[%s316_s12] sm:$0xff]  ;;  %v1779_v6 = vld [vmem:[%s316_s12 + $0x8] sm:$0xff]  ;;  %v1792_v10 = vld [vmem:[%s316_s12 + $0x10] sm:$0xff]  ;;  %1500 = vmatprep.mubr.msk.bf16.mxu0 %vm461_vm1, %v1617_v15  ;;  %1506 = vmatprep.mubr.msk.bf16.mxu1 %vm341_vm0, %v1620_v17  ;;  %vm769_vm4 = vcmask 64512   ;;  %s329_s21 = scalar_lea.vmem %s1959_s7, %s1463_s9 }
  0x10   : > { %v342_v8 = vsel %vm341_vm0, %v1777_v5, 0.0  ;;  %v343_v9 = vsel %vm341_vm0, %v1779_v6, 0.0  ;;  %v345_v12 = vsel %vm341_vm0, %v1792_v10, 0.0  ;;  %v1797_v13 = vld [vmem:[%s316_s12 + $0x18] sm:$0xff]  ;;  %v1619_v20 = vld [vmem:[%s321_s28] sm:$0xff]  }
  0x11   : > { %v344_v11 = vadd.f32 %v343_v9, %v342_v8  ;;  %v347_v16 = vsel %vm341_vm0, %v1797_v13, 0.0  ;;  %1504 = vmatprep.subr.bf16.mxu1 %v1619_v20 }
  0x12   : > { %422 = vperm.xlu1 %1605, %v1760_v3   ;;  %402 = vperm.xlu0 %1604, %v1760_v3  }
  0x13   : > { %v346_v14 = vadd.f32 %v345_v12, %v344_v11  ;;  %1505 = vmatpush3.bf16.msra.mxu1 %v1619_v20 }
  0x14   : > { %1510 = vmatprep.subr.bf16.mxu1 %v1619_v20 }
  0x15   : > { %v348_v18 = vadd.f32 %v347_v16, %v346_v14 }
  0x16   : > { %1606 = vset.pattern.permute.xlu1 %v1685_v2  ;;  %387 = vperm.xlu0 %1604, %v1775_v4  }
  0x17   : > { %392 = vperm.xlu1 %1606, %v1784_v7   ;;  %v349_v22 = vrot.slane %v348_v18, 4  ;;  %1507 = vmatmul.mubr.msk.bf16.vlgmr.msra.gmra.mxu1 %vm341_vm0, %v1621_v21 }
  0x18   : > { %1511 = vmatpush3.bf16.msra.mxu1 %v1619_v20  ;;  %v1618_v20 = vld [vmem:[%s1954_s2 + $0x8] sm:$0xff]  }
  0x19   : > { %v350_v24 = vadd.f32 %v349_v22, %v348_v18 }
  0x1a   : > { %1607 = vset.pattern.permute.xlu0 %v1684_v1 }
  0x1b   : > { %1608 = vset.pattern.permute.xlu1 %v1684_v1  ;;  %410 = vperm.xlu0 %1607, %v1775_v4   ;;  %v351_v25 = vrot.slane %v350_v24, 2 }
  0x1c   : > { %414 = vperm.xlu1 %1608, %v1784_v7  }
  0x1d   : > { %v352_v26 = vadd.f32 %v351_v25, %v350_v24 }
  0x1f   : > { %1610 = vset.pattern.permute.xlu0 %v1686_v19  ;;  %v353_v27 = vrot.slane %v352_v26, 1 }
  0x20   : > { %1609 = vset.pattern.permute.xlu1 %v1686_v19  ;;  %440 = vperm.xlu0 %1610, %v1784_v7  }
  0x21   : > { %436 = vperm.xlu1 %1609, %v1775_v4   ;;  %v354_v28 = vadd.f32 %v353_v27, %v352_v26  ;;  %v1622_v27 = vld [vmem:[%s1956_s4] sm:$0xff]  }
  0x22   : > { %1512 = vmatprep.mubr.msk.bf16.mxu1 %vm341_vm0, %v1622_v27 }
  0x23   : > { %v356_v29 = vmul.f32 0.03125, %v354_v28  ;;  %v1623_v28 = vld [vmem:[%s1956_s4 + $0x8] sm:$0xff]  }
  0x24   : > { %1611 = vset.pattern.permute.xlu0 %v1687_v23  ;;  %1513 = vmatmul.mubr.msk.bf16.vlgmr.msra.gmra.mxu1 %vm341_vm0, %v1623_v28 }
  0x25   : > { %444 = vperm.xlu1 %1609, %v1753_v0   ;;  %522 = vperm.xlu0 %1611, %v1775_v4   ;;  %v357_v30 = vsub.f32 %v1777_v5, %v356_v29  ;;  %v358_v31 = vsub.f32 %v1779_v6, %v356_v29  ;;  %v359_v32 = vsub.f32 %v1792_v10, %v356_v29 }
  0x26   : > { %v360_v35 = vsub.f32 %v1797_v13, %v356_v29 }
  0x27   : > { %v361_v33 = vmul.f32 %v357_v30, %v357_v30  ;;  %v362_v34 = vmul.f32 %v358_v31, %v358_v31  ;;  %v363_v36 = vmul.f32 %v359_v32, %v359_v32 }
  0x28   : > { %v364_v40 = vmul.f32 %v360_v35, %v360_v35 }
  0x29   : > { %448 = vperm.xlu1 %1609, %v1760_v3   ;;  %534 = vperm.xlu0 %1611, %v1760_v3   ;;  %v365_v37 = vsel %vm341_vm0, %v361_v33, 0.0  ;;  %v366_v38 = vsel %vm341_vm0, %v362_v34, 0.0  ;;  %v368_v41 = vsel %vm341_vm0, %v363_v36, 0.0 }
  0x2a   : > { %v367_v39 = vadd.f32 %v366_v38, %v365_v37  ;;  %v370_v43 = vsel %vm341_vm0, %v364_v40, 0.0 }
  0x2c   : > { %v369_v42 = vadd.f32 %v368_v41, %v367_v39 }
  0x2d   : > { %1612 = vset.pattern.permute.xlu1 %v1687_v23 }
  0x2e   : > { %526 = vperm.xlu1 %1612, %v1784_v7   ;;  %v371_v44 = vadd.f32 %v370_v43, %v369_v42 }
  0x30   : > { %v372_v45 = vrot.slane %v371_v44, 4 }
  0x32   : > { %530 = vperm.xlu1 %1612, %v1753_v0   ;;  %v373_v46 = vadd.f32 %v372_v45, %v371_v44 }
  0x34   : > { %v374_v47 = vrot.slane %v373_v46, 2 }
  0x36   : > { %v375_v48 = vadd.f32 %v374_v47, %v373_v46 }
  0x38   : > { %v376_v49 = vrot.slane %v375_v48, 1 }
  0x3a   : > { %v377_v50 = vadd.f32 %v376_v49, %v375_v48 }
  0x3c   : > { %v378_v51 = vmul.f32 0.03125, %v377_v50 }
  0x3e   : > { %v379_v52 = vadd.f32 1e-05, %v378_v51 }
  0x40   : > { %1626 = vrsqrt.f32 %v379_v52 }
  0x4d   : > { %v1627_v53 = vpop.eup %1626 }
  0x4e   : > { %v383_v54 = vmul.f32 %v1627_v53, %v359_v32  ;;  %v384_v57 = vmul.f32 %v1627_v53, %v360_v35  ;;  %v381_v2 = vmul.f32 %v1627_v53, %v357_v30  ;;  %v382_v9 = vmul.f32 %v1627_v53, %v358_v31 }
  0x4f   : > { %v1688_v30 = vmov 0.0  }
  0x50   : > { %1522 = vmatprep.subr.bf16.mxu1 %v1688_v30  ;;  %1524 = vmatprep.mubr.msk.bf16.mxu1 %vm1689_vm2, %v1688_v30 }
  0x89   : > { %v419_v55 = vpop.permute.xlu1 %418  ;;  %v398_v56 = vpop.permute.xlu0 %397 }
  0x8a   : > { %v407_v58 = vmul.f32 %v398_v56, %v383_v54 }
  0x8c   : > { %v427_v62 = vadd.f32 %v419_v55, %v407_v58 }
  0x8d   : > { %v423_v59 = vpop.permute.xlu1 %422  ;;  %v403_v60 = vpop.permute.xlu0 %402 }
  0x8e   : > { %v408_v61 = vmul.f32 %v403_v60, %v384_v57 }
  0x90   : > { %v428_v63 = vadd.f32 %v423_v59, %v408_v61 }
  0x91   : > { %v388_v1 = vpop.permute.xlu0 %387 }
  0x92   : > { %v393_v8 = vpop.permute.xlu1 %392  ;;  %v430_v11 = vpack.c.bf16 %v428_v63, %v427_v62  ;;  %v405_v12 = vmul.f32 %v388_v1, %v381_v2 }
  0x93   : > { %v406_v14 = vmul.f32 %v393_v8, %v382_v9 }
  0x94   : > { %1496 = vmatprep.subr.bf16.mxu0 %v430_v11 }
  0x95   : > { %1497 = vmatpush3.bf16.msra.mxu0 %v430_v11 }
  0x96   : > { %v411_v15 = vpop.permute.xlu0 %410 }
  0x97   : > { %v425_v16 = vadd.f32 %v411_v15, %v405_v12  ;;  %v415_v17 = vpop.permute.xlu1 %414 }
  0x98   : > { %v426_v18 = vadd.f32 %v415_v17, %v406_v14 }
  0x9a   : > { %v429_v19 = vpack.c.bf16 %v426_v18, %v425_v16 }
  0x9b   : > { %v441_v24 = vpop.permute.xlu0 %440 }
  0x9c   : > { %1498 = vmatprep.subr.bf16.mxu0 %v429_v19  ;;  %v437_v21 = vpop.permute.xlu1 %436 }
  0x9d   : > { %1499 = vmatpush3.bf16.msra.mxu0 %v429_v19 }
  0x9e   : > { %1516 = vmatprep.subr.bf16.mxu0 %v1688_v30 }
  0xa0   : > { %1501 = vmatmul.mubr.msk.bf16.vlgmr.msra.gmra.mxu0 %vm461_vm1, %v1618_v20  ;;  %v445_v22 = vpop.permute.xlu1 %444  ;;  %v523_v29 = vpop.permute.xlu0 %522 }
  0xa1   : > { %1518 = vmatprep.mubr.msk.bf16.mxu0 %vm1689_vm2, %v1688_v30 }
  0xa4   : > { %v449_v23 = vpop.permute.xlu1 %448  ;;  %v535_v37 = vpop.permute.xlu0 %534 }
  0xa9   : > { %v527_v26 = vpop.permute.xlu1 %526 }
  0xad   : > { %v531_v34 = vpop.permute.xlu1 %530 }
  0xd7   : > { %v1508_v25 = vpop.f32.mrf.mxu1 }
  0xd8   : > { %v602_v36 = vadd.f32 %v1508_v25, %v531_v34 }
  0xd9   : > { %v593_v31 = vpop.f32.mrf.mxu1 }
  0xda   : > { %v594_v32 = vadd.f32 %v593_v31, %v523_v29  ;;  %v699_v41 = vpack.c.bf16 %v602_v36, %v602_v36 }
  0xdb   : > { %v1509_v33 = vpop.f32.mrf.mxu1 }
  0xdc   : > { %v697_v35 = vpack.c.bf16 %v594_v32, %v594_v32  ;;  %v605_v38 = vadd.f32 %v1509_v33, %v535_v37  ;;  %v869_v44 = vsel %vm773_vm3, %v699_v41, 0  ;;  %v1690_v37 = vmov 4  }
  0xdd   : > { %v596_v39 = vpop.f32.mrf.mxu1 }
  0xde   : > { %v775_v40 = vsel %vm773_vm3, %v697_v35, 0  ;;  %v597_v42 = vadd.f32 %v596_v39, %v527_v26  ;;  %v700_v43 = vpack.c.bf16 %v605_v38, %v605_v38 }
  0xdf   : > { %1517 = vmatpush3.bf16.msra.mxu0 %v775_v40 }
  0xe0   : > { %v698_v45 = vpack.c.bf16 %v597_v42, %v597_v42  ;;  %1528 = vmatprep.subr.bf16.mxu0 %v1688_v30  ;;  %v916_v46 = vsel %vm773_vm3, %v700_v43, 0 }
  0xe2   : > { %v822_v47 = vsel %vm773_vm3, %v698_v45, 0 }
  0xe3   : > { %1523 = vmatpush3.bf16.msra.mxu1 %v822_v47 }
  0xe4   : > { %1534 = vmatprep.subr.bf16.mxu1 %v1688_v30  ;;  %v1868_v1 = vpop.f32.mrf.mxu1 }
  0xe6   : > { %v1870_v2 = vpop.f32.mrf.mxu1 }
  0xe8   : > { %v1872_v8 = vpop.f32.mrf.mxu1 }
  0xea   : > { %v1875_v12 = vpop.f32.mrf.mxu1 }
 0x160   : > { %v1502_v48 = vpop.f32.mrf.mxu0 }
 0x161   : > { %v511_v56 = vadd.f32 %v1502_v48, %v445_v22 }
 0x162   : > { %v502_v49 = vpop.f32.mrf.mxu0 }
 0x163   : > { %v503_v50 = vadd.f32 %v502_v49, %v437_v21  ;;  %v695_v59 = vpack.c.bf16 %v511_v56, %v511_v56 }
 0x164   : > { %v1503_v51 = vpop.f32.mrf.mxu0 }
 0x165   : > { %v693_v52 = vpack.c.bf16 %v503_v50, %v503_v50  ;;  %v514_v53 = vadd.f32 %v1503_v51, %v449_v23 }
 0x166   : > { %v505_v54 = vpop.f32.mrf.mxu0 }
 0x167   : > { %v506_v55 = vadd.f32 %v505_v54, %v441_v24  ;;  %705 = vxpose.xlu1.c.b16.start.end [1/1] (short) (narrow) %v693_v52, 16  ;;  %v696_v57 = vpack.c.bf16 %v514_v53, %v514_v53 }
 0x169   : > { %v694_v58 = vpack.c.bf16 %v506_v55, %v506_v55 }
 0x16b   : > { %721 = vxpose.xlu0.c.b16.start.end [1/1] (short) (narrow) %v694_v58, 16  ;;  %753 = vxpose.xlu1.c.b16.start.end [1/1] (short) (narrow) %v696_v57, 16 }
 0x16f   : > { %737 = vxpose.xlu0.c.b16.start.end [1/1] (short) (narrow) %v695_v59, 16  ;;  %1614 = vset.pattern.permute.xlu1 %v1690_v37 }
 0x178   : > { %1613 = vset.pattern.permute.xlu0 %v1690_v37 }
 0x1c9   : > { %v713_v60 = vpop.trf.xlu1 }
 0x1ca   : > { %1519 = vmatmul.mubr.msk.bf16.vlgmr.msra.gmra.mxu0 %vm769_vm4, %v713_v60 }
 0x1cb   : > { %1529 = vmatpush3.bf16.msra.mxu0 %v869_v44  ;;  %1530 = vmatprep.mubr.msk.bf16.mxu0 %vm1689_vm2, %v1688_v30 }
 0x1cc   : > { %1540 = vmatprep.subr.bf16.mxu0 %v1688_v30 }
 0x1cd   : > { %v729_v61 = vpop.trf.xlu0  ;;  %v761_v63 = vpop.trf.xlu1 }
 0x1ce   : > { %1525 = vmatmul.mubr.msk.bf16.vlgmr.msra.gmra.mxu1 %vm769_vm4, %v729_v61 }
 0x1cf   : > { %1535 = vmatpush3.bf16.msra.mxu1 %v916_v46  ;;  %1536 = vmatprep.mubr.msk.bf16.mxu1 %vm1689_vm2, %v1688_v30 }
 0x1d0   : > { %1546 = vmatprep.subr.bf16.mxu1 %v1688_v30 }
 0x1d1   : > { %v745_v62 = vpop.trf.xlu0 }
 0x1d2   : > { %1531 = vmatmul.mubr.msk.bf16.vlgmr.msra.gmra.mxu0 %vm769_vm4, %v745_v62 }
 0x1d3   : > { %1542 = vmatprep.mubr.msk.bf16.mxu0 %vm1689_vm2, %v1688_v30 }
 0x1d6   : > { %1537 = vmatmul.mubr.msk.bf16.vlgmr.msra.gmra.mxu1 %vm769_vm4, %v761_v63 }
 0x1d7   : > { %1548 = vmatprep.mubr.msk.bf16.mxu1 %vm1689_vm2, %v1688_v30 }
 0x28a   : > { %v811_v9 = vpop.f32.mrf.mxu0 }
 0x28b   : > { %v959_v11 = vsel %vm769_vm4, %v811_v9, -inf }
 0x28c   : > { %960 = vmax.xlane.f32.xlu0 %v959_v11  ;;  %v1520_v14 = vpop.f32.mrf.mxu0 }
 0x28e   : > { %v814_v15 = vpop.f32.mrf.mxu0  ;;  %v858_v16 = vpop.f32.mrf.mxu1 }
 0x28f   : > { %v965_v17 = vsel %vm769_vm4, %v858_v16, -inf  ;;  %v962_v18 = vsel %vm769_vm4, %v814_v15, -inf }
 0x290   : > { %v1526_v19 = vpop.f32.mrf.mxu1  ;;  %966 = vmax.xlane.f32.xlu0 %v965_v17  ;;  %963 = vmax.xlane.f32.xlu1 %v962_v18  ;;  %v1521_v20 = vpop.f32.mrf.mxu0 }
 0x292   : > { %v861_v21 = vpop.f32.mrf.mxu1  ;;  %v905_v22 = vpop.f32.mrf.mxu0 }
 0x293   : > { %v968_v23 = vsel %vm769_vm4, %v861_v21, -inf  ;;  %v971_v24 = vsel %vm769_vm4, %v905_v22, -inf }
 0x294   : > { %v1527_v25 = vpop.f32.mrf.mxu1  ;;  %969 = vmax.xlane.f32.xlu1 %v968_v23  ;;  %972 = vmax.xlane.f32.xlu0 %v971_v24  ;;  %v1532_v26 = vpop.f32.mrf.mxu0 }
 0x296   : > { %v908_v27 = vpop.f32.mrf.mxu0  ;;  %v952_v28 = vpop.f32.mrf.mxu1 }
 0x297   : > { %v974_v29 = vsel %vm769_vm4, %v908_v27, -inf  ;;  %v977_v31 = vsel %vm769_vm4, %v952_v28, -inf }
 0x298   : > { %975 = vmax.xlane.f32.xlu1 %v974_v29  ;;  %v1533_v32 = vpop.f32.mrf.mxu0  ;;  %978 = vmax.xlane.f32.xlu0 %v977_v31  ;;  %v1538_v33 = vpop.f32.mrf.mxu1 }
 0x29a   : > { %v955_v34 = vpop.f32.mrf.mxu1 }
 0x29b   : > { %v980_v35 = vsel %vm769_vm4, %v955_v34, -inf }
 0x29c   : > { %981 = vmax.xlane.f32.xlu1 %v980_v35  ;;  %v1539_v36 = vpop.f32.mrf.mxu1 }
 0x315   : > { %v961_v38 = vpop.xlane.xlu0 %960 }
 0x316   : > { %v983_v39 = vsub.f32 %v811_v9, %v961_v38 }
 0x318   : > { %v991_v40 = vmul.f32 1.442695, %v983_v39 }
 0x319   : > { %v967_v41 = vpop.xlane.xlu0 %966  ;;  %v964_v42 = vpop.xlane.xlu1 %963 }
 0x31a   : > { %1628 = vpow2.f32 %v991_v40  ;;  %v985_v43 = vsub.f32 %v858_v16, %v967_v41  ;;  %v984_v44 = vsub.f32 %v814_v15, %v964_v42 }
 0x31c   : > { %v995_v45 = vmul.f32 1.442695, %v985_v43  ;;  %v993_v46 = vmul.f32 1.442695, %v984_v44 }
 0x31d   : > { %v973_v47 = vpop.xlane.xlu0 %972  ;;  %v970_v48 = vpop.xlane.xlu1 %969 }
 0x31e   : > { %1630 = vpow2.f32 %v995_v45  ;;  %v987_v49 = vsub.f32 %v905_v22, %v973_v47  ;;  %v986_v50 = vsub.f32 %v861_v21, %v970_v48 }
 0x31f   : > { %1632 = vpow2.f32 %v993_v46 }
 0x320   : > { %v999_v51 = vmul.f32 1.442695, %v987_v49  ;;  %v997_v52 = vmul.f32 1.442695, %v986_v50 }
 0x321   : > { %v979_v53 = vpop.xlane.xlu0 %978  ;;  %v976_v54 = vpop.xlane.xlu1 %975 }
 0x322   : > { %1634 = vpow2.f32 %v999_v51  ;;  %v989_v55 = vsub.f32 %v952_v28, %v979_v53  ;;  %v988_v56 = vsub.f32 %v908_v27, %v976_v54 }
 0x323   : > { %1636 = vpow2.f32 %v997_v52 }
 0x324   : > { %v1003_v57 = vmul.f32 1.442695, %v989_v55  ;;  %v1001_v58 = vmul.f32 1.442695, %v988_v56 }
 0x325   : > { %v982_v21 = vpop.xlane.xlu1 %981 }
 0x326   : > { %1638 = vpow2.f32 %v1003_v57  ;;  %v990_v22 = vsub.f32 %v955_v34, %v982_v21 }
 0x327   : > { %v1629_v59 = vpop.eup %1628  ;;  %1640 = vpow2.f32 %v1001_v58 }
 0x328   : > { %v1007_v60 = vsel %vm769_vm4, %v1629_v59, 0.0  ;;  %v1005_v23 = vmul.f32 1.442695, %v990_v22 }
 0x329   : > { %1008 = vadd.xlane.f32.xlu0 %v1007_v60 }
 0x32a   : > { %1642 = vpow2.f32 %v1005_v23 }
 0x32b   : > { %v1631_v61 = vpop.eup %1630 }
 0x32c   : > { %v1633_v62 = vpop.eup %1632  ;;  %v1013_v63 = vsel %vm769_vm4, %v1631_v61, 0.0 }
 0x32d   : > { %1014 = vadd.xlane.f32.xlu0 %v1013_v63  ;;  %v1010_v9 = vsel %vm769_vm4, %v1633_v62, 0.0 }
 0x32e   : > { %1011 = vadd.xlane.f32.xlu1 %v1010_v9 }
 0x32f   : > { %v1635_v11 = vpop.eup %1634 }
 0x330   : > { %v1637_v14 = vpop.eup %1636  ;;  %v1019_v15 = vsel %vm769_vm4, %v1635_v11, 0.0 }
 0x331   : > { %1020 = vadd.xlane.f32.xlu0 %v1019_v15  ;;  %v1016_v16 = vsel %vm769_vm4, %v1637_v14, 0.0 }
 0x332   : > { %1017 = vadd.xlane.f32.xlu1 %v1016_v16  ;;  %v1691_v16 = vmov 5  }
 0x333   : > { %v1889_v17 = vpop.eup %1638 }
 0x334   : > { %v1641_v18 = vpop.eup %1640  ;;  %v1025_v19 = vsel %vm769_vm4, %v1889_v17, 0.0 }
 0x335   : > { %1026 = vadd.xlane.f32.xlu0 %v1025_v19  ;;  %v1022_v20 = vsel %vm769_vm4, %v1641_v18, 0.0 }
 0x336   : > { %1023 = vadd.xlane.f32.xlu1 %v1022_v20 }
 0x337   : > { %v1643_v24 = vpop.eup %1642 }
 0x338   : > { %v1028_v25 = vsel %vm769_vm4, %v1643_v24, 0.0 }
 0x347   : > { %617 = vperm.xlu1 %1614, %v1784_v7  }
 0x34b   : > { %621 = vperm.xlu1 %1614, %v1753_v0   ;;  %613 = vperm.xlu0 %1613, %v1775_v4  }
 0x34f   : > { %1616 = vset.pattern.permute.xlu0 %v1691_v16 }
 0x36f   : > { %1029 = vadd.xlane.f32.xlu1 %v1028_v25 }
 0x380   : > { %625 = vperm.xlu1 %1614, %v1760_v3  }
 0x384   : > { %1615 = vset.pattern.permute.xlu1 %v1691_v16 }
 0x385   : > { %1242 = vperm.xlu1 %1615, %v1775_v4  }
 0x389   : > { %1246 = vperm.xlu1 %1615, %v1784_v7  }
 0x38d   : > { %1250 = vperm.xlu1 %1615, %v1753_v0  }
 0x391   : > { %1254 = vperm.xlu1 %1615, %v1760_v3  }
 0x3b2   : > { %v1009_v26 = vpop.xlane.xlu0 %1008 }
 0x3b3   : > { %1644 = vrcp.f32 %v1009_v26 }
 0x3b6   : > { %v1015_v27 = vpop.xlane.xlu0 %1014 }
 0x3b7   : > { %v1012_v28 = vpop.xlane.xlu1 %1011 }
 0x3b8   : > { %1646 = vrcp.f32 %v1012_v28 }
 0x3b9   : > { %1648 = vrcp.f32 %v1015_v27 }
 0x3ba   : > { %v1021_v29 = vpop.xlane.xlu0 %1020 }
 0x3bb   : > { %v1018_v31 = vpop.xlane.xlu1 %1017 }
 0x3bc   : > { %1650 = vrcp.f32 %v1018_v31  ;;  %v1625_v31 = vld [vmem:[%s1957_s5 + $0x8] sm:$0xff]  }
 0x3bd   : > { %1652 = vrcp.f32 %v1021_v29 }
 0x3be   : > { %v1027_v35 = vpop.xlane.xlu0 %1026 }
 0x3bf   : > { %v1024_v32 = vpop.xlane.xlu1 %1023 }
 0x3c0   : > { %1654 = vrcp.f32 %v1024_v32  ;;  %v1645_v33 = vpop.eup %1644 }
 0x3c1   : > { %v1039_v36 = vmul.f32 %v1645_v33, %v1629_v59  ;;  %1656 = vrcp.f32 %v1027_v35 }
 0x3c3   : > { %v618_v46 = vpop.permute.xlu1 %617 }
 0x3c4   : > { %v682_v53 = vadd.f32 %v1875_v12, %v618_v46 }
 0x3c5   : > { %v1647_v34 = vpop.eup %1646 }
 0x3c6   : > { %v1040_v37 = vmul.f32 %v1647_v34, %v1633_v62  ;;  %v1649_v38 = vpop.eup %1648  ;;  %v614_v41 = vpop.permute.xlu0 %613  ;;  %v702_v57 = vpack.c.bf16 %v682_v53, %v682_v53 }
 0x3c7   : > { %v1041_v43 = vmul.f32 %v1649_v38, %v1631_v61  ;;  %v679_v47 = vadd.f32 %v1870_v2, %v614_v41  ;;  %v622_v56 = vpop.permute.xlu1 %621 }
 0x3c8   : > { %v1047_v39 = vpack.c.bf16 %v1040_v37, %v1039_v36  ;;  %v687_v58 = vadd.f32 %v1868_v1, %v622_v56 }
 0x3c9   : > { %v1651_v40 = vpop.eup %1650  ;;  %v701_v54 = vpack.c.bf16 %v679_v47, %v679_v47 }
 0x3ca   : > { %v1055_v42 = vsel %vm769_vm4, %v1047_v39, 0  ;;  %v1042_v44 = vmul.f32 %v1651_v40, %v1637_v14  ;;  %v1653_v45 = vpop.eup %1652  ;;  %v703_v12 = vpack.c.bf16 %v687_v58, %v687_v58 }
 0x3cb   : > { %1541 = vmatpush3.bf16.xpose.msra.mxu0 %v1055_v42  ;;  %v1043_v51 = vmul.f32 %v1653_v45, %v1635_v11 }
 0x3cc   : > { %v1048_v48 = vpack.c.bf16 %v1042_v44, %v1041_v43  ;;  %1552 = vmatprep.subr.bf16.mxu0 %v1688_v30 }
 0x3cd   : > { %v1655_v49 = vpop.eup %1654 }
 0x3ce   : > { %v1101_v50 = vsel %vm769_vm4, %v1048_v48, 0  ;;  %v1044_v52 = vmul.f32 %v1655_v49, %v1641_v18  ;;  %v1657_v60 = vpop.eup %1656 }
 0x3cf   : > { %1547 = vmatpush3.bf16.xpose.msra.mxu1 %v1101_v50  ;;  %v1045_v62 = vmul.f32 %v1657_v60, %v1889_v17 }
 0x3d0   : > { %v1049_v55 = vpack.c.bf16 %v1044_v52, %v1043_v51  ;;  %1558 = vmatprep.subr.bf16.mxu1 %v1688_v30 }
 0x3d2   : > { %1543 = vmatmul.mubr.msk.bf16.vlgmr.msra.gmra.mxu0 %vm769_vm4, %v701_v54  ;;  %v1147_v2 = vsel %vm769_vm4, %v1049_v55, 0 }
 0x3d3   : > { %1553 = vmatpush3.bf16.xpose.msra.mxu0 %v1147_v2  ;;  %1554 = vmatprep.mubr.msk.bf16.mxu0 %vm1689_vm2, %v1688_v30 }
 0x3d6   : > { %1549 = vmatmul.mubr.msk.bf16.vlgmr.msra.gmra.mxu1 %vm769_vm4, %v702_v57 }
 0x3d7   : > { %1560 = vmatprep.mubr.msk.bf16.mxu1 %vm1689_vm2, %v1688_v30  ;;  %v1624_v30 = vld [vmem:[%s1957_s5] sm:$0xff]  }
 0x3da   : > { %1555 = vmatmul.mubr.msk.bf16.vlgmr.msra.gmra.mxu0 %vm769_vm4, %v703_v12 }
 0x3db   : > { %1568 = vmatprep.mubr.msk.bf16.mxu0 %vm461_vm1, %v1624_v30 }
 0x3f8   : > { %v1030_v59 = vpop.xlane.xlu1 %1029 }
 0x3f9   : > { %1658 = vrcp.f32 %v1030_v59 }
 0x3fc   : > { %v626_v11 = vpop.permute.xlu1 %625 }
 0x3fd   : > { %v690_v14 = vadd.f32 %v1872_v8, %v626_v11 }
 0x3ff   : > { %v704_v15 = vpack.c.bf16 %v690_v14, %v690_v14 }
 0x400   : > { %v1243_v32 = vpop.permute.xlu1 %1242 }
 0x404   : > { %v1247_v33 = vpop.permute.xlu1 %1246 }
 0x406   : > { %v1659_v61 = vpop.eup %1658 }
 0x407   : > { %v1046_v63 = vmul.f32 %v1659_v61, %v1643_v24 }
 0x408   : > { %v1251_v34 = vpop.permute.xlu1 %1250 }
 0x409   : > { %v1050_v9 = vpack.c.bf16 %v1046_v63, %v1045_v62 }
 0x40b   : > { %v1193_v1 = vsel %vm769_vm4, %v1050_v9, 0 }
 0x40c   : > { %1559 = vmatpush3.bf16.xpose.msra.mxu1 %v1193_v1  ;;  %v1255_v40 = vpop.permute.xlu1 %1254 }
 0x413   : > { %1561 = vmatmul.mubr.msk.bf16.vlgmr.msra.gmra.mxu1 %vm769_vm4, %v704_v15 }
 0x492   : > { %v1091_v8 = vpop.f32.mrf.mxu0 }
 0x494   : > { %v1544_v17 = vpop.f32.mrf.mxu0 }
 0x496   : > { %v1094_v18 = vpop.f32.mrf.mxu0  ;;  %v1137_v19 = vpop.f32.mrf.mxu1 }
 0x497   : > { %v1235_v29 = vpack.c.bf16 %v1137_v19, %v1091_v8 }
 0x498   : > { %v1545_v20 = vpop.f32.mrf.mxu0  ;;  %v1550_v21 = vpop.f32.mrf.mxu1 }
 0x49a   : > { %v1140_v22 = vpop.f32.mrf.mxu1  ;;  %v1183_v23 = vpop.f32.mrf.mxu0 }
 0x49c   : > { %v1551_v24 = vpop.f32.mrf.mxu1  ;;  %v1556_v25 = vpop.f32.mrf.mxu0 }
 0x49e   : > { %v1186_v26 = vpop.f32.mrf.mxu0 }
 0x4a0   : > { %v1557_v27 = vpop.f32.mrf.mxu0 }
 0x4d3   : > { %v1229_v28 = vpop.f32.mrf.mxu1 }
 0x4d4   : > { %v1236_v4 = vpack.c.bf16 %v1229_v28, %v1183_v23 }
 0x4d5   : > { %v1562_v7 = vpop.f32.mrf.mxu1 }
 0x4d6   : > { %1564 = vmatprep.subr.bf16.mxu0 %v1236_v4 }
 0x4d7   : > { %v1232_v0 = vpop.f32.mrf.mxu1  ;;  %1565 = vmatpush3.bf16.msra.mxu0 %v1236_v4 }
 0x4d8   : > { %1566 = vmatprep.subr.bf16.mxu0 %v1235_v29 }
 0x4d9   : > { %v1563_v3 = vpop.f32.mrf.mxu1 }
 0x4db   : > { %1567 = vmatpush3.bf16.msra.mxu0 %v1235_v29 }
 0x4de   : > { %1569 = vmatmul.mubr.msk.bf16.vlgmr.msra.gmra.mxu0 %vm461_vm1, %v1625_v31 }
 0x59e   : > { %v1570_v35 = vpop.f32.mrf.mxu0 }
 0x59f   : > { %v1316_v36 = vadd.f32 %v1570_v35, %v1251_v34 }
 0x5a0   : > { %v1307_v37 = vpop.f32.mrf.mxu0 }
 0x5a1   : > { %v1324_v38 = vadd.f32 %v1316_v36, %v1792_v10  ;;  %v1308_v39 = vadd.f32 %v1307_v37, %v1243_v32 }
 0x5a2   : > { %v1571_v41 = vpop.f32.mrf.mxu0 }
 0x5a3   : > { %1328 = vst.msk [vmem:[%s329_s21 + $0x10] sm:$0xff] %vm341_vm0, %v1324_v38  ;;  %v1322_v42 = vadd.f32 %v1308_v39, %v1777_v5  ;;  %v1319_v43 = vadd.f32 %v1571_v41, %v1255_v40 }
 0x5a4   : > { %v1310_v44 = vpop.f32.mrf.mxu0 }
 0x5a5   : > { %1326 = vst.msk [vmem:[%s329_s21] sm:$0xff] %vm341_vm0, %v1322_v42  ;;  %v1325_v45 = vadd.f32 %v1319_v43, %v1797_v13  ;;  %v1311_v46 = vadd.f32 %v1310_v44, %v1247_v33 }
 0x5a7   : > { %1329 = vst.msk [vmem:[%s329_s21 + $0x18] sm:$0xff] %vm341_vm0, %v1325_v45  ;;  %v1323_v47 = vadd.f32 %v1311_v46, %v1779_v6 }
 0x5a9   : > { %1327 = vst.msk [vmem:[%s329_s21 + $0x8] sm:$0xff] %vm341_vm0, %v1323_v47 }
 0x5aa PF: > { %s17_s26 = sadd.s32 1, %s1682_s26   ;;  %s1960_s24 = smov %s1678_s25 }
 0x5ab   : > { %p14_p5 = scmp.ge.s32.totalorder %s17_s26, 4   ;;  %s1961_s25 = smov %s1963_s27 }
 0x5ad   :  { %16 = sbr.rel (!%p14_p5) target bundleno = 2 (0x2), region = 81 }

// kernel: tpu_custom_call.1
= control target key start
LH: loop header
LB: loop body
LE: loop exit
PB: predicated region body
PF: predicated region fallthrough
CT: control target
= control target key end

     0   :  { %s1732_s24 = smov 0   ;;  %s1734_s25 = smov 0   ;;  %s1952_s0 = inlined_call_operand.vmem [shape: f32[2,32,16], index: 0, kind: input, shape index: {}]   ;;  %s1953_s1 = inlined_call_operand.vmem [shape: bf16[2,16,8], index: 1, kind: input, shape index: {}]   ;;  %s1954_s2 = inlined_call_operand.vmem [shape: bf16[32,32], index: 2, kind: input, shape index: {}]   ;;  %s1955_s3 = inlined_call_operand.vmem [shape: bf16[32,16], index: 3, kind: input, shape index: {}]   ;;  %s1956_s4 = inlined_call_operand.vmem [shape: bf16[32,16], index: 4, kind: input, shape index: {}]   ;;  %s1957_s5 = inlined_call_operand.vmem [shape: bf16[32,32], index: 5, kind: input, shape index: {}]   ;;  %s1958_s6 = inlined_call_operand.vmem [shape: f32[32,8], index: 6, kind: input, shape index: {}]   ;;  %s1959_s7 = inlined_call_operand.vmem [shape: f32[2,32,16], index: 7, kind: output, shape index: {}]  }
   0x1   :  { %s1736_s26 = smov 0  }
   0x2 LB: > { %s29_s27 = sadd.s32 1, %s1678_s25  ;;  %p1429_p0 = scmp.ge.s32.totalorder %s1682_s26, 1  ;;  %s1682_s26 = sphi %s1736_s26, %s17_s26   ;;  %s1678_s25 = sphi %s1734_s25, %s1961_s25   ;;  %s1674_s24 = sphi %s1732_s24, %s1960_s24  }
   0x3   : > { %p31_p1 = scmp.ge.s32.totalorder %s29_s27, 2  ;;  %p266_p2 = scmp.lt.s32.totalorder %s1682_s26, 3 }
   0x5   : > { %s1963_s27 = smov (%p31_p1, %s29_s27), 0  ;;  %p267_p3 = pnand %p1429_p0, %p266_p2 }
   0x6   : > { %p309_p4 = scmp.lt.s32.totalorder (!%p267_p3), %s1674_s24, 1 }
   0x7   : > { %270 = sbr.rel (%p267_p3) target bundleno = 1450 (0x5aa), region = 48 }
   0xc   : > { %v1753_v0 = vld [vmem:[%s1958_s6 + $0x10] sm:$0xff]  ;;  %v1684_v1 = vmov 1   ;;  %v1685_v2 = vmov 0   ;;  %v1760_v3 = vld [vmem:[%s1958_s6 + $0x18] sm:$0xff]  ;;  %s1965_s24 = smov (!%p309_p4, %s1674_s24), 1  ;;  %v1775_v4 = vld [vmem:[%s1958_s6] sm:$0xff] }
   0xd   : > { %1605 = vset.pattern.permute.xlu1 %v1684_v1  ;;  %1604 = vset.pattern.permute.xlu0 %v1685_v2  ;;  %s1463_s9 = sshll.u32 %s1965_s24, 5  ;;  %vm341_vm0 = vcmask 130048   ;;  %v1784_v7 = vld [vmem:[%s1958_s6 + $0x8] sm:$0xff]  ;;  %v1617_v15 = vld [vmem:[%s1954_s2] sm:$0xff]   ;;  %vm461_vm1 = vcmask 261120   ;;  %s1464_s19 = sshll.u32 %s1965_s24, 3 }
   0xe   : > { %418 = vperm.xlu1 %1605, %v1753_v0   ;;  %397 = vperm.xlu0 %1604, %v1753_v0   ;;  %s316_s12 = scalar_lea.vmem %s1952_s0, %s1463_s9  ;;  %v1620_v17 = vld [vmem:[%s1955_s3] sm:$0xff]   ;;  %v1686_v19 = vmov 2   ;;  %s321_s28 = scalar_lea.vmem %s1953_s1, %s1464_s19  ;;  %v1621_v21 = vld [vmem:[%s1955_s3 + $0x8] sm:$0xff]   ;;  %v1687_v23 = vmov 3   ;;  %vm1689_vm2 = vmmov 0   ;;  %vm773_vm3 = vcmask 1043456  }
   0xf   : > { %v1777_v5 = vld [vmem:[%s316_s12] sm:$0xff]  ;;  %v1779_v6 = vld [vmem:[%s316_s12 + $0x8] sm:$0xff]  ;;  %v1792_v10 = vld [vmem:[%s316_s12 + $0x10] sm:$0xff]  ;;  %1500 = vmatprep.mubr.msk.bf16.mxu0 %vm461_vm1, %v1617_v15  ;;  %1506 = vmatprep.mubr.msk.bf16.mxu1 %vm341_vm0, %v1620_v17  ;;  %vm769_vm4 = vcmask 64512   ;;  %s329_s21 = scalar_lea.vmem %s1959_s7, %s1463_s9 }
  0x10   : > { %v342_v8 = vsel %vm341_vm0, %v1777_v5, 0.0  ;;  %v343_v9 = vsel %vm341_vm0, %v1779_v6, 0.0  ;;  %v345_v12 = vsel %vm341_vm0, %v1792_v10, 0.0  ;;  %v1797_v13 = vld [vmem:[%s316_s12 + $0x18] sm:$0xff]  ;;  %v1619_v20 = vld [vmem:[%s321_s28] sm:$0xff]  }
  0x11   : > { %v344_v11 = vadd.f32 %v343_v9, %v342_v8  ;;  %v347_v16 = vsel %vm341_vm0, %v1797_v13, 0.0  ;;  %1504 = vmatprep.subr.bf16.mxu1 %v1619_v20 }
  0x12   : > { %422 = vperm.xlu1 %1605, %v1760_v3   ;;  %402 = vperm.xlu0 %1604, %v1760_v3  }
  0x13   : > { %v346_v14 = vadd.f32 %v345_v12, %v344_v11  ;;  %1505 = vmatpush3.bf16.msra.mxu1 %v1619_v20 }
  0x14   : > { %1510 = vmatprep.subr.bf16.mxu1 %v1619_v20 }
  0x15   : > { %v348_v18 = vadd.f32 %v347_v16, %v346_v14 }
  0x16   : > { %1606 = vset.pattern.permute.xlu1 %v1685_v2  ;;  %387 = vperm.xlu0 %1604, %v1775_v4  }
  0x17   : > { %392 = vperm.xlu1 %1606, %v1784_v7   ;;  %v349_v22 = vrot.slane %v348_v18, 4  ;;  %1507 = vmatmul.mubr.msk.bf16.vlgmr.msra.gmra.mxu1 %vm341_vm0, %v1621_v21 }
  0x18   : > { %1511 = vmatpush3.bf16.msra.mxu1 %v1619_v20  ;;  %v1618_v20 = vld [vmem:[%s1954_s2 + $0x8] sm:$0xff]  }
  0x19   : > { %v350_v24 = vadd.f32 %v349_v22, %v348_v18 }
  0x1a   : > { %1607 = vset.pattern.permute.xlu0 %v1684_v1 }
  0x1b   : > { %1608 = vset.pattern.permute.xlu1 %v1684_v1  ;;  %410 = vperm.xlu0 %1607, %v1775_v4   ;;  %v351_v25 = vrot.slane %v350_v24, 2 }
  0x1c   : > { %414 = vperm.xlu1 %1608, %v1784_v7  }
  0x1d   : > { %v352_v26 = vadd.f32 %v351_v25, %v350_v24 }
  0x1f   : > { %1610 = vset.pattern.permute.xlu0 %v1686_v19  ;;  %v353_v27 = vrot.slane %v352_v26, 1 }
  0x20   : > { %1609 = vset.pattern.permute.xlu1 %v1686_v19  ;;  %440 = vperm.xlu0 %1610, %v1784_v7  }
  0x21   : > { %436 = vperm.xlu1 %1609, %v1775_v4   ;;  %v354_v28 = vadd.f32 %v353_v27, %v352_v26  ;;  %v1622_v27 = vld [vmem:[%s1956_s4] sm:$0xff]  }
  0x22   : > { %1512 = vmatprep.mubr.msk.bf16.mxu1 %vm341_vm0, %v1622_v27 }
  0x23   : > { %v356_v29 = vmul.f32 0.03125, %v354_v28  ;;  %v1623_v28 = vld [vmem:[%s1956_s4 + $0x8] sm:$0xff]  }
  0x24   : > { %1611 = vset.pattern.permute.xlu0 %v1687_v23  ;;  %1513 = vmatmul.mubr.msk.bf16.vlgmr.msra.gmra.mxu1 %vm341_vm0, %v1623_v28 }
  0x25   : > { %444 = vperm.xlu1 %1609, %v1753_v0   ;;  %522 = vperm.xlu0 %1611, %v1775_v4   ;;  %v357_v30 = vsub.f32 %v1777_v5, %v356_v29  ;;  %v358_v31 = vsub.f32 %v1779_v6, %v356_v29  ;;  %v359_v32 = vsub.f32 %v1792_v10, %v356_v29 }
  0x26   : > { %v360_v35 = vsub.f32 %v1797_v13, %v356_v29 }
  0x27   : > { %v361_v33 = vmul.f32 %v357_v30, %v357_v30  ;;  %v362_v34 = vmul.f32 %v358_v31, %v358_v31  ;;  %v363_v36 = vmul.f32 %v359_v32, %v359_v32 }
  0x28   : > { %v364_v40 = vmul.f32 %v360_v35, %v360_v35 }
  0x29   : > { %448 = vperm.xlu1 %1609, %v1760_v3   ;;  %534 = vperm.xlu0 %1611, %v1760_v3   ;;  %v365_v37 = vsel %vm341_vm0, %v361_v33, 0.0  ;;  %v366_v38 = vsel %vm341_vm0, %v362_v34, 0.0  ;;  %v368_v41 = vsel %vm341_vm0, %v363_v36, 0.0 }
  0x2a   : > { %v367_v39 = vadd.f32 %v366_v38, %v365_v37  ;;  %v370_v43 = vsel %vm341_vm0, %v364_v40, 0.0 }
  0x2c   : > { %v369_v42 = vadd.f32 %v368_v41, %v367_v39 }
  0x2d   : > { %1612 = vset.pattern.permute.xlu1 %v1687_v23 }
  0x2e   : > { %526 = vperm.xlu1 %1612, %v1784_v7   ;;  %v371_v44 = vadd.f32 %v370_v43, %v369_v42 }
  0x30   : > { %v372_v45 = vrot.slane %v371_v44, 4 }
  0x32   : > { %530 = vperm.xlu1 %1612, %v1753_v0   ;;  %v373_v46 = vadd.f32 %v372_v45, %v371_v44 }
  0x34   : > { %v374_v47 = vrot.slane %v373_v46, 2 }
  0x36   : > { %v375_v48 = vadd.f32 %v374_v47, %v373_v46 }
  0x38   : > { %v376_v49 = vrot.slane %v375_v48, 1 }
  0x3a   : > { %v377_v50 = vadd.f32 %v376_v49, %v375_v48 }
  0x3c   : > { %v378_v51 = vmul.f32 0.03125, %v377_v50 }
  0x3e   : > { %v379_v52 = vadd.f32 1e-05, %v378_v51 }
  0x40   : > { %1626 = vrsqrt.f32 %v379_v52 }
  0x4d   : > { %v1627_v53 = vpop.eup %1626 }
  0x4e   : > { %v383_v54 = vmul.f32 %v1627_v53, %v359_v32  ;;  %v384_v57 = vmul.f32 %v1627_v53, %v360_v35  ;;  %v381_v2 = vmul.f32 %v1627_v53, %v357_v30  ;;  %v382_v9 = vmul.f32 %v1627_v53, %v358_v31 }
  0x4f   : > { %v1688_v30 = vmov 0.0  }
  0x50   : > { %1522 = vmatprep.subr.bf16.mxu1 %v1688_v30  ;;  %1524 = vmatprep.mubr.msk.bf16.mxu1 %vm1689_vm2, %v1688_v30 }
  0x89   : > { %v419_v55 = vpop.permute.xlu1 %418  ;;  %v398_v56 = vpop.permute.xlu0 %397 }
  0x8a   : > { %v407_v58 = vmul.f32 %v398_v56, %v383_v54 }
  0x8c   : > { %v427_v62 = vadd.f32 %v419_v55, %v407_v58 }
  0x8d   : > { %v423_v59 = vpop.permute.xlu1 %422  ;;  %v403_v60 = vpop.permute.xlu0 %402 }
  0x8e   : > { %v408_v61 = vmul.f32 %v403_v60, %v384_v57 }
  0x90   : > { %v428_v63 = vadd.f32 %v423_v59, %v408_v61 }
  0x91   : > { %v388_v1 = vpop.permute.xlu0 %387 }
  0x92   : > { %v393_v8 = vpop.permute.xlu1 %392  ;;  %v430_v11 = vpack.c.bf16 %v428_v63, %v427_v62  ;;  %v405_v12 = vmul.f32 %v388_v1, %v381_v2 }
  0x93   : > { %v406_v14 = vmul.f32 %v393_v8, %v382_v9 }
  0x94   : > { %1496 = vmatprep.subr.bf16.mxu0 %v430_v11 }
  0x95   : > { %1497 = vmatpush3.bf16.msra.mxu0 %v430_v11 }
  0x96   : > { %v411_v15 = vpop.permute.xlu0 %410 }
  0x97   : > { %v425_v16 = vadd.f32 %v411_v15, %v405_v12  ;;  %v415_v17 = vpop.permute.xlu1 %414 }
  0x98   : > { %v426_v18 = vadd.f32 %v415_v17, %v406_v14 }
  0x9a   : > { %v429_v19 = vpack.c.bf16 %v426_v18, %v425_v16 }
  0x9b   : > { %v441_v24 = vpop.permute.xlu0 %440 }
  0x9c   : > { %1498 = vmatprep.subr.bf16.mxu0 %v429_v19  ;;  %v437_v21 = vpop.permute.xlu1 %436 }
  0x9d   : > { %1499 = vmatpush3.bf16.msra.mxu0 %v429_v19 }
  0x9e   : > { %1516 = vmatprep.subr.bf16.mxu0 %v1688_v30 }
  0xa0   : > { %1501 = vmatmul.mubr.msk.bf16.vlgmr.msra.gmra.mxu0 %vm461_vm1, %v1618_v20  ;;  %v445_v22 = vpop.permute.xlu1 %444  ;;  %v523_v29 = vpop.permute.xlu0 %522 }
  0xa1   : > { %1518 = vmatprep.mubr.msk.bf16.mxu0 %vm1689_vm2, %v1688_v30 }
  0xa4   : > { %v449_v23 = vpop.permute.xlu1 %448  ;;  %v535_v37 = vpop.permute.xlu0 %534 }
  0xa9   : > { %v527_v26 = vpop.permute.xlu1 %526 }
  0xad   : > { %v531_v34 = vpop.permute.xlu1 %530 }
  0xd7   : > { %v1508_v25 = vpop.f32.mrf.mxu1 }
  0xd8   : > { %v602_v36 = vadd.f32 %v1508_v25, %v531_v34 }
  0xd9   : > { %v593_v31 = vpop.f32.mrf.mxu1 }
  0xda   : > { %v594_v32 = vadd.f32 %v593_v31, %v523_v29  ;;  %v699_v41 = vpack.c.bf16 %v602_v36, %v602_v36 }
  0xdb   : > { %v1509_v33 = vpop.f32.mrf.mxu1 }
  0xdc   : > { %v697_v35 = vpack.c.bf16 %v594_v32, %v594_v32  ;;  %v605_v38 = vadd.f32 %v1509_v33, %v535_v37  ;;  %v869_v44 = vsel %vm773_vm3, %v699_v41, 0  ;;  %v1690_v37 = vmov 4  }
  0xdd   : > { %v596_v39 = vpop.f32.mrf.mxu1 }
  0xde   : > { %v775_v40 = vsel %vm773_vm3, %v697_v35, 0  ;;  %v597_v42 = vadd.f32 %v596_v39, %v527_v26  ;;  %v700_v43 = vpack.c.bf16 %v605_v38, %v605_v38 }
  0xdf   : > { %1517 = vmatpush3.bf16.msra.mxu0 %v775_v40 }
  0xe0   : > { %v698_v45 = vpack.c.bf16 %v597_v42, %v597_v42  ;;  %1528 = vmatprep.subr.bf16.mxu0 %v1688_v30  ;;  %v916_v46 = vsel %vm773_vm3, %v700_v43, 0 }
  0xe2   : > { %v822_v47 = vsel %vm773_vm3, %v698_v45, 0 }
  0xe3   : > { %1523 = vmatpush3.bf16.msra.mxu1 %v822_v47 }
  0xe4   : > { %1534 = vmatprep.subr.bf16.mxu1 %v1688_v30  ;;  %v1868_v1 = vpop.f32.mrf.mxu1 }
  0xe6   : > { %v1870_v2 = vpop.f32.mrf.mxu1 }
  0xe8   : > { %v1872_v8 = vpop.f32.mrf.mxu1 }
  0xea   : > { %v1875_v12 = vpop.f32.mrf.mxu1 }
 0x160   : > { %v1502_v48 = vpop.f32.mrf.mxu0 }
 0x161   : > { %v511_v56 = vadd.f32 %v1502_v48, %v445_v22 }
 0x162   : > { %v502_v49 = vpop.f32.mrf.mxu0 }
 0x163   : > { %v503_v50 = vadd.f32 %v502_v49, %v437_v21  ;;  %v695_v59 = vpack.c.bf16 %v511_v56, %v511_v56 }
 0x164   : > { %v1503_v51 = vpop.f32.mrf.mxu0 }
 0x165   : > { %v693_v52 = vpack.c.bf16 %v503_v50, %v503_v50  ;;  %v514_v53 = vadd.f32 %v1503_v51, %v449_v23 }
 0x166   : > { %v505_v54 = vpop.f32.mrf.mxu0 }
 0x167   : > { %v506_v55 = vadd.f32 %v505_v54, %v441_v24  ;;  %705 = vxpose.xlu1.c.b16.start.end [1/1] (short) (narrow) %v693_v52, 16  ;;  %v696_v57 = vpack.c.bf16 %v514_v53, %v514_v53 }
 0x169   : > { %v694_v58 = vpack.c.bf16 %v506_v55, %v506_v55 }
 0x16b   : > { %721 = vxpose.xlu0.c.b16.start.end [1/1] (short) (narrow) %v694_v58, 16  ;;  %753 = vxpose.xlu1.c.b16.start.end [1/1] (short) (narrow) %v696_v57, 16 }
 0x16f   : > { %737 = vxpose.xlu0.c.b16.start.end [1/1] (short) (narrow) %v695_v59, 16  ;;  %1614 = vset.pattern.permute.xlu1 %v1690_v37 }
 0x178   : > { %1613 = vset.pattern.permute.xlu0 %v1690_v37 }
 0x1c9   : > { %v713_v60 = vpop.trf.xlu1 }
 0x1ca   : > { %1519 = vmatmul.mubr.msk.bf16.vlgmr.msra.gmra.mxu0 %vm769_vm4, %v713_v60 }
 0x1cb   : > { %1529 = vmatpush3.bf16.msra.mxu0 %v869_v44  ;;  %1530 = vmatprep.mubr.msk.bf16.mxu0 %vm1689_vm2, %v1688_v30 }
 0x1cc   : > { %1540 = vmatprep.subr.bf16.mxu0 %v1688_v30 }
 0x1cd   : > { %v729_v61 = vpop.trf.xlu0  ;;  %v761_v63 = vpop.trf.xlu1 }
 0x1ce   : > { %1525 = vmatmul.mubr.msk.bf16.vlgmr.msra.gmra.mxu1 %vm769_vm4, %v729_v61 }
 0x1cf   : > { %1535 = vmatpush3.bf16.msra.mxu1 %v916_v46  ;;  %1536 = vmatprep.mubr.msk.bf16.mxu1 %vm1689_vm2, %v1688_v30 }
 0x1d0   : > { %1546 = vmatprep.subr.bf16.mxu1 %v1688_v30 }
 0x1d1   : > { %v745_v62 = vpop.trf.xlu0 }
 0x1d2   : > { %1531 = vmatmul.mubr.msk.bf16.vlgmr.msra.gmra.mxu0 %vm769_vm4, %v745_v62 }
 0x1d3   : > { %1542 = vmatprep.mubr.msk.bf16.mxu0 %vm1689_vm2, %v1688_v30 }
 0x1d6   : > { %1537 = vmatmul.mubr.msk.bf16.vlgmr.msra.gmra.mxu1 %vm769_vm4, %v761_v63 }
 0x1d7   : > { %1548 = vmatprep.mubr.msk.bf16.mxu1 %vm1689_vm2, %v1688_v30 }
 0x28a   : > { %v811_v9 = vpop.f32.mrf.mxu0 }
 0x28b   : > { %v959_v11 = vsel %vm769_vm4, %v811_v9, -inf }
 0x28c   : > { %960 = vmax.xlane.f32.xlu0 %v959_v11  ;;  %v1520_v14 = vpop.f32.mrf.mxu0 }
 0x28e   : > { %v814_v15 = vpop.f32.mrf.mxu0  ;;  %v858_v16 = vpop.f32.mrf.mxu1 }
 0x28f   : > { %v965_v17 = vsel %vm769_vm4, %v858_v16, -inf  ;;  %v962_v18 = vsel %vm769_vm4, %v814_v15, -inf }
 0x290   : > { %v1526_v19 = vpop.f32.mrf.mxu1  ;;  %966 = vmax.xlane.f32.xlu0 %v965_v17  ;;  %963 = vmax.xlane.f32.xlu1 %v962_v18  ;;  %v1521_v20 = vpop.f32.mrf.mxu0 }
 0x292   : > { %v861_v21 = vpop.f32.mrf.mxu1  ;;  %v905_v22 = vpop.f32.mrf.mxu0 }
 0x293   : > { %v968_v23 = vsel %vm769_vm4, %v861_v21, -inf  ;;  %v971_v24 = vsel %vm769_vm4, %v905_v22, -inf }
 0x294   : > { %v1527_v25 = vpop.f32.mrf.mxu1  ;;  %969 = vmax.xlane.f32.xlu1 %v968_v23  ;;  %972 = vmax.xlane.f32.xlu0 %v971_v24  ;;  %v1532_v26 = vpop.f32.mrf.mxu0 }
 0x296   : > { %v908_v27 = vpop.f32.mrf.mxu0  ;;  %v952_v28 = vpop.f32.mrf.mxu1 }
 0x297   : > { %v974_v29 = vsel %vm769_vm4, %v908_v27, -inf  ;;  %v977_v31 = vsel %vm769_vm4, %v952_v28, -inf }
 0x298   : > { %975 = vmax.xlane.f32.xlu1 %v974_v29  ;;  %v1533_v32 = vpop.f32.mrf.mxu0  ;;  %978 = vmax.xlane.f32.xlu0 %v977_v31  ;;  %v1538_v33 = vpop.f32.mrf.mxu1 }
 0x29a   : > { %v955_v34 = vpop.f32.mrf.mxu1 }
 0x29b   : > { %v980_v35 = vsel %vm769_vm4, %v955_v34, -inf }
 0x29c   : > { %981 = vmax.xlane.f32.xlu1 %v980_v35  ;;  %v1539_v36 = vpop.f32.mrf.mxu1 }
 0x315   : > { %v961_v38 = vpop.xlane.xlu0 %960 }
 0x316   : > { %v983_v39 = vsub.f32 %v811_v9, %v961_v38 }
 0x318   : > { %v991_v40 = vmul.f32 1.442695, %v983_v39 }
 0x319   : > { %v967_v41 = vpop.xlane.xlu0 %966  ;;  %v964_v42 = vpop.xlane.xlu1 %963 }
 0x31a   : > { %1628 = vpow2.f32 %v991_v40  ;;  %v985_v43 = vsub.f32 %v858_v16, %v967_v41  ;;  %v984_v44 = vsub.f32 %v814_v15, %v964_v42 }
 0x31c   : > { %v995_v45 = vmul.f32 1.442695, %v985_v43  ;;  %v993_v46 = vmul.f32 1.442695, %v984_v44 }
 0x31d   : > { %v973_v47 = vpop.xlane.xlu0 %972  ;;  %v970_v48 = vpop.xlane.xlu1 %969 }
 0x31e   : > { %1630 = vpow2.f32 %v995_v45  ;;  %v987_v49 = vsub.f32 %v905_v22, %v973_v47  ;;  %v986_v50 = vsub.f32 %v861_v21, %v970_v48 }
 0x31f   : > { %1632 = vpow2.f32 %v993_v46 }
 0x320   : > { %v999_v51 = vmul.f32 1.442695, %v987_v49  ;;  %v997_v52 = vmul.f32 1.442695, %v986_v50 }
 0x321   : > { %v979_v53 = vpop.xlane.xlu0 %978  ;;  %v976_v54 = vpop.xlane.xlu1 %975 }
 0x322   : > { %1634 = vpow2.f32 %v999_v51  ;;  %v989_v55 = vsub.f32 %v952_v28, %v979_v53  ;;  %v988_v56 = vsub.f32 %v908_v27, %v976_v54 }
 0x323   : > { %1636 = vpow2.f32 %v997_v52 }
 0x324   : > { %v1003_v57 = vmul.f32 1.442695, %v989_v55  ;;  %v1001_v58 = vmul.f32 1.442695, %v988_v56 }
 0x325   : > { %v982_v21 = vpop.xlane.xlu1 %981 }
 0x326   : > { %1638 = vpow2.f32 %v1003_v57  ;;  %v990_v22 = vsub.f32 %v955_v34, %v982_v21 }
 0x327   : > { %v1629_v59 = vpop.eup %1628  ;;  %1640 = vpow2.f32 %v1001_v58 }
 0x328   : > { %v1007_v60 = vsel %vm769_vm4, %v1629_v59, 0.0  ;;  %v1005_v23 = vmul.f32 1.442695, %v990_v22 }
 0x329   : > { %1008 = vadd.xlane.f32.xlu0 %v1007_v60 }
 0x32a   : > { %1642 = vpow2.f32 %v1005_v23 }
 0x32b   : > { %v1631_v61 = vpop.eup %1630 }
 0x32c   : > { %v1633_v62 = vpop.eup %1632  ;;  %v1013_v63 = vsel %vm769_vm4, %v1631_v61, 0.0 }
 0x32d   : > { %1014 = vadd.xlane.f32.xlu0 %v1013_v63  ;;  %v1010_v9 = vsel %vm769_vm4, %v1633_v62, 0.0 }
 0x32e   : > { %1011 = vadd.xlane.f32.xlu1 %v1010_v9 }
 0x32f   : > { %v1635_v11 = vpop.eup %1634 }
 0x330   : > { %v1637_v14 = vpop.eup %1636  ;;  %v1019_v15 = vsel %vm769_vm4, %v1635_v11, 0.0 }
 0x331   : > { %1020 = vadd.xlane.f32.xlu0 %v1019_v15  ;;  %v1016_v16 = vsel %vm769_vm4, %v1637_v14, 0.0 }
 0x332   : > { %1017 = vadd.xlane.f32.xlu1 %v1016_v16  ;;  %v1691_v16 = vmov 5  }
 0x333   : > { %v1889_v17 = vpop.eup %1638 }
 0x334   : > { %v1641_v18 = vpop.eup %1640  ;;  %v1025_v19 = vsel %vm769_vm4, %v1889_v17, 0.0 }
 0x335   : > { %1026 = vadd.xlane.f32.xlu0 %v1025_v19  ;;  %v1022_v20 = vsel %vm769_vm4, %v1641_v18, 0.0 }
 0x336   : > { %1023 = vadd.xlane.f32.xlu1 %v1022_v20 }
 0x337   : > { %v1643_v24 = vpop.eup %1642 }
 0x338   : > { %v1028_v25 = vsel %vm769_vm4, %v1643_v24, 0.0 }
 0x347   : > { %617 = vperm.xlu1 %1614, %v1784_v7  }
 0x34b   : > { %621 = vperm.xlu1 %1614, %v1753_v0   ;;  %613 = vperm.xlu0 %1613, %v1775_v4  }
 0x34f   : > { %1616 = vset.pattern.permute.xlu0 %v1691_v16 }
 0x36f   : > { %1029 = vadd.xlane.f32.xlu1 %v1028_v25 }
 0x380   : > { %625 = vperm.xlu1 %1614, %v1760_v3  }
 0x384   : > { %1615 = vset.pattern.permute.xlu1 %v1691_v16 }
 0x385   : > { %1242 = vperm.xlu1 %1615, %v1775_v4  }
 0x389   : > { %1246 = vperm.xlu1 %1615, %v1784_v7  }
 0x38d   : > { %1250 = vperm.xlu1 %1615, %v1753_v0  }
 0x391   : > { %1254 = vperm.xlu1 %1615, %v1760_v3  }
 0x3b2   : > { %v1009_v26 = vpop.xlane.xlu0 %1008 }
 0x3b3   : > { %1644 = vrcp.f32 %v1009_v26 }
 0x3b6   : > { %v1015_v27 = vpop.xlane.xlu0 %1014 }
 0x3b7   : > { %v1012_v28 = vpop.xlane.xlu1 %1011 }
 0x3b8   : > { %1646 = vrcp.f32 %v1012_v28 }
 0x3b9   : > { %1648 = vrcp.f32 %v1015_v27 }
 0x3ba   : > { %v1021_v29 = vpop.xlane.xlu0 %1020 }
 0x3bb   : > { %v1018_v31 = vpop.xlane.xlu1 %1017 }
 0x3bc   : > { %1650 = vrcp.f32 %v1018_v31  ;;  %v1625_v31 = vld [vmem:[%s1957_s5 + $0x8] sm:$0xff]  }
 0x3bd   : > { %1652 = vrcp.f32 %v1021_v29 }
 0x3be   : > { %v1027_v35 = vpop.xlane.xlu0 %1026 }
 0x3bf   : > { %v1024_v32 = vpop.xlane.xlu1 %1023 }
 0x3c0   : > { %1654 = vrcp.f32 %v1024_v32  ;;  %v1645_v33 = vpop.eup %1644 }
 0x3c1   : > { %v1039_v36 = vmul.f32 %v1645_v33, %v1629_v59  ;;  %1656 = vrcp.f32 %v1027_v35 }
 0x3c3   : > { %v618_v46 = vpop.permute.xlu1 %617 }
 0x3c4   : > { %v682_v53 = vadd.f32 %v1875_v12, %v618_v46 }
 0x3c5   : > { %v1647_v34 = vpop.eup %1646 }
 0x3c6   : > { %v1040_v37 = vmul.f32 %v1647_v34, %v1633_v62  ;;  %v1649_v38 = vpop.eup %1648  ;;  %v614_v41 = vpop.permute.xlu0 %613  ;;  %v702_v57 = vpack.c.bf16 %v682_v53, %v682_v53 }
 0x3c7   : > { %v1041_v43 = vmul.f32 %v1649_v38, %v1631_v61  ;;  %v679_v47 = vadd.f32 %v1870_v2, %v614_v41  ;;  %v622_v56 = vpop.permute.xlu1 %621 }
 0x3c8   : > { %v1047_v39 = vpack.c.bf16 %v1040_v37, %v1039_v36  ;;  %v687_v58 = vadd.f32 %v1868_v1, %v622_v56 }
 0x3c9   : > { %v1651_v40 = vpop.eup %1650  ;;  %v701_v54 = vpack.c.bf16 %v679_v47, %v679_v47 }
 0x3ca   : > { %v1055_v42 = vsel %vm769_vm4, %v1047_v39, 0  ;;  %v1042_v44 = vmul.f32 %v1651_v40, %v1637_v14  ;;  %v1653_v45 = vpop.eup %1652  ;;  %v703_v12 = vpack.c.bf16 %v687_v58, %v687_v58 }
 0x3cb   : > { %1541 = vmatpush3.bf16.xpose.msra.mxu0 %v1055_v42  ;;  %v1043_v51 = vmul.f32 %v1653_v45, %v1635_v11 }
 0x3cc   : > { %v1048_v48 = vpack.c.bf16 %v1042_v44, %v1041_v43  ;;  %1552 = vmatprep.subr.bf16.mxu0 %v1688_v30 }
 0x3cd   : > { %v1655_v49 = vpop.eup %1654 }
 0x3ce   : > { %v1101_v50 = vsel %vm769_vm4, %v1048_v48, 0  ;;  %v1044_v52 = vmul.f32 %v1655_v49, %v1641_v18  ;;  %v1657_v60 = vpop.eup %1656 }
 0x3cf   : > { %1547 = vmatpush3.bf16.xpose.msra.mxu1 %v1101_v50  ;;  %v1045_v62 = vmul.f32 %v1657_v60, %v1889_v17 }
 0x3d0   : > { %v1049_v55 = vpack.c.bf16 %v1044_v52, %v1043_v51  ;;  %1558 = vmatprep.subr.bf16.mxu1 %v1688_v30 }
 0x3d2   : > { %1543 = vmatmul.mubr.msk.bf16.vlgmr.msra.gmra.mxu0 %vm769_vm4, %v701_v54  ;;  %v1147_v2 = vsel %vm769_vm4, %v1049_v55, 0 }
 0x3d3   : > { %1553 = vmatpush3.bf16.xpose.msra.mxu0 %v1147_v2  ;;  %1554 = vmatprep.mubr.msk.bf16.mxu0 %vm1689_vm2, %v1688_v30 }
 0x3d6   : > { %1549 = vmatmul.mubr.msk.bf16.vlgmr.msra.gmra.mxu1 %vm769_vm4, %v702_v57 }
 0x3d7   : > { %1560 = vmatprep.mubr.msk.bf16.mxu1 %vm1689_vm2, %v1688_v30  ;;  %v1624_v30 = vld [vmem:[%s1957_s5] sm:$0xff]  }
 0x3da   : > { %1555 = vmatmul.mubr.msk.bf16.vlgmr.msra.gmra.mxu0 %vm769_vm4, %v703_v12 }
 0x3db   : > { %1568 = vmatprep.mubr.msk.bf16.mxu0 %vm461_vm1, %v1624_v30 }
 0x3f8   : > { %v1030_v59 = vpop.xlane.xlu1 %1029 }
 0x3f9   : > { %1658 = vrcp.f32 %v1030_v59 }
 0x3fc   : > { %v626_v11 = vpop.permute.xlu1 %625 }
 0x3fd   : > { %v690_v14 = vadd.f32 %v1872_v8, %v626_v11 }
 0x3ff   : > { %v704_v15 = vpack.c.bf16 %v690_v14, %v690_v14 }
 0x400   : > { %v1243_v32 = vpop.permute.xlu1 %1242 }
 0x404   : > { %v1247_v33 = vpop.permute.xlu1 %1246 }
 0x406   : > { %v1659_v61 = vpop.eup %1658 }
 0x407   : > { %v1046_v63 = vmul.f32 %v1659_v61, %v1643_v24 }
 0x408   : > { %v1251_v34 = vpop.permute.xlu1 %1250 }
 0x409   : > { %v1050_v9 = vpack.c.bf16 %v1046_v63, %v1045_v62 }
 0x40b   : > { %v1193_v1 = vsel %vm769_vm4, %v1050_v9, 0 }
 0x40c   : > { %1559 = vmatpush3.bf16.xpose.msra.mxu1 %v1193_v1  ;;  %v1255_v40 = vpop.permute.xlu1 %1254 }
 0x413   : > { %1561 = vmatmul.mubr.msk.bf16.vlgmr.msra.gmra.mxu1 %vm769_vm4, %v704_v15 }
 0x492   : > { %v1091_v8 = vpop.f32.mrf.mxu0 }
 0x494   : > { %v1544_v17 = vpop.f32.mrf.mxu0 }
 0x496   : > { %v1094_v18 = vpop.f32.mrf.mxu0  ;;  %v1137_v19 = vpop.f32.mrf.mxu1 }
 0x497   : > { %v1235_v29 = vpack.c.bf16 %v1137_v19, %v1091_v8 }
 0x498   : > { %v1545_v20 = vpop.f32.mrf.mxu0  ;;  %v1550_v21 = vpop.f32.mrf.mxu1 }
 0x49a   : > { %v1140_v22 = vpop.f32.mrf.mxu1  ;;  %v1183_v23 = vpop.f32.mrf.mxu0 }
 0x49c   : > { %v1551_v24 = vpop.f32.mrf.mxu1  ;;  %v1556_v25 = vpop.f32.mrf.mxu0 }
 0x49e   : > { %v1186_v26 = vpop.f32.mrf.mxu0 }
 0x4a0   : > { %v1557_v27 = vpop.f32.mrf.mxu0 }
 0x4d3   : > { %v1229_v28 = vpop.f32.mrf.mxu1 }
 0x4d4   : > { %v1236_v4 = vpack.c.bf16 %v1229_v28, %v1183_v23 }
 0x4d5   : > { %v1562_v7 = vpop.f32.mrf.mxu1 }
 0x4d6   : > { %1564 = vmatprep.subr.bf16.mxu0 %v1236_v4 }
 0x4d7   : > { %v1232_v0 = vpop.f32.mrf.mxu1  ;;  %1565 = vmatpush3.bf16.msra.mxu0 %v1236_v4 }
 0x4d8   : > { %1566 = vmatprep.subr.bf16.mxu0 %v1235_v29 }
 0x4d9   : > { %v1563_v3 = vpop.f32.mrf.mxu1 }
 0x4db   : > { %1567 = vmatpush3.bf16.msra.mxu0 %v1235_v29 }
 0x4de   : > { %1569 = vmatmul.mubr.msk.bf16.vlgmr.msra.gmra.mxu0 %vm461_vm1, %v1625_v31 }
 0x59e   : > { %v1570_v35 = vpop.f32.mrf.mxu0 }
 0x59f   : > { %v1316_v36 = vadd.f32 %v1570_v35, %v1251_v34 }
 0x5a0   : > { %v1307_v37 = vpop.f32.mrf.mxu0 }
 0x5a1   : > { %v1324_v38 = vadd.f32 %v1316_v36, %v1792_v10  ;;  %v1308_v39 = vadd.f32 %v1307_v37, %v1243_v32 }
 0x5a2   : > { %v1571_v41 = vpop.f32.mrf.mxu0 }
 0x5a3   : > { %1328 = vst.msk [vmem:[%s329_s21 + $0x10] sm:$0xff] %vm341_vm0, %v1324_v38  ;;  %v1322_v42 = vadd.f32 %v1308_v39, %v1777_v5  ;;  %v1319_v43 = vadd.f32 %v1571_v41, %v1255_v40 }
 0x5a4   : > { %v1310_v44 = vpop.f32.mrf.mxu0 }
 0x5a5   : > { %1326 = vst.msk [vmem:[%s329_s21] sm:$0xff] %vm341_vm0, %v1322_v42  ;;  %v1325_v45 = vadd.f32 %v1319_v43, %v1797_v13  ;;  %v1311_v46 = vadd.f32 %v1310_v44, %v1247_v33 }
 0x5a7   : > { %1329 = vst.msk [vmem:[%s329_s21 + $0x18] sm:$0xff] %vm341_vm0, %v1325_v45  ;;  %v1323_v47 = vadd.f32 %v1311_v46, %v1779_v6 }
 0x5a9   : > { %1327 = vst.msk [vmem:[%s329_s21 + $0x8] sm:$0xff] %vm341_vm0, %v1323_v47 }
 0x5aa PF: > { %s17_s26 = sadd.s32 1, %s1682_s26   ;;  %s1960_s24 = smov %s1678_s25 }
 0x5ab   : > { %p14_p5 = scmp.ge.s32.totalorder %s17_s26, 4   ;;  %s1961_s25 = smov %s1963_s27 }
 0x5ad   :  { %16 = sbr.rel (!%p14_p5) target bundleno = 2 (0x2), region = 81 }

</bundles_post_ra>
